<compile_context>
chip_gen: v6e
topology: v6e:2x2x1
jax: 0.10.0
libtpu: 0.0.40
codegen_flags: <defaults>
</compile_context>

<pallas_src>
import jax
import jax.numpy as jnp
from jax.experimental import pallas as pl
from jax.experimental.pallas import tpu as pltpu


_LN_EPS = 1e-5
_INV_SQRT2 = 0.7071067811865476


def _gelu_exact(x):
    # PyTorch nn.GELU() default = exact (erf-based) GELU.
    return 0.5 * x * (1.0 + jax.lax.erf(x * _INV_SQRT2))


def _layernorm(x, gamma, beta):
    mu = jnp.mean(x, axis=-1, keepdims=True)
    var = jnp.mean(jnp.square(x - mu), axis=-1, keepdims=True)
    return (x - mu) * jax.lax.rsqrt(var + _LN_EPS) * gamma + beta


def spatial_att_kernel(x_ref,         # (Bn*HW, Cin)  channels-last rows
                       mean_sel_ref,  # (Bn, Bn*HW)   block-diag 1/HW
                       sp_sel_ref,    # (Bn, Bn*HW)   block-diag wsp
                       w1t_ref,       # (Cin, Cout)   pre-transposed
                       w3t_ref,       # (Cout, Cout)  pre-transposed
                       w2t_ref,       # (Cin, Cout)   pre-transposed
                       pk_co_ref,     # (5, Cout): b1, ln_g, ln_b, b3, b2
                       pk_ci_ref,     # (3, Cin):  lnsp_g, lnsp_b, bsp
                       out_ref):      # (Bn, 2*Cout)
    x = x_ref[...]
    pk_co = pk_co_ref[...]
    pk_ci = pk_ci_ref[...]
    b1, ln_g, ln_b = pk_co[0:1, :], pk_co[1:2, :], pk_co[2:3, :]
    b3, b2 = pk_co[3:4, :], pk_co[4:5, :]
    lnsp_g, lnsp_b, bsp = pk_ci[0:1, :], pk_ci[1:2, :], pk_ci[2:3, :]

    # ---- branch A: conv1 (1x1) -> LayerNorm(channels) -> GELU ----
    g = jnp.dot(x, w1t_ref[...], preferred_element_type=jnp.float32) + b1
    g = _layernorm(g, ln_g, ln_b)
    g = _gelu_exact(g)
    # Per-sample mean over HW as one MXU contraction (block-diag 1/HW matrix).
    # conv3 is linear, so the mean is taken FIRST and conv3 is applied to the
    # (Bn, Cout) means instead of the (Bn*HW, Cout) map: HW-fold less MXU work.
    g_mean = jnp.dot(mean_sel_ref[...], g,
                     preferred_element_type=jnp.float32)                 # (Bn, Cout)
    feat_mean = jnp.dot(g_mean, w3t_ref[...],
                        preferred_element_type=jnp.float32) + b3         # (Bn, Cout)

    # ---- branch B: Linear(HW,1) -> LayerNorm(dim) -> GELU -> conv2 ----
    sp = jnp.dot(sp_sel_ref[...], x,
                 preferred_element_type=jnp.float32) + bsp               # (Bn, Cin)
    sp = _layernorm(sp, lnsp_g, lnsp_b)
    sp = _gelu_exact(sp)
    sp = jnp.dot(sp, w2t_ref[...], preferred_element_type=jnp.float32) + b2  # (Bn, Cout)

    c_out = out_ref.shape[-1] // 2
    out_ref[:, :c_out] = feat_mean
    out_ref[:, c_out:] = sp


def _padded_tile_bytes(rows, cols, bytes_per_elem=4):
    # VMEM footprint of a (rows, cols) f32 tile after (8, 128) padding.
    return (-(-rows // 8) * 8) * (-(-cols // 128) * 128) * bytes_per_elem


def spatial_att_pallas(x_nchw, p):
    n, c_in, h, w = x_nchw.shape
    hw = h * w
    c_out = p["w1"].shape[0]

    # --- batch blocking: Bn samples per grid step ---
    if n <= 8:
        bn, n_pad = n, n              # single full block (block dims == array dims)
    else:
        bn = 8                        # multiple of 8 -> legal sublane block size
        n_pad = -(-n // bn) * bn
    # TODO(synk): for very large im_size an additional HW-tiled grid axis with a
    # pl.when-guarded accumulator would be needed to respect v7x's 64 MiB VMEM.

    if n_pad != n:
        x_nchw = jnp.pad(x_nchw, ((0, n_pad - n), (0, 0), (0, 0), (0, 0)))

    # Channels-last, flattened spatial rows: (n_pad*HW, Cin).
    # TODO(synk): this NCHW->NHWC transpose is still one wrapper-side HBM pass;
    # accepting NHWC input from the caller would remove it entirely.
    x2 = x_nchw.reshape(n_pad, c_in, hw).transpose(0, 2, 1).reshape(n_pad * hw, c_in)

    # Pre-transposed weights (hoisted; the kernel never transposes).
    w1t = p["w1"].T          # (Cin, Cout)
    w3t = p["w3"].T          # (Cout, Cout)
    w2t = p["w2"].T          # (Cin, Cout)

    # Pack the small per-channel params into two arrays (fewer DMA'd inputs).
    pk_co = jnp.concatenate([p["b1"], p["ln_g"], p["ln_b"], p["b3"], p["b2"]],
                            axis=0)                                    # (5, Cout)
    pk_ci = jnp.concatenate([p["lnsp_g"], p["lnsp_b"],
                             jnp.broadcast_to(p["bsp"], (1, c_in))],
                            axis=0)                                    # (3, Cin)

    # Block-diagonal selection matrices: per-sample spatial reductions become
    # MXU contractions inside the kernel.
    eye = jnp.eye(bn, dtype=jnp.float32)                               # (Bn, Bn)
    mean_row = jnp.full((hw,), 1.0 / hw, jnp.float32)
    mean_sel = (eye[:, :, None] * mean_row[None, None, :]).reshape(bn, bn * hw)
    sp_sel = (eye[:, :, None] * p["wsp"].reshape(hw)[None, None, :]).reshape(bn, bn * hw)

    grid = (n_pad // bn,)

    # Explicit VMEM budget for the chosen block sizes (inputs double-buffered).
    est = (2 * _padded_tile_bytes(bn * hw, c_in)          # x
           + 4 * _padded_tile_bytes(bn, bn * hw)          # two selection matrices
           + 2 * (2 * _padded_tile_bytes(c_in, c_out)
                  + _padded_tile_bytes(c_out, c_out)
                  + _padded_tile_bytes(5, c_out)
                  + _padded_tile_bytes(3, c_in))
           + 2 * _padded_tile_bytes(bn, 2 * c_out)        # out
           + 2 * _padded_tile_bytes(bn * hw, c_out))      # g intermediate (+slack)
    vmem_limit = int(min(max(16 * 2 ** 20, 2 * est), 64 * 2 ** 20))

    out = pl.pallas_call(
        spatial_att_kernel,
        out_shape=jax.ShapeDtypeStruct((n_pad, 2 * c_out), jnp.float32),
        grid=grid,
        in_specs=[
            pl.BlockSpec((bn * hw, c_in), lambda b: (b, 0)),    # x rows
            pl.BlockSpec((bn, bn * hw), lambda b: (0, 0)),      # mean_sel
            pl.BlockSpec((bn, bn * hw), lambda b: (0, 0)),      # sp_sel
            pl.BlockSpec((c_in, c_out), lambda b: (0, 0)),      # w1t
            pl.BlockSpec((c_out, c_out), lambda b: (0, 0)),     # w3t
            pl.BlockSpec((c_in, c_out), lambda b: (0, 0)),      # w2t
            pl.BlockSpec((5, c_out), lambda b: (0, 0)),         # packed Cout params
            pl.BlockSpec((3, c_in), lambda b: (0, 0)),          # packed Cin params
        ],
        out_specs=pl.BlockSpec((bn, 2 * c_out), lambda b: (b, 0)),
        compiler_params=pltpu.CompilerParams(
            dimension_semantics=("parallel",),
            vmem_limit_bytes=vmem_limit),
    )(x2, mean_sel, sp_sel, w1t, w3t, w2t, pk_co, pk_ci)

    return out[:n].reshape(n, 2 * c_out, 1, 1)


def spatial_att_ref(x_nchw, p):
    """Pure-JAX reference mirroring the PyTorch forward (for verification)."""
    n, c_in, h, w = x_nchw.shape
    hw = h * w
    xs = x_nchw.reshape(n, c_in, hw).transpose(0, 2, 1)  # (n, hw, c_in)

    f = jnp.einsum("npc,oc->npo", xs, p["w1"]) + p["b1"]
    f = _layernorm(f, p["ln_g"], p["ln_b"])
    f = _gelu_exact(f)
    f = jnp.einsum("npc,oc->npo", f, p["w3"]) + p["b3"]
    feat_mean = jnp.mean(f, axis=1)                          # (n, c_out)

    sp = jnp.einsum("npc,pq->nqc", xs, p["wsp"]) + p["bsp"]  # (n, 1, c_in)
    sp = _layernorm(sp, p["lnsp_g"], p["lnsp_b"])
    sp = _gelu_exact(sp)
    sp = jnp.einsum("nqc,oc->nqo", sp, p["w2"]) + p["b2"]    # (n, 1, c_out)

    out = jnp.concatenate([feat_mean, sp[:, 0, :]], axis=-1)
    return out.reshape(n, -1, 1, 1)


def init_params(key, dim, dim_out, im_size):
    ks = jax.random.split(key, 8)
    scale = 0.05
    return {
        "w1": scale * jax.random.normal(ks[0], (dim_out, dim), jnp.float32),
        "b1": scale * jax.random.normal(ks[1], (1, dim_out), jnp.float32),
        "ln_g": jnp.ones((1, dim_out), jnp.float32),
        "ln_b": jnp.zeros((1, dim_out), jnp.float32),
        "w3": scale * jax.random.normal(ks[2], (dim_out, dim_out), jnp.float32),
        "b3": scale * jax.random.normal(ks[3], (1, dim_out), jnp.float32),
        "wsp": scale * jax.random.normal(ks[4], (im_size, 1), jnp.float32),
        "bsp": scale * jax.random.normal(ks[5], (1, 1), jnp.float32),
        "lnsp_g": jnp.ones((1, dim), jnp.float32),
        "lnsp_b": jnp.zeros((1, dim), jnp.float32),
        "w2": scale * jax.random.normal(ks[6], (dim_out, dim), jnp.float32),
        "b2": scale * jax.random.normal(ks[7], (1, dim_out), jnp.float32),
    }
    # TODO(synk): `with_feat`'s feat_linear is defined in __init__ but never
    # used in forward, so it is intentionally omitted here.


if __name__ == "__main__":
    key = jax.random.PRNGKey(0)
    k_x, k_p, k_x2, k_p2 = jax.random.split(key, 4)

    # Case 1: original demo shapes (single full block, Bn == N).
    N, DIM, DIM_OUT, H, W = 2, 4, 8, 16, 16
    x = jax.random.normal(k_x, (N, DIM, H, W), jnp.float32)
    params = init_params(k_p, DIM, DIM_OUT, H * W)

    out = spatial_att_pallas(x, params)
    jax.block_until_ready(out)
    ref = spatial_att_ref(x, params)
    assert out.shape == (N, 2 * DIM_OUT, 1, 1), out.shape
    assert jnp.allclose(out, ref, atol=1e-4, rtol=1e-4), (
        float(jnp.max(jnp.abs(out - ref))))

    # Case 2: N > 8 exercises Bn=8 batch blocking, batch padding, 2-step grid.
    N2, DIM2, DIM_OUT2, H2, W2 = 11, 16, 32, 8, 8
    x_b = jax.random.normal(k_x2, (N2, DIM2, H2, W2), jnp.float32)
    params_b = init_params(k_p2, DIM2, DIM_OUT2, H2 * W2)

    out_b = spatial_att_pallas(x_b, params_b)
    jax.block_until_ready(out_b)
    ref_b = spatial_att_ref(x_b, params_b)
    assert out_b.shape == (N2, 2 * DIM_OUT2, 1, 1), out_b.shape
    assert jnp.allclose(out_b, ref_b, atol=1e-4, rtol=1e-4), (
        float(jnp.max(jnp.abs(out_b - ref_b))))

    print("KERNEL_OK")
</pallas_src>

<mosaic_0001>
module attributes {stable_mosaic.version = 11 : i64} {
  func.func @spatial_att_kernel(%arg0: i32, %arg1: memref<512x4xf32, #tpu.memory_space<vmem>>, %arg2: memref<2x512xf32, #tpu.memory_space<vmem>>, %arg3: memref<2x512xf32, #tpu.memory_space<vmem>>, %arg4: memref<4x8xf32, #tpu.memory_space<vmem>>, %arg5: memref<8x8xf32, #tpu.memory_space<vmem>>, %arg6: memref<4x8xf32, #tpu.memory_space<vmem>>, %arg7: memref<5x8xf32, #tpu.memory_space<vmem>>, %arg8: memref<3x4xf32, #tpu.memory_space<vmem>>, %arg9: memref<2x16xf32, #tpu.memory_space<vmem>>) attributes {dimension_semantics = [#tpu.dimension_semantics<parallel>], iteration_bounds = array<i64: 1>, scalar_prefetch = 0 : i64, scratch_operands = 0 : i64, tpu.core_type = #tpu.core_type<tc>, window_params = [{transform_indices = @transform_0, window_bounds = array<i64: 512, 4>}, {pipeline_mode = #tpu.pipeline_mode<synchronous>, transform_indices = @transform_1, window_bounds = array<i64: 2, 512>}, {pipeline_mode = #tpu.pipeline_mode<synchronous>, transform_indices = @transform_2, window_bounds = array<i64: 2, 512>}, {pipeline_mode = #tpu.pipeline_mode<synchronous>, transform_indices = @transform_3, window_bounds = array<i64: 4, 8>}, {pipeline_mode = #tpu.pipeline_mode<synchronous>, transform_indices = @transform_4, window_bounds = array<i64: 8, 8>}, {pipeline_mode = #tpu.pipeline_mode<synchronous>, transform_indices = @transform_5, window_bounds = array<i64: 4, 8>}, {pipeline_mode = #tpu.pipeline_mode<synchronous>, transform_indices = @transform_6, window_bounds = array<i64: 5, 8>}, {pipeline_mode = #tpu.pipeline_mode<synchronous>, transform_indices = @transform_7, window_bounds = array<i64: 3, 4>}, {transform_indices = @transform_8, window_bounds = array<i64: 2, 16>}]} {
    %c0 = arith.constant 0 : index
    %c0_0 = arith.constant 0 : index
    %0 = vector.load %arg1[%c0, %c0_0] : memref<512x4xf32, #tpu.memory_space<vmem>>, vector<512x4xf32>
    %c0_1 = arith.constant 0 : index
    %c0_2 = arith.constant 0 : index
    %1 = vector.load %arg7[%c0_1, %c0_2] : memref<5x8xf32, #tpu.memory_space<vmem>>, vector<5x8xf32>
    %c0_3 = arith.constant 0 : index
    %c0_4 = arith.constant 0 : index
    %2 = vector.load %arg8[%c0_3, %c0_4] : memref<3x4xf32, #tpu.memory_space<vmem>>, vector<3x4xf32>
    %3 = vector.extract_strided_slice %1 {offsets = [0, 0], sizes = [1, 8], strides = [1, 1]} : vector<5x8xf32> to vector<1x8xf32>
    %4 = vector.extract_strided_slice %1 {offsets = [1, 0], sizes = [1, 8], strides = [1, 1]} : vector<5x8xf32> to vector<1x8xf32>
    %5 = vector.extract_strided_slice %1 {offsets = [2, 0], sizes = [1, 8], strides = [1, 1]} : vector<5x8xf32> to vector<1x8xf32>
    %6 = vector.extract_strided_slice %1 {offsets = [3, 0], sizes = [1, 8], strides = [1, 1]} : vector<5x8xf32> to vector<1x8xf32>
    %7 = vector.extract_strided_slice %1 {offsets = [4, 0], sizes = [1, 8], strides = [1, 1]} : vector<5x8xf32> to vector<1x8xf32>
    %8 = vector.extract_strided_slice %2 {offsets = [0, 0], sizes = [1, 4], strides = [1, 1]} : vector<3x4xf32> to vector<1x4xf32>
    %9 = vector.extract_strided_slice %2 {offsets = [1, 0], sizes = [1, 4], strides = [1, 1]} : vector<3x4xf32> to vector<1x4xf32>
    %10 = vector.extract_strided_slice %2 {offsets = [2, 0], sizes = [1, 4], strides = [1, 1]} : vector<3x4xf32> to vector<1x4xf32>
    %c0_5 = arith.constant 0 : index
    %c0_6 = arith.constant 0 : index
    %11 = vector.load %arg4[%c0_5, %c0_6] : memref<4x8xf32, #tpu.memory_space<vmem>>, vector<4x8xf32>
    %cst = arith.constant dense<0.000000e+00> : vector<512x8xf32>
    %12 = tpu.matmul %0, %11, %cst {dimension_numbers = #tpu.dot_dimension_numbers<[1], [0], [0], [1], [0, 0, 1, 1], [], []>} : vector<512x4xf32>, vector<4x8xf32>, vector<512x8xf32> -> vector<512x8xf32>
    %13 = vector.broadcast %3 : vector<1x8xf32> to vector<512x8xf32>
    %14 = arith.addf %12, %13 : vector<512x8xf32>
    %cst_7 = arith.constant dense<0.000000e+00> : vector<512xf32>
    %15 = vector.multi_reduction <add>, %14, %cst_7 [1] : vector<512x8xf32> to vector<512xf32>
    %16 = vector.shape_cast %15 : vector<512xf32> to vector<512x1xf32>
    %cst_8 = arith.constant 8.000000e+00 : f32
    %17 = vector.broadcast %cst_8 : f32 to vector<512x1xf32>
    %18 = arith.divf %16, %17 : vector<512x1xf32>
    %19 = vector.broadcast %18 : vector<512x1xf32> to vector<512x8xf32>
    %20 = arith.subf %14, %19 : vector<512x8xf32>
    %21 = arith.mulf %20, %20 : vector<512x8xf32>
    %cst_9 = arith.constant dense<0.000000e+00> : vector<512xf32>
    %22 = vector.multi_reduction <add>, %21, %cst_9 [1] : vector<512x8xf32> to vector<512xf32>
    %23 = vector.shape_cast %22 : vector<512xf32> to vector<512x1xf32>
    %cst_10 = arith.constant 8.000000e+00 : f32
    %24 = vector.broadcast %cst_10 : f32 to vector<512x1xf32>
    %25 = arith.divf %23, %24 : vector<512x1xf32>
    %26 = vector.broadcast %18 : vector<512x1xf32> to vector<512x8xf32>
    %27 = arith.subf %14, %26 : vector<512x8xf32>
    %cst_11 = arith.constant 9.99999974E-6 : f32
    %28 = vector.broadcast %cst_11 : f32 to vector<512x1xf32>
    %29 = arith.addf %25, %28 : vector<512x1xf32>
    %30 = math.rsqrt %29 : vector<512x1xf32>
    %31 = vector.broadcast %30 : vector<512x1xf32> to vector<512x8xf32>
    %32 = arith.mulf %27, %31 : vector<512x8xf32>
    %33 = vector.broadcast %4 : vector<1x8xf32> to vector<512x8xf32>
    %34 = arith.mulf %32, %33 : vector<512x8xf32>
    %35 = vector.broadcast %5 : vector<1x8xf32> to vector<512x8xf32>
    %36 = arith.addf %34, %35 : vector<512x8xf32>
    %cst_12 = arith.constant 5.000000e-01 : f32
    %37 = vector.broadcast %cst_12 : f32 to vector<512x8xf32>
    %38 = arith.mulf %37, %36 : vector<512x8xf32>
    %cst_13 = arith.constant 0.707106769 : f32
    %39 = vector.broadcast %cst_13 : f32 to vector<512x8xf32>
    %40 = arith.mulf %36, %39 : vector<512x8xf32>
    %41 = math.erf %40 : vector<512x8xf32>
    %cst_14 = arith.constant 1.000000e+00 : f32
    %42 = vector.broadcast %cst_14 : f32 to vector<512x8xf32>
    %43 = arith.addf %42, %41 : vector<512x8xf32>
    %44 = arith.mulf %38, %43 : vector<512x8xf32>
    %c0_15 = arith.constant 0 : index
    %c0_16 = arith.constant 0 : index
    %45 = vector.load %arg2[%c0_15, %c0_16] : memref<2x512xf32, #tpu.memory_space<vmem>>, vector<2x512xf32>
    %cst_17 = arith.constant dense<0.000000e+00> : vector<2x8xf32>
    %46 = tpu.matmul %45, %44, %cst_17 {dimension_numbers = #tpu.dot_dimension_numbers<[1], [0], [0], [1], [0, 0, 1, 1], [], []>} : vector<2x512xf32>, vector<512x8xf32>, vector<2x8xf32> -> vector<2x8xf32>
    %c0_18 = arith.constant 0 : index
    %c0_19 = arith.constant 0 : index
    %47 = vector.load %arg5[%c0_18, %c0_19] : memref<8x8xf32, #tpu.memory_space<vmem>>, vector<8x8xf32>
    %cst_20 = arith.constant dense<0.000000e+00> : vector<2x8xf32>
    %48 = tpu.matmul %46, %47, %cst_20 {dimension_numbers = #tpu.dot_dimension_numbers<[1], [0], [0], [1], [0, 0, 1, 1], [], []>} : vector<2x8xf32>, vector<8x8xf32>, vector<2x8xf32> -> vector<2x8xf32>
    %49 = vector.broadcast %6 : vector<1x8xf32> to vector<2x8xf32>
    %50 = arith.addf %48, %49 : vector<2x8xf32>
    %c0_21 = arith.constant 0 : index
    %c0_22 = arith.constant 0 : index
    %51 = vector.load %arg3[%c0_21, %c0_22] : memref<2x512xf32, #tpu.memory_space<vmem>>, vector<2x512xf32>
    %cst_23 = arith.constant dense<0.000000e+00> : vector<2x4xf32>
    %52 = tpu.matmul %51, %0, %cst_23 {dimension_numbers = #tpu.dot_dimension_numbers<[1], [0], [0], [1], [0, 0, 1, 1], [], []>} : vector<2x512xf32>, vector<512x4xf32>, vector<2x4xf32> -> vector<2x4xf32>
    %53 = vector.broadcast %10 : vector<1x4xf32> to vector<2x4xf32>
    %54 = arith.addf %52, %53 : vector<2x4xf32>
    %cst_24 = arith.constant dense<0.000000e+00> : vector<2xf32>
    %55 = vector.multi_reduction <add>, %54, %cst_24 [1] : vector<2x4xf32> to vector<2xf32>
    %56 = vector.shape_cast %55 : vector<2xf32> to vector<2x1xf32>
    %cst_25 = arith.constant 4.000000e+00 : f32
    %57 = vector.broadcast %cst_25 : f32 to vector<2x1xf32>
    %58 = arith.divf %56, %57 : vector<2x1xf32>
    %59 = vector.broadcast %58 : vector<2x1xf32> to vector<2x4xf32>
    %60 = arith.subf %54, %59 : vector<2x4xf32>
    %61 = arith.mulf %60, %60 : vector<2x4xf32>
    %cst_26 = arith.constant dense<0.000000e+00> : vector<2xf32>
    %62 = vector.multi_reduction <add>, %61, %cst_26 [1] : vector<2x4xf32> to vector<2xf32>
    %63 = vector.shape_cast %62 : vector<2xf32> to vector<2x1xf32>
    %cst_27 = arith.constant 4.000000e+00 : f32
    %64 = vector.broadcast %cst_27 : f32 to vector<2x1xf32>
    %65 = arith.divf %63, %64 : vector<2x1xf32>
    %66 = vector.broadcast %58 : vector<2x1xf32> to vector<2x4xf32>
    %67 = arith.subf %54, %66 : vector<2x4xf32>
    %cst_28 = arith.constant 9.99999974E-6 : f32
    %68 = vector.broadcast %cst_28 : f32 to vector<2x1xf32>
    %69 = arith.addf %65, %68 : vector<2x1xf32>
    %70 = math.rsqrt %69 : vector<2x1xf32>
    %71 = vector.broadcast %70 : vector<2x1xf32> to vector<2x4xf32>
    %72 = arith.mulf %67, %71 : vector<2x4xf32>
    %73 = vector.broadcast %8 : vector<1x4xf32> to vector<2x4xf32>
    %74 = arith.mulf %72, %73 : vector<2x4xf32>
    %75 = vector.broadcast %9 : vector<1x4xf32> to vector<2x4xf32>
    %76 = arith.addf %74, %75 : vector<2x4xf32>
    %cst_29 = arith.constant 5.000000e-01 : f32
    %77 = vector.broadcast %cst_29 : f32 to vector<2x4xf32>
    %78 = arith.mulf %77, %76 : vector<2x4xf32>
    %cst_30 = arith.constant 0.707106769 : f32
    %79 = vector.broadcast %cst_30 : f32 to vector<2x4xf32>
    %80 = arith.mulf %76, %79 : vector<2x4xf32>
    %81 = math.erf %80 : vector<2x4xf32>
    %cst_31 = arith.constant 1.000000e+00 : f32
    %82 = vector.broadcast %cst_31 : f32 to vector<2x4xf32>
    %83 = arith.addf %82, %81 : vector<2x4xf32>
    %84 = arith.mulf %78, %83 : vector<2x4xf32>
    %c0_32 = arith.constant 0 : index
    %c0_33 = arith.constant 0 : index
    %85 = vector.load %arg6[%c0_32, %c0_33] : memref<4x8xf32, #tpu.memory_space<vmem>>, vector<4x8xf32>
    %cst_34 = arith.constant dense<0.000000e+00> : vector<2x8xf32>
    %86 = tpu.matmul %84, %85, %cst_34 {dimension_numbers = #tpu.dot_dimension_numbers<[1], [0], [0], [1], [0, 0, 1, 1], [], []>} : vector<2x4xf32>, vector<4x8xf32>, vector<2x8xf32> -> vector<2x8xf32>
    %87 = vector.broadcast %7 : vector<1x8xf32> to vector<2x8xf32>
    %88 = arith.addf %86, %87 : vector<2x8xf32>
    %c0_35 = arith.constant 0 : index
    %c0_36 = arith.constant 0 : index
    %89 = vector.load %arg9[%c0_35, %c0_36] : memref<2x16xf32, #tpu.memory_space<vmem>>, vector<2x8xf32>
    tpu.vector_store %arg9[%c0_35, %c0_36], %50 {strides = array<i32>} : memref<2x16xf32, #tpu.memory_space<vmem>>, vector<2x8xf32>,
    %c0_37 = arith.constant 0 : index
    %c8 = arith.constant 8 : index
    %90 = vector.load %arg9[%c0_37, %c8] : memref<2x16xf32, #tpu.memory_space<vmem>>, vector<2x8xf32>
    tpu.vector_store %arg9[%c0_37, %c8], %88 {strides = array<i32>} : memref<2x16xf32, #tpu.memory_space<vmem>>, vector<2x8xf32>,
    return
  }
  func.func @transform_0(%arg0: i32) -> (i32, i32) {
    %c0_i32 = arith.constant 0 : i32
    %c0_i32_0 = arith.constant 0 : i32
    return %arg0, %c0_i32 : i32, i32
  }
  func.func @transform_1(%arg0: i32) -> (i32, i32) {
    %c0_i32 = arith.constant 0 : i32
    %c0_i32_0 = arith.constant 0 : i32
    %c0_i32_1 = arith.constant 0 : i32
    return %c0_i32, %c0_i32_0 : i32, i32
  }
  func.func @transform_2(%arg0: i32) -> (i32, i32) {
    %c0_i32 = arith.constant 0 : i32
    %c0_i32_0 = arith.constant 0 : i32
    %c0_i32_1 = arith.constant 0 : i32
    return %c0_i32, %c0_i32_0 : i32, i32
  }
  func.func @transform_3(%arg0: i32) -> (i32, i32) {
    %c0_i32 = arith.constant 0 : i32
    %c0_i32_0 = arith.constant 0 : i32
    %c0_i32_1 = arith.constant 0 : i32
    return %c0_i32, %c0_i32_0 : i32, i32
  }
  func.func @transform_4(%arg0: i32) -> (i32, i32) {
    %c0_i32 = arith.constant 0 : i32
    %c0_i32_0 = arith.constant 0 : i32
    %c0_i32_1 = arith.constant 0 : i32
    return %c0_i32, %c0_i32_0 : i32, i32
  }
  func.func @transform_5(%arg0: i32) -> (i32, i32) {
    %c0_i32 = arith.constant 0 : i32
    %c0_i32_0 = arith.constant 0 : i32
    %c0_i32_1 = arith.constant 0 : i32
    return %c0_i32, %c0_i32_0 : i32, i32
  }
  func.func @transform_6(%arg0: i32) -> (i32, i32) {
    %c0_i32 = arith.constant 0 : i32
    %c0_i32_0 = arith.constant 0 : i32
    %c0_i32_1 = arith.constant 0 : i32
    return %c0_i32, %c0_i32_0 : i32, i32
  }
  func.func @transform_7(%arg0: i32) -> (i32, i32) {
    %c0_i32 = arith.constant 0 : i32
    %c0_i32_0 = arith.constant 0 : i32
    %c0_i32_1 = arith.constant 0 : i32
    return %c0_i32, %c0_i32_0 : i32, i32
  }
  func.func @transform_8(%arg0: i32) -> (i32, i32) {
    %c0_i32 = arith.constant 0 : i32
    %c0_i32_0 = arith.constant 0 : i32
    return %arg0, %c0_i32 : i32, i32
  }
}

</mosaic_0001>

<bundles_post_ra>
// kernel: tpu_custom_call.1
= control target key start
LH: loop header
LB: loop body
LE: loop exit
PB: predicated region body
PF: predicated region fallthrough
CT: control target
= control target key end

     0   :  { %vm294_vm0 = vcmask 1043456   ;;  %vm101_vm1 = vcmask 31744   ;;  %s5124_s0 = inlined_call_operand.vmem [shape: f32[512,4], index: 0, kind: input, shape index: {}]   ;;  %s5125_s1 = inlined_call_operand.vmem [shape: f32[2,512], index: 1, kind: input, shape index: {}]   ;;  %s5126_s2 = inlined_call_operand.vmem [shape: f32[2,512], index: 2, kind: input, shape index: {}]   ;;  %s5127_s3 = inlined_call_operand.vmem [shape: f32[4,8], index: 3, kind: input, shape index: {}]   ;;  %s5128_s4 = inlined_call_operand.vmem [shape: f32[8,8], index: 4, kind: input, shape index: {}]   ;;  %s5129_s5 = inlined_call_operand.vmem [shape: f32[4,8], index: 5, kind: input, shape index: {}]   ;;  %s5130_s6 = inlined_call_operand.vmem [shape: f32[5,8], index: 6, kind: input, shape index: {}]   ;;  %s5131_s7 = inlined_call_operand.vmem [shape: f32[3,4], index: 7, kind: input, shape index: {}]   ;;  %s5132_s8 = inlined_call_operand.hbm [shape: f32[2,16], index: 8, kind: output, shape index: {}]  }
   0x1   :  { %v96_v0 = vld [vmem:[%s5127_s3] sm:$0xf]  ;;  %v31_v2 = vld [vmem:[%s5124_s0 + $0x8] sm:$0xff]  ;;  %v32_v3 = vld [vmem:[%s5124_s0 + $0x10] sm:$0xff] }
   0x2   :  { %v30_v1 = vld [vmem:[%s5124_s0] sm:$0xff]  ;;  %2791 = vmatprep.subr.msk.mxu0 %vm294_vm0, %v96_v0  ;;  %v33_v4 = vld [vmem:[%s5124_s0 + $0x18] sm:$0xff]  ;;  %v35_v6 = vld [vmem:[%s5124_s0 + $0x28] sm:$0xff] }
   0x3   :  { %2793 = vmatprep.mubr.msk.f32.mxu0 %vm101_vm1, %v30_v1  ;;  %2792 = vmatpush3.msk.msra.mxu0 %vm294_vm0, %v96_v0  ;;  %v34_v5 = vld [vmem:[%s5124_s0 + $0x20] sm:$0xff]  ;;  %v36_v7 = vld [vmem:[%s5124_s0 + $0x30] sm:$0xff]  ;;  %v37_v8 = vld [vmem:[%s5124_s0 + $0x38] sm:$0xff] }
   0x4   :  { %2794 = vmatmul.mubr.msk.f32.vlgmr.msra.gmra.mxu0 %vm101_vm1, %v31_v2  ;;  %v38_v9 = vld [vmem:[%s5124_s0 + $0x40] sm:$0xff]  ;;  %v39_v10 = vld [vmem:[%s5124_s0 + $0x48] sm:$0xff]  ;;  %v40_v11 = vld [vmem:[%s5124_s0 + $0x50] sm:$0xff] }
   0x5   :  { %2796 = vmatprep.mubr.msk.f32.mxu0 %vm101_vm1, %v32_v3  ;;  %v41_v12 = vld [vmem:[%s5124_s0 + $0x58] sm:$0xff]  ;;  %v42_v13 = vld [vmem:[%s5124_s0 + $0x60] sm:$0xff] }
   0x6   :  { %v3330_v14 = vld [vmem:[%s5124_s0 + $0x1f8] sm:$0xff] }
   0x7   :  { %2754 = vmatprep.subr.mxu0 %v3330_v14 }
   0x8   :  { %2797 = vmatmul.mubr.msk.f32.gmra.mxu0 %vm101_vm1, %v33_v4 }
   0x9   :  { %2799 = vmatprep.mubr.msk.f32.mxu0 %vm101_vm1, %v34_v5 }
   0xc   :  { %2800 = vmatmul.mubr.msk.f32.gmra.mxu0 %vm101_vm1, %v35_v6 }
   0xd   :  { %2802 = vmatprep.mubr.msk.f32.mxu0 %vm101_vm1, %v36_v7 }
  0x10   :  { %2803 = vmatmul.mubr.msk.f32.gmra.mxu0 %vm101_vm1, %v37_v8 }
  0x11   :  { %2805 = vmatprep.mubr.msk.f32.mxu0 %vm101_vm1, %v38_v9 }
  0x14   :  { %2806 = vmatmul.mubr.msk.f32.gmra.mxu0 %vm101_vm1, %v39_v10 }
  0x15   :  { %2808 = vmatprep.mubr.msk.f32.mxu0 %vm101_vm1, %v40_v11 }
  0x16   :  { %13 = vsyncpa [#allocation3], 0  ;;  %v3337_v15 = vld [vmem:[%s5124_s0 + $0x178] sm:$0xff]  ;;  %v43_v16 = vld [vmem:[%s5124_s0 + $0x68] sm:$0xff]  ;;  %v97_v1 = vlaneseq  ;;  %vm683_vm2 = vcmask 64512   ;;  %vm3224_vm3 = vmmov 0  }
  0x17   :  { %v3346_v17 = vld [vmem:[%s5124_s0 + $0x1f0] sm:$0xff]  ;;  %2755 = vmatpush3.msra.mxu0 %v3337_v15  ;;  %v3361_v20 = vld [vmem:[%s5124_s0 + $0x1e8] sm:$0xff]  ;;  %v45_v22 = vld [vmem:[%s5124_s0 + $0x78] sm:$0xff]  ;;  %vm2492_vm4 = vcmask 58368   ;;  %vm2381_vm5 = vcmask 25600   ;;  %s3226_s18 = smov [#allocation2]  }
  0x18   :  { %2809 = vmatmul.mubr.msk.f32.gmra.mxu0 %vm101_vm1, %v41_v12  ;;  %v44_v18 = vld [vmem:[%s5124_s0 + $0x70] sm:$0xff]  ;;  %2756 = vmatprep.subr.mxu0 %v3346_v17  ;;  %v3368_v21 = vld [vmem:[%s5124_s0 + $0x168] sm:$0xff]  ;;  %v3378_v23 = vld [vmem:[%s5124_s0 + $0x1e0] sm:$0xff]  ;;  %v3609_v2 = vshrl.u32 %v97_v1, 7  ;;  %s2506_s19 = sshll.u32 %s3226_s18, 4  ;;  %vm2498_vm6 = vcmask 123968   ;;  %s2507_s19 = int_to_ptr.vmem [resolvable:$true] %s2506_s19 }
  0x19   :  { %2811 = vmatprep.mubr.msk.f32.mxu0 %vm101_vm1, %v42_v13  ;;  %v3355_v19 = vld [vmem:[%s5124_s0 + $0x170] sm:$0xff]  ;;  %v46_v24 = vld [vmem:[%s5124_s0 + $0x80] sm:$0xff]  ;;  %v3393_v26 = vld [vmem:[%s5124_s0 + $0x1d8] sm:$0xff]  ;;  %s3200_s20 = scalar_lea.vmem %s2507_s19, 32  ;;  %p3205_p1 = scmp.lt.s32.totalorder %s2507_s19, %s2507_s19 }
  0x1a   :  { %2757 = vmatpush3.msra.mxu0 %v3355_v19  ;;  %v3387_v25 = vld [vmem:[%s5124_s0 + $0x160] sm:$0xff]  ;;  %v3400_v27 = vld [vmem:[%s5124_s0 + $0x158] sm:$0xff]  ;;  %v47_v28 = vld [vmem:[%s5124_s0 + $0x88] sm:$0xff]  ;;  %5189 = vst [vmem:[#allocation5_spill] sm:$0xff] %v3609_v2  ;;  %v5133_v3 = vsub.s32 0, %v3609_v2  ;;  %p3201_p0 = scmp.ne.s32.totalorder %s2507_s19, %s3200_s20  ;;  %p3206_p2 = scmp.lt.s32.totalorder %s3200_s20, %s3200_s20 }
  0x1b   :  { %2758 = vmatprep.subr.mxu0 %v3361_v20  ;;  %v3410_v29 = vld [vmem:[%s5124_s0 + $0x1d0] sm:$0xff]  ;;  %v3425_v32 = vld [vmem:[%s5124_s0 + $0x1c8] sm:$0xff]  ;;  %v49_v34 = vld [vmem:[%s5124_s0 + $0x98] sm:$0xff] }
  0x1c   :  { %2812 = vmatmul.mubr.msk.f32.gmra.mxu0 %vm101_vm1, %v43_v16  ;;  %v48_v30 = vld [vmem:[%s5124_s0 + $0x90] sm:$0xff]  ;;  %v3432_v33 = vld [vmem:[%s5124_s0 + $0x148] sm:$0xff]  ;;  %v3442_v35 = vld [vmem:[%s5124_s0 + $0x1c0] sm:$0xff]  ;;  %p3207_p3 = por %p3206_p2, %p3205_p1 }
  0x1d   :  { %2814 = vmatprep.mubr.msk.f32.mxu0 %vm101_vm1, %v44_v18  ;;  %2759 = vmatpush3.msra.mxu0 %v3368_v21  ;;  %v3419_v31 = vld [vmem:[%s5124_s0 + $0x150] sm:$0xff]  ;;  %v50_v36 = vld [vmem:[%s5124_s0 + $0xa0] sm:$0xff]  ;;  %v3457_v38 = vld [vmem:[%s5124_s0 + $0x1b8] sm:$0xff] }
  0x1e   :  { %2760 = vmatprep.subr.mxu0 %v3378_v23  ;;  %v3451_v37 = vld [vmem:[%s5124_s0 + $0x140] sm:$0xff]  ;;  %v69_v39 = vld [vmem:[%s5124_s0 + $0x138] sm:$0xff]  ;;  %v51_v40 = vld [vmem:[%s5124_s0 + $0xa8] sm:$0xff]  ;;  %p3208_p4 = pnand %p3207_p3, %p3201_p0 }
  0x1f   :  { %2761 = vmatpush3.msra.mxu0 %v3387_v25  ;;  %v3472_v41 = vld [vmem:[%s5124_s0 + $0x1b0] sm:$0xff]  ;;  %v3484_v44 = vld [vmem:[%s5124_s0 + $0x1a8] sm:$0xff]  ;;  %v53_v46 = vld [vmem:[%s5124_s0 + $0xb8] sm:$0xff] }
  0x20   :  { %2815 = vmatmul.mubr.msk.f32.gmra.mxu0 %vm101_vm1, %v45_v22  ;;  %2762 = vmatprep.subr.mxu0 %v3393_v26  ;;  %v52_v42 = vld [vmem:[%s5124_s0 + $0xb0] sm:$0xff]  ;;  %v67_v45 = vld [vmem:[%s5124_s0 + $0x128] sm:$0xff]  ;;  %v82_v47 = vld [vmem:[%s5124_s0 + $0x1a0] sm:$0xff] }
  0x21   :  { %2817 = vmatprep.mubr.msk.f32.mxu0 %vm101_vm1, %v46_v24  ;;  %2763 = vmatpush3.msra.mxu0 %v3400_v27  ;;  %v68_v43 = vld [vmem:[%s5124_s0 + $0x130] sm:$0xff]  ;;  %v54_v48 = vld [vmem:[%s5124_s0 + $0xc0] sm:$0xff]  ;;  %v81_v50 = vld [vmem:[%s5124_s0 + $0x198] sm:$0xff] }
  0x22   :  { %2764 = vmatprep.subr.mxu0 %v3410_v29  ;;  %v66_v49 = vld [vmem:[%s5124_s0 + $0x120] sm:$0xff]  ;;  %v65_v51 = vld [vmem:[%s5124_s0 + $0x118] sm:$0xff]  ;;  %v55_v52 = vld [vmem:[%s5124_s0 + $0xc8] sm:$0xff] }
  0x23   :  { %2765 = vmatpush3.msra.mxu0 %v3419_v31  ;;  %v80_v53 = vld [vmem:[%s5124_s0 + $0x190] sm:$0xff]  ;;  %v79_v56 = vld [vmem:[%s5124_s0 + $0x188] sm:$0xff]  ;;  %v57_v58 = vld [vmem:[%s5124_s0 + $0xd8] sm:$0xff] }
  0x24   :  { %2818 = vmatmul.mubr.msk.f32.gmra.mxu0 %vm101_vm1, %v47_v28  ;;  %2766 = vmatprep.subr.mxu0 %v3425_v32  ;;  %v56_v54 = vld [vmem:[%s5124_s0 + $0xd0] sm:$0xff]  ;;  %v63_v57 = vld [vmem:[%s5124_s0 + $0x108] sm:$0xff]  ;;  %v78_v59 = vld [vmem:[%s5124_s0 + $0x180] sm:$0xff] }
  0x25   :  { %2820 = vmatprep.mubr.msk.f32.mxu0 %vm101_vm1, %v48_v30  ;;  %2767 = vmatpush3.msra.mxu0 %v3432_v33  ;;  %v64_v55 = vld [vmem:[%s5124_s0 + $0x110] sm:$0xff]  ;;  %v58_v60 = vld [vmem:[%s5124_s0 + $0xe0] sm:$0xff]  ;;  %v59_v62 = vld [vmem:[%s5124_s0 + $0xe8] sm:$0xff] }
  0x26   :  { %2768 = vmatprep.subr.mxu0 %v3442_v35  ;;  %v62_v61 = vld [vmem:[%s5124_s0 + $0x100] sm:$0xff]  ;;  %v60_v63 = vld [vmem:[%s5124_s0 + $0xf0] sm:$0xff]  ;;  %v61_v0 = vld [vmem:[%s5124_s0 + $0xf8] sm:$0xff] }
  0x27   :  { %2769 = vmatpush3.msra.mxu0 %v3451_v37  ;;  %v94_v4 = vld [vmem:[%s5130_s6] sm:$0x1f] }
  0x28   :  { %2821 = vmatmul.mubr.msk.f32.gmra.mxu0 %vm101_vm1, %v49_v34  ;;  %2770 = vmatprep.subr.mxu0 %v3457_v38  ;;  %v3617_v5 = vrot.slane %v94_v4, %v5133_v3 }
  0x29   :  { %2823 = vmatprep.mubr.msk.f32.mxu0 %vm101_vm1, %v50_v36  ;;  %2771 = vmatpush3.msra.mxu0 %v69_v39 }
  0x2a   :  { %2772 = vmatprep.subr.mxu0 %v3472_v41 }
  0x2b   :  { %2773 = vmatpush3.msra.mxu0 %v68_v43 }
  0x2c   :  { %2824 = vmatmul.mubr.msk.f32.gmra.mxu0 %vm101_vm1, %v51_v40  ;;  %2774 = vmatprep.subr.mxu0 %v3484_v44 }
  0x2d   :  { %2826 = vmatprep.mubr.msk.f32.mxu0 %vm101_vm1, %v52_v42  ;;  %2775 = vmatpush3.msra.mxu0 %v67_v45 }
  0x2e   :  { %2776 = vmatprep.subr.mxu0 %v82_v47 }
  0x2f   :  { %2777 = vmatpush3.msra.mxu0 %v66_v49 }
  0x30   :  { %2827 = vmatmul.mubr.msk.f32.gmra.mxu0 %vm101_vm1, %v53_v46  ;;  %2778 = vmatprep.subr.mxu0 %v81_v50 }
  0x31   :  { %2829 = vmatprep.mubr.msk.f32.mxu0 %vm101_vm1, %v54_v48  ;;  %2779 = vmatpush3.msra.mxu0 %v65_v51 }
  0x32   :  { %2780 = vmatprep.subr.mxu0 %v80_v53 }
  0x33   :  { %2781 = vmatpush3.msra.mxu0 %v64_v55 }
  0x34   :  { %2830 = vmatmul.mubr.msk.f32.gmra.mxu0 %vm101_vm1, %v55_v52  ;;  %2782 = vmatprep.subr.mxu0 %v79_v56 }
  0x35   :  { %2832 = vmatprep.mubr.msk.f32.mxu0 %vm101_vm1, %v56_v54  ;;  %2783 = vmatpush3.msra.mxu0 %v63_v57 }
  0x36   :  { %2784 = vmatprep.subr.mxu0 %v78_v59 }
  0x37   :  { %2785 = vmatpush3.msra.mxu0 %v62_v61 }
  0x38   :  { %2833 = vmatmul.mubr.msk.f32.gmra.mxu0 %vm101_vm1, %v57_v58 }
  0x39   :  { %2835 = vmatprep.mubr.msk.f32.mxu0 %vm101_vm1, %v58_v60 }
  0x3c   :  { %2836 = vmatmul.mubr.msk.f32.gmra.mxu0 %vm101_vm1, %v59_v62 }
  0x3d   :  { %2838 = vmatprep.mubr.msk.f32.mxu0 %vm101_vm1, %v60_v63 }
  0x40   :  { %2839 = vmatmul.mubr.msk.f32.gmra.mxu0 %vm101_vm1, %v61_v0 }
  0x41   :  { %2841 = vmatprep.mubr.msk.f32.mxu0 %vm101_vm1, %v62_v61 }
  0x44   :  { %2842 = vmatmul.mubr.msk.f32.gmra.mxu0 %vm101_vm1, %v63_v57 }
  0x45   :  { %2844 = vmatprep.mubr.msk.f32.mxu0 %vm101_vm1, %v64_v55 }
  0x48   :  { %2845 = vmatmul.mubr.msk.f32.gmra.mxu0 %vm101_vm1, %v65_v51 }
  0x49   :  { %2847 = vmatprep.mubr.msk.f32.mxu0 %vm101_vm1, %v66_v49 }
  0x4c   :  { %2848 = vmatmul.mubr.msk.f32.gmra.mxu0 %vm101_vm1, %v67_v45 }
  0x4d   :  { %2850 = vmatprep.mubr.msk.f32.mxu0 %vm101_vm1, %v68_v43 }
  0x50   :  { %2851 = vmatmul.mubr.msk.f32.gmra.mxu0 %vm101_vm1, %v69_v39 }
  0x51   :  { %2853 = vmatprep.mubr.msk.f32.mxu0 %vm101_vm1, %v3451_v37 }
  0x54   :  { %2854 = vmatmul.mubr.msk.f32.gmra.mxu0 %vm101_vm1, %v3432_v33 }
  0x55   :  { %2856 = vmatprep.mubr.msk.f32.mxu0 %vm101_vm1, %v3419_v31 }
  0x58   :  { %2857 = vmatmul.mubr.msk.f32.gmra.mxu0 %vm101_vm1, %v3400_v27 }
  0x59   :  { %2859 = vmatprep.mubr.msk.f32.mxu0 %vm101_vm1, %v3387_v25 }
  0x5c   :  { %2860 = vmatmul.mubr.msk.f32.gmra.mxu0 %vm101_vm1, %v3368_v21 }
  0x5d   :  { %2862 = vmatprep.mubr.msk.f32.mxu0 %vm101_vm1, %v3355_v19 }
  0x60   :  { %2863 = vmatmul.mubr.msk.f32.gmra.mxu0 %vm101_vm1, %v3337_v15 }
  0x61   :  { %2865 = vmatprep.mubr.msk.f32.mxu0 %vm101_vm1, %v78_v59 }
  0x64   :  { %2866 = vmatmul.mubr.msk.f32.gmra.mxu0 %vm101_vm1, %v79_v56 }
  0x65   :  { %2868 = vmatprep.mubr.msk.f32.mxu0 %vm101_vm1, %v80_v53 }
  0x68   :  { %2869 = vmatmul.mubr.msk.f32.gmra.mxu0 %vm101_vm1, %v81_v50 }
  0x69   :  { %2871 = vmatprep.mubr.msk.f32.mxu0 %vm101_vm1, %v82_v47 }
  0x6c   :  { %2872 = vmatmul.mubr.msk.f32.gmra.mxu0 %vm101_vm1, %v3484_v44 }
  0x6d   :  { %2874 = vmatprep.mubr.msk.f32.mxu0 %vm101_vm1, %v3472_v41 }
  0x70   :  { %2875 = vmatmul.mubr.msk.f32.gmra.mxu0 %vm101_vm1, %v3457_v38 }
  0x71   :  { %2877 = vmatprep.mubr.msk.f32.mxu0 %vm101_vm1, %v3442_v35 }
  0x74   :  { %2878 = vmatmul.mubr.msk.f32.gmra.mxu0 %vm101_vm1, %v3425_v32 }
  0x75   :  { %2880 = vmatprep.mubr.msk.f32.mxu0 %vm101_vm1, %v3410_v29 }
  0x78   :  { %2881 = vmatmul.mubr.msk.f32.gmra.mxu0 %vm101_vm1, %v3393_v26 }
  0x79   :  { %2883 = vmatprep.mubr.msk.f32.mxu0 %vm101_vm1, %v3378_v23 }
  0x7c   :  { %2884 = vmatmul.mubr.msk.f32.gmra.mxu0 %vm101_vm1, %v3361_v20 }
  0x7d   :  { %2886 = vmatprep.mubr.msk.f32.mxu0 %vm101_vm1, %v3346_v17 }
  0x80   :  { %2887 = vmatmul.mubr.msk.f32.gmra.mxu0 %vm101_vm1, %v3330_v14 }
  0xc4   :  { %v2795_v6 = vpop.f32.mrf.mxu0 }
  0xc5   :  { %v3620_v7 = vadd.f32 %v2795_v6, %v3617_v5 }
  0xc6   :  { %v364_v8 = vpop.f32.mrf.mxu0 }
  0xc7   :  { %v3623_v9 = vadd.f32 %v364_v8, %v3617_v5  ;;  %v687_v10 = vsel %vm683_vm2, %v3620_v7, 0.0 }
  0xc8   :  { %688 = vadd.xlane.f32.xlu1 %v687_v10  ;;  %v2798_v11 = vpop.f32.mrf.mxu0 }
  0xc9   :  { %v3628_v13 = vadd.f32 %v2798_v11, %v3617_v5  ;;  %v684_v14 = vsel %vm683_vm2, %v3623_v9, 0.0 }
  0xca   :  { %v374_v12 = vpop.f32.mrf.mxu0 }
  0xcb   :  { %v3633_v17 = vadd.f32 %v374_v12, %v3617_v5  ;;  %v693_v18 = vsel %vm683_vm2, %v3628_v13, 0.0 }
  0xcc   :  { %v2801_v15 = vpop.f32.mrf.mxu0  ;;  %685 = vadd.xlane.f32.xlu1 %v684_v14 }
  0xcd   :  { %v3638_v21 = vadd.f32 %v2801_v15, %v3617_v5  ;;  %v690_v22 = vsel %vm683_vm2, %v3633_v17, 0.0 }
  0xce   :  { %v384_v16 = vpop.f32.mrf.mxu0 }
  0xcf   :  { %v3643_v25 = vadd.f32 %v384_v16, %v3617_v5  ;;  %v699_v26 = vsel %vm683_vm2, %v3638_v21, 0.0 }
  0xd0   :  { %v2804_v19 = vpop.f32.mrf.mxu0  ;;  %694 = vadd.xlane.f32.xlu1 %v693_v18 }
  0xd1   :  { %v3648_v29 = vadd.f32 %v2804_v19, %v3617_v5  ;;  %v696_v30 = vsel %vm683_vm2, %v3643_v25, 0.0 }
  0xd2   :  { %v394_v20 = vpop.f32.mrf.mxu0 }
  0xd3   :  { %v3653_v33 = vadd.f32 %v394_v20, %v3617_v5  ;;  %v705_v34 = vsel %vm683_vm2, %v3648_v29, 0.0 }
  0xd4   :  { %v2807_v23 = vpop.f32.mrf.mxu0  ;;  %691 = vadd.xlane.f32.xlu1 %v690_v22 }
  0xd5   :  { %v3661_v38 = vadd.f32 %v2807_v23, %v3617_v5  ;;  %v702_v40 = vsel %vm683_vm2, %v3653_v33, 0.0 }
  0xd6   :  { %v404_v24 = vpop.f32.mrf.mxu0 }
  0xd7   :  { %v3671_v44 = vadd.f32 %v404_v24, %v3617_v5  ;;  %v711_v47 = vsel %vm683_vm2, %v3661_v38, 0.0 }
  0xd8   :  { %v2810_v27 = vpop.f32.mrf.mxu0  ;;  %700 = vadd.xlane.f32.xlu1 %v699_v26 }
  0xd9   :  { %v3681_v50 = vadd.f32 %v2810_v27, %v3617_v5  ;;  %v708_v53 = vsel %vm683_vm2, %v3671_v44, 0.0 }
  0xda   :  { %v414_v28 = vpop.f32.mrf.mxu0 }
  0xdb   :  { %v3691_v56 = vadd.f32 %v414_v28, %v3617_v5  ;;  %v717_v59 = vsel %vm683_vm2, %v3681_v50, 0.0 }
  0xdc   :  { %v2813_v31 = vpop.f32.mrf.mxu0  ;;  %697 = vadd.xlane.f32.xlu1 %v696_v30 }
  0xdd   :  { %v3701_v62 = vadd.f32 %v2813_v31, %v3617_v5  ;;  %v714_v1 = vsel %vm683_vm2, %v3691_v56, 0.0 }
  0xde   :  { %v424_v32 = vpop.f32.mrf.mxu0 }
  0xdf   :  { %v3711_v8 = vadd.f32 %v424_v32, %v3617_v5  ;;  %v723_v12 = vsel %vm683_vm2, %v3701_v62, 0.0 }
  0xe0   :  { %v2816_v35 = vpop.f32.mrf.mxu0  ;;  %706 = vadd.xlane.f32.xlu1 %v705_v34 }
  0xe1   :  { %v3658_v36 = vadd.f32 %v2816_v35, %v3617_v5  ;;  %v720_v20 = vsel %vm683_vm2, %v3711_v8, 0.0 }
  0xe2   :  { %v434_v37 = vpop.f32.mrf.mxu0 }
  0xe3   :  { %v729_v39 = vsel %vm683_vm2, %v3658_v36, 0.0  ;;  %v3721_v16 = vadd.f32 %v434_v37, %v3617_v5 }
  0xe4   :  { %730 = vadd.xlane.f32.xlu0 %v729_v39  ;;  %v2819_v41 = vpop.f32.mrf.mxu0  ;;  %703 = vadd.xlane.f32.xlu1 %v702_v40 }
  0xe5   :  { %v3668_v42 = vadd.f32 %v2819_v41, %v3617_v5  ;;  %v726_v27 = vsel %vm683_vm2, %v3721_v16, 0.0 }
  0xe6   :  { %v444_v43 = vpop.f32.mrf.mxu0 }
  0xe7   :  { %v3674_v45 = vadd.f32 %v444_v43, %v3617_v5  ;;  %v735_v46 = vsel %vm683_vm2, %v3668_v42, 0.0 }
  0xe8   :  { %736 = vadd.xlane.f32.xlu0 %v735_v46  ;;  %v2822_v48 = vpop.f32.mrf.mxu0  ;;  %712 = vadd.xlane.f32.xlu1 %v711_v47 }
  0xe9   :  { %v3684_v51 = vadd.f32 %v2822_v48, %v3617_v5  ;;  %v732_v52 = vsel %vm683_vm2, %v3674_v45, 0.0 }
  0xea   :  { %v454_v49 = vpop.f32.mrf.mxu0 }
  0xeb   :  { %v3694_v57 = vadd.f32 %v454_v49, %v3617_v5  ;;  %v741_v58 = vsel %vm683_vm2, %v3684_v51, 0.0 }
  0xec   :  { %v2825_v54 = vpop.f32.mrf.mxu0  ;;  %733 = vadd.xlane.f32.xlu0 %v732_v52  ;;  %709 = vadd.xlane.f32.xlu1 %v708_v53 }
  0xed   :  { %v3704_v63 = vadd.f32 %v2825_v54, %v3617_v5  ;;  %v738_v0 = vsel %vm683_vm2, %v3694_v57, 0.0 }
  0xee   :  { %v464_v55 = vpop.f32.mrf.mxu0 }
  0xef   :  { %v3714_v10 = vadd.f32 %v464_v55, %v3617_v5  ;;  %v747_v11 = vsel %vm683_vm2, %v3704_v63, 0.0 }
  0xf0   :  { %v2828_v60 = vpop.f32.mrf.mxu0  ;;  %742 = vadd.xlane.f32.xlu0 %v741_v58  ;;  %718 = vadd.xlane.f32.xlu1 %v717_v59 }
  0xf1   :  { %v3724_v18 = vadd.f32 %v2828_v60, %v3617_v5  ;;  %v744_v19 = vsel %vm683_vm2, %v3714_v10, 0.0 }
  0xf2   :  { %v474_v61 = vpop.f32.mrf.mxu0 }
  0xf3   :  { %v3731_v24 = vadd.f32 %v474_v61, %v3617_v5  ;;  %v753_v26 = vsel %vm683_vm2, %v3724_v18, 0.0 }
  0xf4   :  { %v2831_v4 = vpop.f32.mrf.mxu0  ;;  %739 = vadd.xlane.f32.xlu0 %v738_v0  ;;  %715 = vadd.xlane.f32.xlu1 %v714_v1 }
  0xf5   :  { %v3738_v31 = vadd.f32 %v2831_v4, %v3617_v5  ;;  %v750_v34 = vsel %vm683_vm2, %v3731_v24, 0.0 }
  0xf6   :  { %v484_v6 = vpop.f32.mrf.mxu0 }
  0xf7   :  { %v3751_v41 = vadd.f32 %v484_v6, %v3617_v5  ;;  %v759_v43 = vsel %vm683_vm2, %v3738_v31, 0.0 }
  0xf8   :  { %v2834_v14 = vpop.f32.mrf.mxu0  ;;  %748 = vadd.xlane.f32.xlu0 %v747_v11  ;;  %724 = vadd.xlane.f32.xlu1 %v723_v12 }
  0xf9   :  { %v3761_v52 = vadd.f32 %v2834_v14, %v3617_v5  ;;  %v756_v53 = vsel %vm683_vm2, %v3751_v41, 0.0 }
  0xfa   :  { %v494_v15 = vpop.f32.mrf.mxu0 }
  0xfb   :  { %v3771_v60 = vadd.f32 %v494_v15, %v3617_v5  ;;  %v765_v61 = vsel %vm683_vm2, %v3761_v52, 0.0 }
  0xfc   :  { %v2837_v22 = vpop.f32.mrf.mxu0  ;;  %745 = vadd.xlane.f32.xlu0 %v744_v19  ;;  %721 = vadd.xlane.f32.xlu1 %v720_v20 }
  0xfd   :  { %v3781_v11 = vadd.f32 %v2837_v22, %v3617_v5  ;;  %v762_v12 = vsel %vm683_vm2, %v3771_v60, 0.0 }
  0xfe   :  { %v504_v23 = vpop.f32.mrf.mxu0 }
  0xff   :  { %v771_v22 = vsel %vm683_vm2, %v3781_v11, 0.0 }
 0x100   :  { %v2840_v28 = vpop.f32.mrf.mxu0  ;;  %754 = vadd.xlane.f32.xlu0 %v753_v26  ;;  %727 = vadd.xlane.f32.xlu1 %v726_v27  ;;  %v3791_v26 = vadd.f32 %v504_v23, %v3617_v5 }
 0x102   :  { %v514_v30 = vpop.f32.mrf.mxu0  ;;  %v768_v23 = vsel %vm683_vm2, %v3791_v26, 0.0 }
 0x103   :  { %v3741_v32 = vadd.f32 %v514_v30, %v3617_v5 }
 0x104   :  { %v2843_v35 = vpop.f32.mrf.mxu0  ;;  %751 = vadd.xlane.f32.xlu0 %v750_v34 }
 0x105   :  { %v3746_v37 = vadd.f32 %v2843_v35, %v3617_v5  ;;  %v774_v39 = vsel %vm683_vm2, %v3741_v32, 0.0 }
 0x106   :  { %v524_v40 = vpop.f32.mrf.mxu0  ;;  %775 = vadd.xlane.f32.xlu1 %v774_v39  ;;  %v3801_v39 = vadd.f32 %v2840_v28, %v3617_v5 }
 0x107   :  { %5190 = vst [vmem:[#allocation6_spill] sm:$0xff] %v3746_v37  ;;  %v3756_v47 = vadd.f32 %v524_v40, %v3617_v5  ;;  %v783_v48 = vsel %vm683_vm2, %v3746_v37, 0.0 }
 0x108   :  { %v2846_v46 = vpop.f32.mrf.mxu0  ;;  %760 = vadd.xlane.f32.xlu0 %v759_v43 }
 0x109   :  { %5191 = vst [vmem:[#allocation7_spill] sm:$0xff] %v3756_v47  ;;  %v3766_v55 = vadd.f32 %v2846_v46, %v3617_v5  ;;  %v780_v58 = vsel %vm683_vm2, %v3756_v47, 0.0 }
 0x10a   :  { %v534_v49 = vpop.f32.mrf.mxu0  ;;  %784 = vadd.xlane.f32.xlu1 %v783_v48 }
 0x10b   :  { %v3776_v1 = vadd.f32 %v534_v49, %v3617_v5  ;;  %v789_v4 = vsel %vm683_vm2, %v3766_v55, 0.0  ;;  %v777_v49 = vsel %vm683_vm2, %v3801_v39, 0.0 }
 0x10c   :  { %v2849_v54 = vpop.f32.mrf.mxu0  ;;  %757 = vadd.xlane.f32.xlu0 %v756_v53 }
 0x10d   :  { %v3786_v15 = vadd.f32 %v2849_v54, %v3617_v5  ;;  %v786_v19 = vsel %vm683_vm2, %v3776_v1, 0.0 }
 0x10e   :  { %v544_v59 = vpop.f32.mrf.mxu0  ;;  %781 = vadd.xlane.f32.xlu1 %v780_v58 }
 0x10f   :  { %v3796_v30 = vadd.f32 %v544_v59, %v3617_v5  ;;  %v795_v34 = vsel %vm683_vm2, %v3786_v15, 0.0 }
 0x110   :  { %v2852_v0 = vpop.f32.mrf.mxu0  ;;  %766 = vadd.xlane.f32.xlu0 %v765_v61 }
 0x111   :  { %v3806_v43 = vadd.f32 %v2852_v0, %v3617_v5  ;;  %v792_v46 = vsel %vm683_vm2, %v3796_v30, 0.0 }
 0x112   :  { %v554_v6 = vpop.f32.mrf.mxu0  ;;  %790 = vadd.xlane.f32.xlu1 %v789_v4 }
 0x113   :  { %v3813_v28 = vadd.f32 %v554_v6, %v3617_v5  ;;  %v801_v54 = vsel %vm683_vm2, %v3806_v43, 0.0 }
 0x114   :  { %v2855_v14 = vpop.f32.mrf.mxu0  ;;  %763 = vadd.xlane.f32.xlu0 %v762_v12 }
 0x115   :  { %v3818_v61 = vadd.f32 %v2855_v14, %v3617_v5  ;;  %v798_v4 = vsel %vm683_vm2, %v3813_v28, 0.0 }
 0x116   :  { %v564_v20 = vpop.f32.mrf.mxu0  ;;  %787 = vadd.xlane.f32.xlu1 %v786_v19 }
 0x118   :  { %v2858_v27 = vpop.f32.mrf.mxu0  ;;  %772 = vadd.xlane.f32.xlu0 %v771_v22 }
 0x11a   :  { %v574_v35 = vpop.f32.mrf.mxu0  ;;  %796 = vadd.xlane.f32.xlu1 %v795_v34  ;;  %v3831_v34 = vadd.f32 %v564_v20, %v3617_v5 }
 0x11c   :  { %v2861_v40 = vpop.f32.mrf.mxu0  ;;  %769 = vadd.xlane.f32.xlu0 %v768_v23  ;;  %v807_v23 = vsel %vm683_vm2, %v3818_v61, 0.0 }
 0x11e   :  { %v584_v48 = vpop.f32.mrf.mxu0  ;;  %793 = vadd.xlane.f32.xlu1 %v792_v46 }
 0x120   :  { %v2864_v53 = vpop.f32.mrf.mxu0  ;;  %778 = vadd.xlane.f32.xlu0 %v777_v49 }
 0x122   :  { %v594_v58 = vpop.f32.mrf.mxu0  ;;  %802 = vadd.xlane.f32.xlu1 %v801_v54  ;;  %v3841_v54 = vadd.f32 %v2858_v27, %v3617_v5 }
 0x124   :  { %v2867_v59 = vpop.f32.mrf.mxu0  ;;  %v813_v27 = vsel %vm683_vm2, %v3841_v54, 0.0 }
 0x125   :  { %v3821_v0 = vadd.f32 %v2867_v59, %v3617_v5  ;;  %v804_v59 = vsel %vm683_vm2, %v3831_v34, 0.0 }
 0x126   :  { %v604_v12 = vpop.f32.mrf.mxu0  ;;  %799 = vadd.xlane.f32.xlu1 %v798_v4 }
 0x127   :  { %5192 = vst [vmem:[#allocation8_spill] sm:$0xff] %v3821_v0  ;;  %v3826_v6 = vadd.f32 %v604_v12, %v3617_v5  ;;  %v831_v19 = vsel %vm683_vm2, %v3821_v0, 0.0 }
 0x128   :  { %832 = vadd.xlane.f32.xlu0 %v831_v19  ;;  %v2870_v22 = vpop.f32.mrf.mxu0  ;;  %v3851_v19 = vadd.f32 %v574_v35, %v3617_v5 }
 0x129   :  { %5193 = vst [vmem:[#allocation9_spill] sm:$0xff] %v3826_v6  ;;  %v3834_v14 = vadd.f32 %v2870_v22, %v3617_v5  ;;  %v828_v46 = vsel %vm683_vm2, %v3826_v6, 0.0 }
 0x12a   :  { %808 = vadd.xlane.f32.xlu1 %v807_v23  ;;  %v614_v49 = vpop.f32.mrf.mxu0 }
 0x12b   :  { %5194 = vst [vmem:[#allocation10_spill] sm:$0xff] %v3834_v14  ;;  %v837_v20 = vsel %vm683_vm2, %v3834_v14, 0.0  ;;  %v3848_v4 = vadd.f32 %v614_v49, %v3617_v5  ;;  %v3861_v49 = vadd.f32 %v2861_v40, %v3617_v5 }
 0x12c   :  { %829 = vadd.xlane.f32.xlu0 %v828_v46  ;;  %v2873_v12 = vpop.f32.mrf.mxu0 }
 0x12d   :  { %5195 = vst [vmem:[#allocation11_spill] sm:$0xff] %v3848_v4  ;;  %v3854_v22 = vadd.f32 %v2873_v12, %v3617_v5  ;;  %v834_v23 = vsel %vm683_vm2, %v3848_v4, 0.0  ;;  %v819_v40 = vsel %vm683_vm2, %v3861_v49, 0.0 }
 0x12e   :  { %805 = vadd.xlane.f32.xlu1 %v804_v59  ;;  %v624_v46 = vpop.f32.mrf.mxu0  ;;  %v810_v59 = vsel %vm683_vm2, %v3851_v19, 0.0 }
 0x12f   :  { %5196 = vst [vmem:[#allocation12_spill] sm:$0xff] %v3854_v22  ;;  %v843_v35 = vsel %vm683_vm2, %v3854_v22, 0.0 }
 0x130   :  { %838 = vadd.xlane.f32.xlu0 %v837_v20  ;;  %v3868_v20 = vadd.f32 %v624_v46, %v3617_v5  ;;  %v2876_v12 = vpop.f32.mrf.mxu0  ;;  %v3881_v46 = vadd.f32 %v2864_v53, %v3617_v5 }
 0x132   :  { %814 = vadd.xlane.f32.xlu1 %v813_v27  ;;  %5197 = vst [vmem:[#allocation13_spill] sm:$0xff] %v3868_v20  ;;  %v3871_v27 = vadd.f32 %v584_v48, %v3617_v5  ;;  %v840_v3 = vsel %vm683_vm2, %v3868_v20, 0.0  ;;  %v634_v6 = vpop.f32.mrf.mxu0  ;;  %v825_v53 = vsel %vm683_vm2, %v3881_v46, 0.0 }
 0x134   :  { %835 = vadd.xlane.f32.xlu0 %v834_v23  ;;  %v3874_v23 = vadd.f32 %v2876_v12, %v3617_v5  ;;  %v2879_v12 = vpop.f32.mrf.mxu0 }
 0x136   :  { %811 = vadd.xlane.f32.xlu1 %v810_v59  ;;  %v816_v59 = vsel %vm683_vm2, %v3871_v27, 0.0  ;;  %v849_v48 = vsel %vm683_vm2, %v3874_v23, 0.0  ;;  %v644_v2 = vpop.f32.mrf.mxu0 }
 0x138   :  { %844 = vadd.xlane.f32.xlu0 %v843_v35  ;;  %v3888_v35 = vadd.f32 %v634_v6, %v3617_v5 }
 0x13a   :  { %820 = vadd.xlane.f32.xlu1 %v819_v40  ;;  %5198 = vst [vmem:[#allocation14_spill] sm:$0xff] %v3888_v35  ;;  %v3891_v40 = vadd.f32 %v594_v58, %v3617_v5  ;;  %v846_v0 = vsel %vm683_vm2, %v3888_v35, 0.0  ;;  %v3905_v58 = vadd.f32 %v644_v2, %v3617_v5 }
 0x13c   :  { %841 = vadd.xlane.f32.xlu0 %v840_v3  ;;  %v3894_v3 = vadd.f32 %v2879_v12, %v3617_v5  ;;  %v822_v6 = vsel %vm683_vm2, %v3891_v40, 0.0 }
 0x13e   :  { %817 = vadd.xlane.f32.xlu1 %v816_v59  ;;  %v855_v59 = vsel %vm683_vm2, %v3894_v3, 0.0 }
 0x140   :  { %850 = vadd.xlane.f32.xlu0 %v849_v48  ;;  %v2882_v48 = vpop.f32.mrf.mxu0 }
 0x141   :  { %v3908_v12 = vadd.f32 %v2882_v48, %v3617_v5 }
 0x142   :  { %826 = vadd.xlane.f32.xlu1 %v825_v53  ;;  %v852_v53 = vsel %vm683_vm2, %v3905_v58, 0.0  ;;  %v654_v4 = vpop.f32.mrf.mxu0 }
 0x143   :  { %v3915_v14 = vadd.f32 %v654_v4, %v3617_v5 }
 0x144   :  { %847 = vadd.xlane.f32.xlu0 %v846_v0  ;;  %v861_v0 = vsel %vm683_vm2, %v3908_v12, 0.0 }
 0x145   :  { %v858_v48 = vsel %vm683_vm2, %v3915_v14, 0.0 }
 0x146   :  { %823 = vadd.xlane.f32.xlu1 %v822_v6  ;;  %v2885_v6 = vpop.f32.mrf.mxu0 }
 0x148   :  { %856 = vadd.xlane.f32.xlu0 %v855_v59  ;;  %v3918_v59 = vadd.f32 %v2885_v6, %v3617_v5 }
 0x14a   :  { %5199 = vst [vmem:[#allocation15_spill] sm:$0xff] %v3918_v59  ;;  %v867_v4 = vsel %vm683_vm2, %v3918_v59, 0.0 }
 0x14c   :  { %853 = vadd.xlane.f32.xlu0 %v852_v53  ;;  %v664_v53 = vpop.f32.mrf.mxu0 }
 0x14d   :  { %v3930_v6 = vadd.f32 %v664_v53, %v3617_v5 }
 0x14f   :  { %v864_v53 = vsel %vm683_vm2, %v3930_v6, 0.0 }
 0x150   :  { %862 = vadd.xlane.f32.xlu0 %v861_v0 }
 0x151   :  { %v689_v2 = vpop.xlane.xlu1 %688 }
 0x152   :  { %v878_v20 = vmul.f32 0.125, %v689_v2 }
 0x154   :  { %v3923_v22 = vsub.f32 %v3620_v7, %v878_v20  ;;  %859 = vadd.xlane.f32.xlu0 %v858_v48  ;;  %v2888_v20 = vpop.f32.mrf.mxu0 }
 0x155   :  { %v686_v35 = vpop.xlane.xlu1 %685  ;;  %v3937_v37 = vadd.f32 %v2888_v20, %v3617_v5 }
 0x156   :  { %5200 = vst [vmem:[#allocation16_spill] sm:$0xff] %v3923_v22  ;;  %v877_v47 = vmul.f32 0.125, %v686_v35  ;;  %v1006_v0 = vmul.f32 %v3923_v22, %v3923_v22 }
 0x158   :  { %v3933_v2 = vsub.f32 %v3623_v9, %v877_v47  ;;  %868 = vadd.xlane.f32.xlu0 %v867_v4  ;;  %v1072_v7 = vsel %vm683_vm2, %v1006_v0, 0.0  ;;  %v674_v9 = vpop.f32.mrf.mxu0  ;;  %v873_v0 = vsel %vm683_vm2, %v3937_v37, 0.0 }
 0x159   :  { %1073 = vadd.xlane.f32.xlu1 %v1072_v7  ;;  %v695_v48 = vpop.xlane.xlu1 %694 }
 0x15a   :  { %5201 = vst [vmem:[#allocation17_spill] sm:$0xff] %v3933_v2  ;;  %v880_v59 = vmul.f32 0.125, %v695_v48  ;;  %v1005_v35 = vmul.f32 %v3933_v2, %v3933_v2  ;;  %v3952_v48 = vadd.f32 %v674_v9, %v3617_v5 }
 0x15c   :  { %v3944_v22 = vsub.f32 %v3628_v13, %v880_v59  ;;  %865 = vadd.xlane.f32.xlu0 %v864_v53  ;;  %v1069_v47 = vsel %vm683_vm2, %v1005_v35, 0.0 }
 0x15d   :  { %1070 = vadd.xlane.f32.xlu1 %v1069_v47  ;;  %v692_v4 = vpop.xlane.xlu1 %691  ;;  %v870_v47 = vsel %vm683_vm2, %v3952_v48, 0.0 }
 0x15e   :  { %v879_v7 = vmul.f32 0.125, %v692_v4  ;;  %v1008_v20 = vmul.f32 %v3944_v22, %v3944_v22 }
 0x160   :  { %v3955_v2 = vsub.f32 %v3633_v17, %v879_v7  ;;  %874 = vadd.xlane.f32.xlu0 %v873_v0  ;;  %v1078_v13 = vsel %vm683_vm2, %v1008_v20, 0.0 }
 0x161   :  { %1079 = vadd.xlane.f32.xlu1 %v1078_v13  ;;  %v701_v59 = vpop.xlane.xlu1 %700 }
 0x162   :  { %v882_v35 = vmul.f32 0.125, %v701_v59  ;;  %v1007_v53 = vmul.f32 %v3955_v2, %v3955_v2 }
 0x164   :  { %v3963_v4 = vsub.f32 %v3638_v21, %v882_v35  ;;  %871 = vadd.xlane.f32.xlu0 %v870_v47  ;;  %v1075_v5 = vsel %vm683_vm2, %v1007_v53, 0.0 }
 0x165   :  { %1076 = vadd.xlane.f32.xlu1 %v1075_v5  ;;  %v698_v17 = vpop.xlane.xlu1 %697 }
 0x166   :  { %v881_v9 = vmul.f32 0.125, %v698_v17  ;;  %v1010_v0 = vmul.f32 %v3963_v4, %v3963_v4 }
 0x168   :  { %v3969_v7 = vsub.f32 %v3643_v25, %v881_v9  ;;  %v1084_v20 = vsel %vm683_vm2, %v1010_v0, 0.0 }
 0x169   :  { %1085 = vadd.xlane.f32.xlu1 %v1084_v20  ;;  %v707_v13 = vpop.xlane.xlu1 %706 }
 0x16a   :  { %5202 = vst [vmem:[#allocation18_spill] sm:$0xff] %v3969_v7  ;;  %v884_v59 = vmul.f32 0.125, %v707_v13  ;;  %v1009_v21 = vmul.f32 %v3969_v7, %v3969_v7 }
 0x16c   :  { %v3975_v35 = vsub.f32 %v3648_v29, %v884_v59  ;;  %v1081_v53 = vsel %vm683_vm2, %v1009_v21, 0.0 }
 0x16d   :  { %v731_v47 = vpop.xlane.xlu0 %730  ;;  %1082 = vadd.xlane.f32.xlu1 %v1081_v53  ;;  %v704_v5 = vpop.xlane.xlu1 %703 }
 0x16e   :  { %5203 = vst [vmem:[#allocation19_spill] sm:$0xff] %v3975_v35  ;;  %v883_v17 = vmul.f32 0.125, %v704_v5  ;;  %v1012_v25 = vmul.f32 %v3975_v35, %v3975_v35 }
 0x170   :  { %v3981_v9 = vsub.f32 %v3653_v33, %v883_v17  ;;  %v1090_v0 = vsel %vm683_vm2, %v1012_v25, 0.0 }
 0x171   :  { %v737_v20 = vpop.xlane.xlu0 %736  ;;  %1091 = vadd.xlane.f32.xlu1 %v1090_v0  ;;  %v713_v13 = vpop.xlane.xlu1 %712 }
 0x172   :  { %v894_v7 = vmul.f32 0.125, %v737_v20  ;;  %v886_v29 = vmul.f32 0.125, %v713_v13  ;;  %v1011_v59 = vmul.f32 %v3981_v9, %v3981_v9 }
 0x174   :  { %v3987_v21 = vsub.f32 %v3668_v42, %v894_v7  ;;  %v3990_v53 = vsub.f32 %v3661_v38, %v886_v29  ;;  %v1087_v5 = vsel %vm683_vm2, %v1011_v59, 0.0 }
 0x175   :  { %v734_v33 = vpop.xlane.xlu0 %733  ;;  %1088 = vadd.xlane.f32.xlu1 %v1087_v5  ;;  %v710_v17 = vpop.xlane.xlu1 %709 }
 0x176   :  { %v893_v25 = vmul.f32 0.125, %v734_v33  ;;  %v885_v35 = vmul.f32 0.125, %v710_v17  ;;  %v1022_v0 = vmul.f32 %v3987_v21, %v3987_v21  ;;  %v1014_v20 = vmul.f32 %v3990_v53, %v3990_v53 }
 0x178   :  { %v3998_v13 = vsub.f32 %v3674_v45, %v893_v25  ;;  %v4001_v42 = vsub.f32 %v3671_v44, %v885_v35  ;;  %v1120_v38 = vsel %vm683_vm2, %v1022_v0, 0.0  ;;  %v1096_v7 = vsel %vm683_vm2, %v1014_v20, 0.0 }
 0x179   :  { %1121 = vadd.xlane.f32.xlu0 %v1120_v38  ;;  %v743_v29 = vpop.xlane.xlu0 %742  ;;  %1097 = vadd.xlane.f32.xlu1 %v1096_v7  ;;  %v719_v59 = vpop.xlane.xlu1 %718 }
 0x17a   :  { %v896_v5 = vmul.f32 0.125, %v743_v29  ;;  %v888_v33 = vmul.f32 0.125, %v719_v59  ;;  %v1021_v17 = vmul.f32 %v3998_v13, %v3998_v13  ;;  %v1013_v45 = vmul.f32 %v4001_v42, %v4001_v42 }
 0x17c   :  { %v4010_v25 = vsub.f32 %v3684_v51, %v896_v5  ;;  %v4013_v44 = vsub.f32 %v3681_v50, %v888_v33  ;;  %v1117_v35 = vsel %vm683_vm2, %v1021_v17, 0.0  ;;  %v1093_v0 = vsel %vm683_vm2, %v1013_v45, 0.0 }
 0x17d   :  { %1118 = vadd.xlane.f32.xlu0 %v1117_v35  ;;  %v740_v20 = vpop.xlane.xlu0 %739  ;;  %1094 = vadd.xlane.f32.xlu1 %v1093_v0  ;;  %v716_v38 = vpop.xlane.xlu1 %715 }
 0x17e   :  { %v895_v7 = vmul.f32 0.125, %v740_v20  ;;  %v887_v29 = vmul.f32 0.125, %v716_v38  ;;  %v1024_v59 = vmul.f32 %v4010_v25, %v4010_v25  ;;  %v1016_v51 = vmul.f32 %v4013_v44, %v4013_v44 }
 0x180   :  { %v4022_v5 = vsub.f32 %v3694_v57, %v895_v7  ;;  %v4025_v50 = vsub.f32 %v3691_v56, %v887_v29  ;;  %v1126_v33 = vsel %vm683_vm2, %v1024_v59, 0.0  ;;  %v1102_v17 = vsel %vm683_vm2, %v1016_v51, 0.0 }
 0x181   :  { %1127 = vadd.xlane.f32.xlu0 %v1126_v33  ;;  %v749_v45 = vpop.xlane.xlu0 %748  ;;  %1103 = vadd.xlane.f32.xlu1 %v1102_v17  ;;  %v725_v35 = vpop.xlane.xlu1 %724  ;;  %v892_v7 = vmul.f32 0.125, %v731_v47 }
 0x182   :  { %5204 = vst [vmem:[#allocation20_spill] sm:$0xff] %v4022_v5  ;;  %v898_v0 = vmul.f32 0.125, %v749_v45  ;;  %v890_v20 = vmul.f32 0.125, %v725_v35  ;;  %v1023_v38 = vmul.f32 %v4022_v5, %v4022_v5  ;;  %v1015_v57 = vmul.f32 %v4025_v50, %v4025_v50 }
 0x183   :  { %v4046_v47 = vsub.f32 %v3658_v36, %v892_v7 }
 0x184   :  { %v4034_v56 = vsub.f32 %v3704_v63, %v898_v0  ;;  %v4037_v29 = vsub.f32 %v3701_v62, %v890_v20  ;;  %v1123_v59 = vsel %vm683_vm2, %v1023_v38, 0.0  ;;  %v1099_v51 = vsel %vm683_vm2, %v1015_v57, 0.0 }
 0x185   :  { %1124 = vadd.xlane.f32.xlu0 %v1123_v59  ;;  %v746_v33 = vpop.xlane.xlu0 %745  ;;  %1100 = vadd.xlane.f32.xlu1 %v1099_v51  ;;  %v722_v17 = vpop.xlane.xlu1 %721 }
 0x186   :  { %v897_v45 = vmul.f32 0.125, %v746_v33  ;;  %v889_v35 = vmul.f32 0.125, %v722_v17  ;;  %v1026_v5 = vmul.f32 %v4034_v56, %v4034_v56  ;;  %v1018_v63 = vmul.f32 %v4037_v29, %v4037_v29 }
 0x188   :  { %v4049_v62 = vsub.f32 %v3714_v10, %v897_v45  ;;  %v4052_v0 = vsub.f32 %v3711_v8, %v889_v35  ;;  %v1132_v20 = vsel %vm683_vm2, %v1026_v5, 0.0  ;;  %v1108_v38 = vsel %vm683_vm2, %v1018_v63, 0.0 }
 0x189   :  { %1133 = vadd.xlane.f32.xlu0 %v1132_v20  ;;  %v755_v57 = vpop.xlane.xlu0 %754  ;;  %1109 = vadd.xlane.f32.xlu1 %v1108_v38  ;;  %v728_v59 = vpop.xlane.xlu1 %727  ;;  %v1020_v8 = vmul.f32 %v4046_v47, %v4046_v47 }
 0x18a   :  { %v900_v51 = vmul.f32 0.125, %v755_v57  ;;  %v891_v33 = vmul.f32 0.125, %v728_v59  ;;  %v1025_v36 = vmul.f32 %v4049_v62, %v4049_v62  ;;  %v1017_v10 = vmul.f32 %v4052_v0, %v4052_v0 }
 0x18c   :  { %v4063_v7 = vsub.f32 %v3724_v18, %v900_v51  ;;  %v4066_v5 = vsub.f32 %v3721_v16, %v891_v33  ;;  %v1129_v17 = vsel %vm683_vm2, %v1025_v36, 0.0  ;;  %v1105_v45 = vsel %vm683_vm2, %v1017_v10, 0.0 }
 0x18d   :  { %1130 = vadd.xlane.f32.xlu0 %v1129_v17  ;;  %v752_v35 = vpop.xlane.xlu0 %751  ;;  %1106 = vadd.xlane.f32.xlu1 %v1105_v45  ;;  %v1114_v16 = vsel %vm683_vm2, %v1020_v8, 0.0 }
 0x18e   :  { %v899_v63 = vmul.f32 0.125, %v752_v35  ;;  %v1028_v20 = vmul.f32 %v4063_v7, %v4063_v7  ;;  %v1019_v59 = vmul.f32 %v4066_v5, %v4066_v5 }
 0x18f   :  { %v776_v38 = vpop.xlane.xlu1 %775 }
 0x190   :  { %v4073_v57 = vsub.f32 %v3731_v24, %v899_v63  ;;  %v1138_v18 = vsel %vm683_vm2, %v1028_v20, 0.0  ;;  %v1111_v45 = vsel %vm683_vm2, %v1019_v59, 0.0 }
 0x191   :  { %1139 = vadd.xlane.f32.xlu0 %v1138_v18  ;;  %v761_v51 = vpop.xlane.xlu0 %760  ;;  %1115 = vadd.xlane.f32.xlu1 %v1114_v16 }
 0x192   :  { %v902_v33 = vmul.f32 0.125, %v761_v51  ;;  %v1027_v36 = vmul.f32 %v4073_v57, %v4073_v57 }
 0x193   :  { %v4081_v10 = vpop.xlane.xlu1 %784 }
 0x194   :  { %v4084_v17 = vsub.f32 %v3738_v31, %v902_v33  ;;  %v1135_v24 = vsel %vm683_vm2, %v1027_v36, 0.0 }
 0x195   :  { %1136 = vadd.xlane.f32.xlu0 %v1135_v24  ;;  %v758_v8 = vpop.xlane.xlu0 %757  ;;  %1112 = vadd.xlane.f32.xlu1 %v1111_v45 }
 0x196   :  { %5205 = vst [vmem:[#allocation21_spill] sm:$0xff] %v4084_v17  ;;  %v901_v35 = vmul.f32 0.125, %v758_v8  ;;  %v1030_v63 = vmul.f32 %v4084_v17, %v4084_v17 }
 0x197   :  { %v4090_v20 = vpop.xlane.xlu1 %781 }
 0x198   :  { %v4093_v18 = vsub.f32 %v3751_v41, %v901_v35  ;;  %v1144_v16 = vsel %vm683_vm2, %v1030_v63, 0.0 }
 0x199   :  { %1145 = vadd.xlane.f32.xlu0 %v1144_v16  ;;  %v767_v31 = vpop.xlane.xlu0 %766 }
 0x19a   :  { %5206 = vst [vmem:[#allocation22_spill] sm:$0xff] %v4093_v18  ;;  %v904_v51 = vmul.f32 0.125, %v767_v31  ;;  %v1029_v59 = vmul.f32 %v4093_v18, %v4093_v18 }
 0x19b   :  { %v4098_v33 = vpop.xlane.xlu1 %790 }
 0x19c   :  { %v4101_v36 = vsub.f32 %v3761_v52, %v904_v51  ;;  %v1141_v24 = vsel %vm683_vm2, %v1029_v59, 0.0 }
 0x19d   :  { %1142 = vadd.xlane.f32.xlu0 %v1141_v24  ;;  %v764_v45 = vpop.xlane.xlu0 %763 }
 0x19e   :  { %5207 = vst [vmem:[#allocation23_spill] sm:$0xff] %v4101_v36  ;;  %v903_v8 = vmul.f32 0.125, %v764_v45  ;;  %v1032_v41 = vmul.f32 %v4101_v36, %v4101_v36 }
 0x19f   :  { %v4106_v35 = vpop.xlane.xlu1 %787 }
 0x1a0   :  { %v4109_v63 = vsub.f32 %v3771_v60, %v903_v8  ;;  %v1150_v16 = vsel %vm683_vm2, %v1032_v41, 0.0  ;;  %v907_v41 = vmul.f32 0.125, %v776_v38 }
 0x1a1   :  { %1151 = vadd.xlane.f32.xlu0 %v1150_v16  ;;  %v773_v31 = vpop.xlane.xlu0 %772 }
 0x1a2   :  { %5208 = vst [vmem:[#allocation24_spill] sm:$0xff] %v4109_v63  ;;  %v906_v18 = vmul.f32 0.125, %v773_v31  ;;  %v1031_v52 = vmul.f32 %v4109_v63, %v4109_v63 }
 0x1a3   :  { %v4114_v51 = vpop.xlane.xlu1 %796 }
 0x1a4   :  { %v4117_v59 = vsub.f32 %v3781_v11, %v906_v18  ;;  %v1147_v24 = vsel %vm683_vm2, %v1031_v52, 0.0 }
 0x1a5   :  { %1148 = vadd.xlane.f32.xlu0 %v1147_v24  ;;  %v770_v45 = vpop.xlane.xlu0 %769  ;;  %v4131_v24 = vsub.f32 %v3741_v32, %v907_v41 }
 0x1a6   :  { %v905_v17 = vmul.f32 0.125, %v770_v45  ;;  %v1034_v60 = vmul.f32 %v4117_v59, %v4117_v59 }
 0x1a7   :  { %v4122_v8 = vpop.xlane.xlu1 %793  ;;  %5209 = vst [vmem:[#allocation25_spill] sm:$0xff] %v4131_v24 }
 0x1a8   :  { %v4125_v16 = vsub.f32 %v3791_v26, %v905_v17  ;;  %v1156_v31 = vsel %vm683_vm2, %v1034_v60, 0.0 }
 0x1a9   :  { %1157 = vadd.xlane.f32.xlu0 %v1156_v31  ;;  %v779_v63 = vpop.xlane.xlu0 %778 }
 0x1aa   :  { %v908_v11 = vmul.f32 0.125, %v779_v63  ;;  %v1033_v18 = vmul.f32 %v4125_v16, %v4125_v16 }
 0x1ab   :  { %v803_v52 = vpop.xlane.xlu1 %802 }
 0x1ac   :  { %v4134_v45 = vsub.f32 %v3801_v39, %v908_v11  ;;  %v916_v36 = vmul.f32 0.125, %v803_v52  ;;  %v1153_v38 = vsel %vm683_vm2, %v1033_v18, 0.0  ;;  %v1035_v39 = vmul.f32 %v4131_v24, %v4131_v24 }
 0x1ad   :  { %1154 = vadd.xlane.f32.xlu0 %v1153_v38 }
 0x1ae   :  { %v4138_v26 = vsub.f32 %v3806_v43, %v916_v36  ;;  %v1036_v17 = vmul.f32 %v4134_v45, %v4134_v45  ;;  %v1159_v11 = vsel %vm683_vm2, %v1035_v39, 0.0 }
 0x1af   :  { %v800_v63 = vpop.xlane.xlu1 %799 }
 0x1b0   :  { %5210 = vst [vmem:[#allocation26_spill] sm:$0xff] %v4138_v26  ;;  %v1162_v60 = vsel %vm683_vm2, %v1036_v17, 0.0  ;;  %v1044_v32 = vmul.f32 %v4138_v26, %v4138_v26 }
 0x1b1   :  { %1163 = vadd.xlane.f32.xlu0 %v1162_v60  ;;  %v4147_v41 = vpop.xlane.xlu0 %832 }
 0x1b2   :  { %v1186_v31 = vsel %vm683_vm2, %v1044_v32, 0.0 }
 0x1b3   :  { %1187 = vadd.xlane.f32.xlu1 %v1186_v31  ;;  %v809_v43 = vpop.xlane.xlu1 %808 }
 0x1b4   :  { %v918_v36 = vmul.f32 0.125, %v809_v43 }
 0x1b5   :  { %v4151_v18 = vpop.xlane.xlu0 %829  ;;  %1160 = vadd.xlane.f32.xlu0 %v1159_v11 }
 0x1b6   :  { %v4154_v52 = vsub.f32 %v3818_v61, %v918_v36 }
 0x1b7   :  { %v806_v38 = vpop.xlane.xlu1 %805 }
 0x1b8   :  { %5211 = vst [vmem:[#allocation27_spill] sm:$0xff] %v4154_v52  ;;  %v917_v17 = vmul.f32 0.125, %v806_v38  ;;  %v1046_v60 = vmul.f32 %v4154_v52, %v4154_v52 }
 0x1b9   :  { %v4158_v26 = vpop.xlane.xlu0 %838 }
 0x1ba   :  { %v4161_v32 = vsub.f32 %v3831_v34, %v917_v17  ;;  %v1192_v31 = vsel %vm683_vm2, %v1046_v60, 0.0 }
 0x1bb   :  { %1193 = vadd.xlane.f32.xlu1 %v1192_v31  ;;  %v815_v39 = vpop.xlane.xlu1 %814 }
 0x1bc   :  { %5212 = vst [vmem:[#allocation28_spill] sm:$0xff] %v4161_v32  ;;  %v920_v43 = vmul.f32 0.125, %v815_v39  ;;  %v1045_v11 = vmul.f32 %v4161_v32, %v4161_v32 }
 0x1bd   :  { %v4166_v61 = vpop.xlane.xlu0 %835 }
 0x1be   :  { %v4169_v36 = vsub.f32 %v3841_v54, %v920_v43  ;;  %v1189_v38 = vsel %vm683_vm2, %v1045_v11, 0.0 }
 0x1bf   :  { %1190 = vadd.xlane.f32.xlu1 %v1189_v38  ;;  %v812_v52 = vpop.xlane.xlu1 %811 }
 0x1c0   :  { %5213 = vst [vmem:[#allocation29_spill] sm:$0xff] %v4169_v36  ;;  %v919_v24 = vmul.f32 0.125, %v812_v52  ;;  %v1048_v34 = vmul.f32 %v4169_v36, %v4169_v36 }
 0x1c1   :  { %v4174_v17 = vpop.xlane.xlu0 %844 }
 0x1c2   :  { %v4177_v60 = vsub.f32 %v3851_v19, %v919_v24  ;;  %v1198_v31 = vsel %vm683_vm2, %v1048_v34, 0.0 }
 0x1c3   :  { %1199 = vadd.xlane.f32.xlu1 %v1198_v31  ;;  %v821_v39 = vpop.xlane.xlu1 %820 }
 0x1c4   :  { %5214 = vst [vmem:[#allocation30_spill] sm:$0xff] %v4177_v60  ;;  %v922_v32 = vmul.f32 0.125, %v821_v39  ;;  %v1047_v54 = vmul.f32 %v4177_v60, %v4177_v60 }
 0x1c5   :  { %v4182_v43 = vpop.xlane.xlu0 %841 }
 0x1c6   :  { %v4185_v52 = vsub.f32 %v3861_v49, %v922_v32  ;;  %v1195_v11 = vsel %vm683_vm2, %v1047_v54, 0.0 }
 0x1c7   :  { %1196 = vadd.xlane.f32.xlu1 %v1195_v11  ;;  %v818_v38 = vpop.xlane.xlu1 %817 }
 0x1c8   :  { %5215 = vst [vmem:[#allocation31_spill] sm:$0xff] %v4185_v52  ;;  %v921_v36 = vmul.f32 0.125, %v818_v38  ;;  %v1050_v19 = vmul.f32 %v4185_v52, %v4185_v52  ;;  %v915_v38 = vmul.f32 0.125, %v800_v63 }
 0x1c9   :  { %v851_v24 = vpop.xlane.xlu0 %850 }
 0x1ca   :  { %v4191_v34 = vsub.f32 %v3871_v27, %v921_v36  ;;  %v932_v31 = vmul.f32 0.125, %v851_v24  ;;  %v1204_v39 = vsel %vm683_vm2, %v1050_v19, 0.0 }
 0x1cb   :  { %1205 = vadd.xlane.f32.xlu1 %v1204_v39  ;;  %v827_v60 = vpop.xlane.xlu1 %826 }
 0x1cc   :  { %v4195_v49 = vsub.f32 %v3874_v23, %v932_v31  ;;  %v924_v32 = vmul.f32 0.125, %v827_v60  ;;  %v1049_v54 = vmul.f32 %v4191_v34, %v4191_v34  ;;  %v914_v31 = vmul.f32 0.125, %v4114_v51 }
 0x1cd   :  { %v4199_v11 = vpop.xlane.xlu0 %847 }
 0x1ce   :  { %v4202_v52 = vsub.f32 %v3881_v46, %v924_v32  ;;  %v1201_v27 = vsel %vm683_vm2, %v1049_v54, 0.0  ;;  %v1060_v36 = vmul.f32 %v4195_v49, %v4195_v49  ;;  %v4212_v46 = vsub.f32 %v3813_v28, %v915_v38 }
 0x1cf   :  { %1202 = vadd.xlane.f32.xlu1 %v1201_v27  ;;  %v824_v19 = vpop.xlane.xlu1 %823  ;;  %v4224_v51 = vsub.f32 %v3786_v15, %v914_v31  ;;  %v912_v15 = vmul.f32 0.125, %v4098_v33 }
 0x1d0   :  { %v923_v24 = vmul.f32 0.125, %v824_v19  ;;  %v1234_v23 = vsel %vm683_vm2, %v1060_v36, 0.0  ;;  %v1052_v60 = vmul.f32 %v4202_v52, %v4202_v52  ;;  %5216 = vst [vmem:[#allocation32_spill] sm:$0xff] %v4212_v46  ;;  %v913_v19 = vmul.f32 0.125, %v4122_v8 }
 0x1d1   :  { %v857_v39 = vpop.xlane.xlu0 %856  ;;  %1235 = vadd.xlane.f32.xlu0 %v1234_v23  ;;  %5217 = vst [vmem:[#allocation33_spill] sm:$0xff] %v4224_v51  ;;  %v1043_v23 = vmul.f32 %v4212_v46, %v4212_v46  ;;  %v1042_v8 = vmul.f32 %v4224_v51, %v4224_v51  ;;  %v5249_v51 = vld [vmem:[#allocation17_spill] sm:$0xff] }
 0x1d2   :  { %v4215_v63 = vsub.f32 %v3891_v40, %v923_v24  ;;  %v934_v32 = vmul.f32 0.125, %v857_v39  ;;  %v1210_v54 = vsel %vm683_vm2, %v1052_v60, 0.0  ;;  %v4240_v39 = vsub.f32 %v3796_v30, %v913_v19 }
 0x1d3   :  { %1211 = vadd.xlane.f32.xlu1 %v1210_v54  ;;  %v1183_v54 = vsel %vm683_vm2, %v1043_v23, 0.0  ;;  %v1180_v19 = vsel %vm683_vm2, %v1042_v8, 0.0 }
 0x1d4   :  { %v4219_v27 = vsub.f32 %v3894_v3, %v934_v32  ;;  %v1051_v36 = vmul.f32 %v4215_v63, %v4215_v63  ;;  %5219 = vst [vmem:[#allocation35_spill] sm:$0xff] %v4240_v39  ;;  %v1041_v23 = vmul.f32 %v4240_v39, %v4240_v39 }
 0x1d5   :  { %v854_v28 = vpop.xlane.xlu0 %853 }
 0x1d6   :  { %v933_v38 = vmul.f32 0.125, %v854_v28  ;;  %v1207_v40 = vsel %vm683_vm2, %v1051_v36, 0.0  ;;  %v1062_v24 = vmul.f32 %v4219_v27, %v4219_v27  ;;  %v4250_v28 = vsub.f32 %v3766_v55, %v912_v15 }
 0x1d7   :  { %1208 = vadd.xlane.f32.xlu1 %v1207_v40 }
 0x1d8   :  { %v4233_v3 = vsub.f32 %v3905_v58, %v933_v38  ;;  %v1240_v60 = vsel %vm683_vm2, %v1062_v24, 0.0  ;;  %5221 = vst [vmem:[#allocation37_spill] sm:$0xff] %v4250_v28  ;;  %v911_v38 = vmul.f32 0.125, %v4106_v35  ;;  %v1040_v15 = vmul.f32 %v4250_v28, %v4250_v28 }
 0x1d9   :  { %v863_v31 = vpop.xlane.xlu0 %862  ;;  %1241 = vadd.xlane.f32.xlu0 %v1240_v60  ;;  %v910_v60 = vmul.f32 0.125, %v4081_v10 }
 0x1da   :  { %5218 = vst [vmem:[#allocation34_spill] sm:$0xff] %v4233_v3  ;;  %v936_v32 = vmul.f32 0.125, %v863_v31  ;;  %v1061_v36 = vmul.f32 %v4233_v3, %v4233_v3  ;;  %v4266_v31 = vsub.f32 %v3776_v1, %v911_v38 }
 0x1db   :  { %1184 = vadd.xlane.f32.xlu1 %v1183_v54  ;;  %v1177_v54 = vsel %vm683_vm2, %v1041_v23, 0.0  ;;  %v1174_v23 = vsel %vm683_vm2, %v1040_v15, 0.0 }
 0x1dc   :  { %v4246_v58 = vsub.f32 %v3908_v12, %v936_v32  ;;  %v1237_v33 = vsel %vm683_vm2, %v1061_v36, 0.0  ;;  %5223 = vst [vmem:[#allocation39_spill] sm:$0xff] %v4266_v31  ;;  %v5224_v36 = vld [vmem:[#allocation15_spill] sm:$0xff] }
 0x1dd   :  { %v860_v40 = vpop.xlane.xlu0 %859  ;;  %1238 = vadd.xlane.f32.xlu0 %v1237_v33 }
 0x1de   :  { %5220 = vst [vmem:[#allocation36_spill] sm:$0xff] %v4246_v58  ;;  %v935_v30 = vmul.f32 0.125, %v860_v40  ;;  %v1064_v24 = vmul.f32 %v4246_v58, %v4246_v58  ;;  %v5226_v40 = vld [vmem:[#allocation6_spill] sm:$0xff] }
 0x1df   :  { %1181 = vadd.xlane.f32.xlu1 %v1180_v19  ;;  %v909_v19 = vmul.f32 0.125, %v4090_v20 }
 0x1e0   :  { %v4259_v12 = vsub.f32 %v3915_v14, %v935_v30  ;;  %v1246_v55 = vsel %vm683_vm2, %v1064_v24, 0.0  ;;  %v4276_v30 = vsub.f32 %v5226_v40, %v910_v60 }
 0x1e1   :  { %v869_v35 = vpop.xlane.xlu0 %868  ;;  %1247 = vadd.xlane.f32.xlu0 %v1246_v55 }
 0x1e2   :  { %5222 = vst [vmem:[#allocation38_spill] sm:$0xff] %v4259_v12  ;;  %v938_v8 = vmul.f32 0.125, %v869_v35  ;;  %v1074_v32 = vpop.xlane.xlu1 %1073  ;;  %v1063_v14 = vmul.f32 %v4259_v12, %v4259_v12  ;;  %5227 = vst [vmem:[#allocation6_spill] sm:$0xff] %v4276_v30  ;;  %v1039_v35 = vmul.f32 %v4266_v31, %v4266_v31  ;;  %v1038_v20 = vmul.f32 %v4276_v30, %v4276_v30 }
 0x1e3   :  { %1178 = vadd.xlane.f32.xlu1 %v1177_v54 }
 0x1e4   :  { %v4272_v33 = vsub.f32 %v5224_v36, %v938_v8  ;;  %v1243_v10 = vsel %vm683_vm2, %v1063_v14, 0.0  ;;  %v5229_v14 = vld [vmem:[#allocation7_spill] sm:$0xff]  ;;  %v1171_v40 = vsel %vm683_vm2, %v1039_v35, 0.0 }
 0x1e5   :  { %v866_v1 = vpop.xlane.xlu0 %865  ;;  %1244 = vadd.xlane.f32.xlu0 %v1243_v10  ;;  %v4291_v36 = vsub.f32 %v5229_v14, %v909_v19 }
 0x1e6   :  { %5225 = vst [vmem:[#allocation15_spill] sm:$0xff] %v4272_v33  ;;  %v937_v38 = vmul.f32 0.125, %v866_v1  ;;  %v1071_v24 = vpop.xlane.xlu1 %1070  ;;  %v1066_v55 = vmul.f32 %v4272_v33, %v4272_v33 }
 0x1e7   :  { %1175 = vadd.xlane.f32.xlu1 %v1174_v23  ;;  %5230 = vst [vmem:[#allocation7_spill] sm:$0xff] %v4291_v36  ;;  %v1037_v14 = vmul.f32 %v4291_v36, %v4291_v36  ;;  %v5235_v36 = vld [vmem:[#allocation12_spill] sm:$0xff] }
 0x1e8   :  { %v4285_v8 = vsub.f32 %v3930_v6, %v937_v38  ;;  %v1252_v60 = vsel %vm683_vm2, %v1066_v55, 0.0  ;;  %v931_v6 = vmul.f32 0.125, %v4199_v11  ;;  %v1262_v11 = vmul.f32 0.125, %v1074_v32 }
 0x1e9   :  { %v875_v54 = vpop.xlane.xlu0 %874  ;;  %1253 = vadd.xlane.f32.xlu0 %v1252_v60  ;;  %v929_v32 = vmul.f32 0.125, %v4182_v43 }
 0x1ea   :  { %5228 = vst [vmem:[#allocation40_spill] sm:$0xff] %v4285_v8  ;;  %v940_v15 = vmul.f32 0.125, %v875_v54  ;;  %v1080_v10 = vpop.xlane.xlu1 %1079  ;;  %v1065_v1 = vmul.f32 %v4285_v8, %v4285_v8  ;;  %v1168_v54 = vsel %vm683_vm2, %v1038_v20, 0.0 }
 0x1eb   :  { %1172 = vadd.xlane.f32.xlu1 %v1171_v40  ;;  %v930_v40 = vmul.f32 0.125, %v4174_v17  ;;  %v1326_v17 = vadd.f32 1e-05, %v1262_v11 }
 0x1ec   :  { %v4298_v38 = vsub.f32 %v3937_v37, %v940_v15  ;;  %v1249_v23 = vsel %vm683_vm2, %v1065_v1, 0.0  ;;  %v5232_v37 = vld [vmem:[#allocation14_spill] sm:$0xff] }
 0x1ed   :  { %v872_v55 = vpop.xlane.xlu0 %871  ;;  %1250 = vadd.xlane.f32.xlu0 %v1249_v23  ;;  %v4308_v15 = vsub.f32 %v5232_v37, %v931_v6  ;;  %v4318_v31 = vsub.f32 %v5235_v36, %v930_v40  ;;  %v1264_v6 = vmul.f32 0.125, %v1080_v10  ;;  %2906 = vrsqrt.f32 %v1326_v17 }
 0x1ee   :  { %5231 = vst [vmem:[#allocation41_spill] sm:$0xff] %v4298_v38  ;;  %v939_v60 = vmul.f32 0.125, %v872_v55  ;;  %v1077_v19 = vpop.xlane.xlu1 %1076  ;;  %v1068_v35 = vmul.f32 %v4298_v38, %v4298_v38  ;;  %v1165_v55 = vsel %vm683_vm2, %v1037_v14, 0.0  ;;  %v928_v14 = vmul.f32 0.125, %v4158_v26 }
 0x1ef   :  { %1169 = vadd.xlane.f32.xlu1 %v1168_v54  ;;  %5233 = vst [vmem:[#allocation14_spill] sm:$0xff] %v4308_v15  ;;  %5236 = vst [vmem:[#allocation12_spill] sm:$0xff] %v4318_v31  ;;  %v1261_v54 = vmul.f32 0.125, %v1071_v24  ;;  %v1263_v37 = vmul.f32 0.125, %v1077_v19  ;;  %v1328_v40 = vadd.f32 1e-05, %v1264_v6  ;;  %v1058_v43 = vmul.f32 %v4318_v31, %v4318_v31 }
 0x1f0   :  { %v4311_v1 = vsub.f32 %v3952_v48, %v939_v60  ;;  %v1258_v23 = vsel %vm683_vm2, %v1068_v35, 0.0  ;;  %v1059_v60 = vmul.f32 %v4308_v15, %v4308_v15  ;;  %v927_v26 = vmul.f32 0.125, %v4166_v61 }
 0x1f1   :  { %1259 = vadd.xlane.f32.xlu0 %v1258_v23  ;;  %v5237_v23 = vld [vmem:[#allocation13_spill] sm:$0xff]  ;;  %v1325_v10 = vadd.f32 1e-05, %v1261_v54  ;;  %v1327_v28 = vadd.f32 1e-05, %v1263_v37  ;;  %2908 = vrsqrt.f32 %v1328_v40  ;;  %v1228_v19 = vsel %vm683_vm2, %v1058_v43, 0.0 }
 0x1f2   :  { %5234 = vst [vmem:[#allocation42_spill] sm:$0xff] %v4311_v1  ;;  %v1086_v20 = vpop.xlane.xlu1 %1085  ;;  %v1067_v30 = vmul.f32 %v4311_v1, %v4311_v1  ;;  %v4326_v36 = vsub.f32 %v5237_v23, %v929_v32  ;;  %v1231_v11 = vsel %vm683_vm2, %v1059_v60, 0.0  ;;  %v5241_v60 = vld [vmem:[#allocation11_spill] sm:$0xff] }
 0x1f3   :  { %1166 = vadd.xlane.f32.xlu1 %v1165_v55  ;;  %2910 = vrsqrt.f32 %v1325_v10  ;;  %v4340_v54 = vsub.f32 %v5241_v60, %v927_v26  ;;  %v5244_v10 = vld [vmem:[#allocation8_spill] sm:$0xff] }
 0x1f4   :  { %v1255_v48 = vsel %vm683_vm2, %v1067_v30, 0.0  ;;  %5238 = vst [vmem:[#allocation13_spill] sm:$0xff] %v4326_v36  ;;  %v1266_v30 = vmul.f32 0.125, %v1086_v20  ;;  %v1057_v17 = vmul.f32 %v4326_v36, %v4326_v36  ;;  %2912 = vrsqrt.f32 %v1327_v28  ;;  %v3166_v60 = vld [vmem:[%s5130_s6] sm:$0x1f] }
 0x1f5   :  { %1256 = vadd.xlane.f32.xlu0 %v1255_v48  ;;  %v5239_v48 = vld [vmem:[#allocation10_spill] sm:$0xff]  ;;  %v926_v20 = vmul.f32 0.125, %v4147_v41  ;;  %5242 = vst [vmem:[#allocation11_spill] sm:$0xff] %v4340_v54  ;;  %v925_v41 = vmul.f32 0.125, %v4151_v18  ;;  %v1055_v26 = vmul.f32 %v4340_v54, %v4340_v54 }
 0x1f6   :  { %v1083_v35 = vpop.xlane.xlu1 %1082  ;;  %v4332_v24 = vsub.f32 %v5239_v48, %v928_v14  ;;  %v1330_v32 = vadd.f32 1e-05, %v1266_v30  ;;  %v1225_v14 = vsel %vm683_vm2, %v1057_v17, 0.0 }
 0x1f7   :  { %v1265_v37 = vmul.f32 0.125, %v1083_v35  ;;  %v4347_v28 = vsub.f32 %v5244_v10, %v926_v20  ;;  %v5247_v10 = vld [vmem:[#allocation9_spill] sm:$0xff] }
 0x1f8   :  { %5240 = vst [vmem:[#allocation10_spill] sm:$0xff] %v4332_v24  ;;  %v1056_v61 = vmul.f32 %v4332_v24, %v4332_v24  ;;  %2914 = vrsqrt.f32 %v1330_v32  ;;  %v4363_v24 = vsub.f32 %v5247_v10, %v925_v41 }
 0x1f9   :  { %1232 = vadd.xlane.f32.xlu0 %v1231_v11  ;;  %v5243_v11 = vld [vmem:[#allocation5_spill] sm:$0xff]  ;;  %5245 = vst [vmem:[#allocation8_spill] sm:$0xff] %v4347_v28 }
 0x1fa   :  { %v1092_v55 = vpop.xlane.xlu1 %1091  ;;  %v5170_v43 = vsub.s32 1, %v5243_v11  ;;  %v2907_v30 = vpop.eup %2906  ;;  %v1222_v48 = vsel %vm683_vm2, %v1056_v61, 0.0  ;;  %v5175_v18 = vsub.s32 2, %v5243_v11  ;;  %v1053_v10 = vmul.f32 %v4363_v24, %v4363_v24 }
 0x1fb   :  { %v1268_v35 = vmul.f32 0.125, %v1092_v55  ;;  %v1054_v55 = vmul.f32 %v4347_v28, %v4347_v28 }
 0x1fc   :  { %v4358_v20 = vrot.slane %v3166_v60, %v5170_v43 }
 0x1fd   :  { %1229 = vadd.xlane.f32.xlu0 %v1228_v19  ;;  %v1329_v19 = vadd.f32 1e-05, %v1265_v37  ;;  %v1219_v37 = vsel %vm683_vm2, %v1055_v26, 0.0  ;;  %v1332_v39 = vadd.f32 1e-05, %v1268_v35  ;;  %v1216_v26 = vsel %vm683_vm2, %v1054_v55, 0.0 }
 0x1fe   :  { %v1089_v6 = vpop.xlane.xlu1 %1088 }
 0x1ff   :  { %2916 = vrsqrt.f32 %v1329_v19  ;;  %v1267_v54 = vmul.f32 0.125, %v1089_v6 }
 0x200   :  { %2918 = vrsqrt.f32 %v1332_v39 }
 0x201   :  { %1226 = vadd.xlane.f32.xlu0 %v1225_v14  ;;  %v5246_v14 = vld [vmem:[#allocation16_spill] sm:$0xff]  ;;  %v1331_v28 = vadd.f32 1e-05, %v1267_v54 }
 0x202   :  { %v1122_v23 = vpop.xlane.xlu0 %1121  ;;  %v1098_v40 = vpop.xlane.xlu1 %1097  ;;  %v1454_v61 = vmul.f32 %v2907_v30, %v5246_v14  ;;  %5248 = vst [vmem:[#allocation16_spill] sm:$0xff] %v4363_v24  ;;  %v4370_v30 = vrot.slane %v3166_v60, %v5175_v18  ;;  %v1213_v24 = vsel %vm683_vm2, %v1053_v10, 0.0 }
 0x203   :  { %v1270_v15 = vmul.f32 0.125, %v1098_v40  ;;  %2920 = vrsqrt.f32 %v1331_v28 }
 0x204   :  { %v1522_v41 = vmul.f32 %v4358_v20, %v1454_v61 }
 0x205   :  { %1223 = vadd.xlane.f32.xlu0 %v1222_v48  ;;  %v2909_v48 = vpop.eup %2908  ;;  %v1334_v18 = vadd.f32 1e-05, %v1270_v15 }
 0x206   :  { %v1119_v17 = vpop.xlane.xlu0 %1118  ;;  %v1095_v32 = vpop.xlane.xlu1 %1094  ;;  %v1456_v19 = vmul.f32 %v2909_v48, %v3944_v22  ;;  %v4382_v55 = vadd.f32 %v4370_v30, %v1522_v41 }
 0x207   :  { %v2911_v43 = vpop.eup %2910  ;;  %v1269_v6 = vmul.f32 0.125, %v1095_v32  ;;  %v1278_v32 = vmul.f32 0.125, %v1122_v23  ;;  %2922 = vrsqrt.f32 %v1334_v18  ;;  %v1277_v18 = vmul.f32 0.125, %v1119_v17 }
 0x208   :  { %v2913_v14 = vpop.eup %2912  ;;  %v1453_v60 = vmul.f32 %v2911_v43, %v5249_v51  ;;  %v1524_v22 = vmul.f32 %v4358_v20, %v1456_v19  ;;  %v1718_v15 = vmul.f32 0.70710677, %v4382_v55 }
 0x209   :  { %1220 = vadd.xlane.f32.xlu0 %v1219_v37  ;;  %v2915_v37 = vpop.eup %2914  ;;  %v1455_v61 = vmul.f32 %v2913_v14, %v3955_v2  ;;  %v1333_v48 = vadd.f32 1e-05, %v1269_v6  ;;  %v1342_v41 = vadd.f32 1e-05, %v1278_v32 }
 0x20a   :  { %v1128_v36 = vpop.xlane.xlu0 %1127  ;;  %v1104_v31 = vpop.xlane.xlu1 %1103  ;;  %v1458_v54 = vmul.f32 %v2915_v37, %v3963_v4  ;;  %v1521_v51 = vmul.f32 %v4358_v20, %v1453_v60  ;;  %v1592_v43 = vadd.f32 %v4370_v30, %v1524_v22  ;;  %v5250_v60 = vld [vmem:[#allocation18_spill] sm:$0xff] }
 0x20b   :  { %v1272_v1 = vmul.f32 0.125, %v1104_v31  ;;  %v1523_v2 = vmul.f32 %v4358_v20, %v1455_v61  ;;  %2924 = vrsqrt.f32 %v1333_v48  ;;  %v1280_v6 = vmul.f32 0.125, %v1128_v36 }
 0x20c   :  { %v1526_v23 = vmul.f32 %v4358_v20, %v1458_v54  ;;  %v1589_v4 = vadd.f32 %v4370_v30, %v1521_v51  ;;  %v2917_v28 = vpop.eup %2916  ;;  %2926 = verf.f32 %v1718_v15  ;;  %v1720_v10 = vmul.f32 0.70710677, %v1592_v43 }
 0x20d   :  { %1217 = vadd.xlane.f32.xlu0 %v1216_v26  ;;  %v1336_v31 = vadd.f32 1e-05, %v1272_v1  ;;  %v4394_v14 = vadd.f32 %v4370_v30, %v1523_v2  ;;  %v1457_v61 = vmul.f32 %v2917_v28, %v5250_v60  ;;  %v2919_v48 = vpop.eup %2918  ;;  %v1341_v54 = vadd.f32 1e-05, %v1277_v18  ;;  %v5251_v28 = vld [vmem:[#allocation19_spill] sm:$0xff] }
 0x20e   :  { %v4377_v35 = vpop.xlane.xlu0 %1124  ;;  %v1101_v40 = vpop.xlane.xlu1 %1100  ;;  %v4397_v1 = vadd.f32 %v4370_v30, %v1526_v23  ;;  %v1717_v22 = vmul.f32 0.70710677, %v1589_v4  ;;  %v1344_v2 = vadd.f32 1e-05, %v1280_v6  ;;  %v1460_v60 = vmul.f32 %v2919_v48, %v5251_v28 }
 0x20f   :  { %2928 = vrsqrt.f32 %v1336_v31  ;;  %v1719_v32 = vmul.f32 0.70710677, %v4394_v14  ;;  %v1271_v51 = vmul.f32 0.125, %v1101_v40 }
 0x210   :  { %2930 = vrsqrt.f32 %v1342_v41  ;;  %v1722_v17 = vmul.f32 0.70710677, %v4397_v1  ;;  %v1525_v41 = vmul.f32 %v4358_v20, %v1457_v61  ;;  %v2921_v36 = vpop.eup %2920 }
 0x211   :  { %1214 = vadd.xlane.f32.xlu0 %v1213_v24  ;;  %2932 = verf.f32 %v1720_v10  ;;  %v1335_v18 = vadd.f32 1e-05, %v1271_v51  ;;  %v1459_v38 = vmul.f32 %v2921_v36, %v3981_v9  ;;  %v4413_v51 = vmul.f32 0.5, %v1589_v4 }
 0x212   :  { %v1134_v26 = vpop.xlane.xlu0 %1133  ;;  %v1110_v39 = vpop.xlane.xlu1 %1109  ;;  %2934 = verf.f32 %v1717_v22  ;;  %v1593_v61 = vadd.f32 %v4370_v30, %v1525_v41  ;;  %v1656_v41 = vmul.f32 0.5, %v1592_v43 }
 0x213   :  { %v1282_v15 = vmul.f32 0.125, %v1134_v26  ;;  %v1274_v23 = vmul.f32 0.125, %v1110_v39  ;;  %2936 = verf.f32 %v1719_v32  ;;  %v1528_v32 = vmul.f32 %v4358_v20, %v1460_v60  ;;  %5252 = vst [vmem:[#allocation9_spill] sm:$0xff] %v4413_v51 }
 0x214   :  { %v2923_v12 = vpop.eup %2922  ;;  %2938 = vrsqrt.f32 %v1341_v54 }
 0x215   :  { %2940 = verf.f32 %v1722_v17  ;;  %v1346_v6 = vadd.f32 1e-05, %v1282_v15  ;;  %v1338_v22 = vadd.f32 1e-05, %v1274_v23  ;;  %v1462_v58 = vmul.f32 %v2923_v12, %v3990_v53 }
 0x216   :  { %v1131_v24 = vpop.xlane.xlu0 %1130  ;;  %v1107_v19 = vpop.xlane.xlu1 %1106  ;;  %2942 = vrsqrt.f32 %v1344_v2  ;;  %v1527_v12 = vmul.f32 %v4358_v20, %v1459_v38  ;;  %v1596_v23 = vadd.f32 %v4370_v30, %v1528_v32 }
 0x217   :  { %v1273_v40 = vmul.f32 0.125, %v1107_v19  ;;  %v1281_v39 = vmul.f32 0.125, %v1131_v24  ;;  %2944 = vrsqrt.f32 %v1335_v18  ;;  %v1654_v19 = vmul.f32 0.5, %v4382_v55 }
 0x218   :  { %v2925_v10 = vpop.eup %2924  ;;  %v1279_v24 = vmul.f32 0.125, %v4377_v35  ;;  %2946 = vrsqrt.f32 %v1346_v6  ;;  %v1530_v4 = vmul.f32 %v4358_v20, %v1462_v58  ;;  %v1655_v58 = vmul.f32 0.5, %v4394_v14 }
 0x219   :  { %v2927_v48 = vpop.eup %2926  ;;  %v1337_v2 = vadd.f32 1e-05, %v1273_v40  ;;  %v1461_v9 = vmul.f32 %v2925_v10, %v4001_v42  ;;  %2948 = vrsqrt.f32 %v1338_v22  ;;  %v1345_v55 = vadd.f32 1e-05, %v1281_v39 }
 0x21a   :  { %v1140_v37 = vpop.xlane.xlu0 %1139  ;;  %v1116_v46 = vpop.xlane.xlu1 %1115  ;;  %v1846_v43 = vadd.f32 1.0, %v2927_v48  ;;  %v1343_v38 = vadd.f32 1e-05, %v1279_v24  ;;  %v1595_v22 = vadd.f32 %v4370_v30, %v1527_v12  ;;  %v1598_v32 = vadd.f32 %v4370_v30, %v1530_v4 }
 0x21b   :  { %v1284_v54 = vmul.f32 0.125, %v1140_v37  ;;  %v1276_v15 = vmul.f32 0.125, %v1116_v46  ;;  %v1721_v37 = vmul.f32 0.70710677, %v1593_v61  ;;  %2950 = vrsqrt.f32 %v1337_v2 }
 0x21c   :  { %v2929_v17 = vpop.eup %2928  ;;  %v1529_v40 = vmul.f32 %v4358_v20, %v1461_v9  ;;  %v4429_v48 = vmul.f32 0.5, %v4397_v1  ;;  %v4436_v9 = vmul.f32 %v1846_v43, %v1654_v19  ;;  %v1723_v12 = vmul.f32 0.70710677, %v1595_v22 }
 0x21d   :  { %v2931_v36 = vpop.eup %2930  ;;  %v1348_v46 = vadd.f32 1e-05, %v1284_v54  ;;  %v1464_v42 = vmul.f32 %v2929_v17, %v4013_v44  ;;  %v1340_v35 = vadd.f32 1e-05, %v1276_v15  ;;  %2952 = verf.f32 %v1721_v37 }
 0x21e   :  { %v4402_v31 = vpop.xlane.xlu0 %1136  ;;  %v1113_v28 = vpop.xlane.xlu1 %1112  ;;  %v1470_v10 = vmul.f32 %v2931_v36, %v3987_v21  ;;  %2954 = vrsqrt.f32 %v1345_v55  ;;  %v1724_v44 = vmul.f32 0.70710677, %v1596_v23  ;;  %5253 = vst [vmem:[#allocation17_spill] sm:$0xff] %v4436_v9  ;;  %v4439_v37 = vmul.f32 0.5, %v1593_v61 }
 0x21f   :  { %v1275_v60 = vmul.f32 0.125, %v1113_v28  ;;  %v2933_v18 = vpop.eup %2932  ;;  %2956 = vrsqrt.f32 %v1348_v46  ;;  %v1532_v21 = vmul.f32 %v4358_v20, %v1464_v42  ;;  %v4433_v28 = vadd.f32 %v4370_v30, %v1529_v40 }
 0x220   :  { %v2935_v39 = vpop.eup %2934  ;;  %v1848_v2 = vadd.f32 1.0, %v2933_v18  ;;  %2958 = vrsqrt.f32 %v1340_v35  ;;  %v1538_v14 = vmul.f32 %v4358_v20, %v1470_v10  ;;  %v1283_v1 = vmul.f32 0.125, %v4402_v31 }
 0x221   :  { %v2937_v54 = vpop.eup %2936  ;;  %v1339_v17 = vadd.f32 1e-05, %v1275_v60  ;;  %2960 = vrsqrt.f32 %v1343_v38  ;;  %v1726_v4 = vmul.f32 0.70710677, %v1598_v32  ;;  %v4441_v60 = vadd.f32 1.0, %v2935_v39 }
 0x222   :  { %v4406_v26 = vpop.xlane.xlu0 %1145  ;;  %v2939_v15 = vpop.eup %2938  ;;  %2962 = verf.f32 %v1724_v44  ;;  %v1847_v46 = vadd.f32 1.0, %v2937_v54  ;;  %v4444_v42 = vadd.f32 %v4370_v30, %v1532_v21  ;;  %v4446_v19 = vmul.f32 0.5, %v1596_v23 }
 0x223   :  { %v2941_v36 = vpop.eup %2940  ;;  %5254 = vst [vmem:[#allocation18_spill] sm:$0xff] %v4441_v60  ;;  %2964 = vrsqrt.f32 %v1339_v17  ;;  %v4448_v43 = vmul.f32 %v1848_v2, %v1656_v41  ;;  %v1286_v31 = vmul.f32 0.125, %v4406_v26  ;;  %v1725_v61 = vmul.f32 0.70710677, %v4433_v28 }
 0x224   :  { %v2943_v55 = vpop.eup %2942  ;;  %v4452_v35 = vmul.f32 0.5, %v1595_v22  ;;  %v4455_v40 = vadd.f32 %v4370_v30, %v1538_v14  ;;  %v1347_v10 = vadd.f32 1e-05, %v1283_v1  ;;  %2966 = verf.f32 %v1723_v12 }
 0x225   :  { %5255 = vst [vmem:[#allocation19_spill] sm:$0xff] %v4448_v43  ;;  %v2945_v18 = vpop.eup %2944  ;;  %v4458_v44 = vmul.f32 %v2939_v15, %v3998_v13  ;;  %v4460_v54 = vmul.f32 0.5, %v1598_v32  ;;  %2968 = verf.f32 %v1726_v4  ;;  %v4462_v26 = vmul.f32 %v1847_v46, %v1655_v58 }
 0x226   :  { %v4417_v53 = vpop.xlane.xlu0 %1142  ;;  %v2947_v23 = vpop.eup %2946  ;;  %v1728_v22 = vmul.f32 0.70710677, %v4444_v42  ;;  %v1463_v21 = vmul.f32 %v2945_v18, %v4025_v50  ;;  %v1850_v2 = vadd.f32 1.0, %v2941_v36  ;;  %v1350_v14 = vadd.f32 1e-05, %v1286_v31 }
 0x227   :  { %5256 = vst [vmem:[#allocation43_spill] sm:$0xff] %v4462_v26  ;;  %v2949_v17 = vpop.eup %2948  ;;  %v1285_v1 = vmul.f32 0.125, %v4417_v53  ;;  %2970 = verf.f32 %v1725_v61  ;;  %v1474_v58 = vmul.f32 %v2947_v23, %v4034_v56  ;;  %v4471_v36 = vmul.f32 0.5, %v4455_v40 }
 0x228   :  { %v2951_v15 = vpop.eup %2950  ;;  %2972 = vrsqrt.f32 %v1347_v10  ;;  %v1466_v50 = vmul.f32 %v2949_v17, %v4037_v29  ;;  %v1531_v53 = vmul.f32 %v4358_v20, %v1463_v21  ;;  %v4482_v21 = vmul.f32 0.5, %v4433_v28 }
 0x229   :  { %v1349_v56 = vadd.f32 1e-05, %v1285_v1  ;;  %v1465_v61 = vmul.f32 %v2951_v15, %v4052_v0  ;;  %v1542_v23 = vmul.f32 %v4358_v20, %v1474_v58 }
 0x22a   :  { %v1152_v6 = vpop.xlane.xlu0 %1151  ;;  %v2953_v46 = vpop.eup %2952 }
 0x22b   :  { %v1288_v38 = vmul.f32 0.125, %v1152_v6  ;;  %v1472_v6 = vmul.f32 %v2943_v55, %v4010_v25  ;;  %v2955_v25 = vpop.eup %2954  ;;  %v4475_v55 = vmul.f32 %v1850_v2, %v4429_v48  ;;  %v1534_v48 = vmul.f32 %v4358_v20, %v1466_v50 }
 0x22c   :  { %v2957_v18 = vpop.eup %2956  ;;  %v1610_v28 = vadd.f32 %v4370_v30, %v1542_v23  ;;  %v1664_v23 = vmul.f32 0.5, %v4444_v42 }
 0x22d   :  { %v1352_v32 = vadd.f32 1e-05, %v1288_v38  ;;  %v2959_v10 = vpop.eup %2958  ;;  %v1476_v0 = vmul.f32 %v2957_v18, %v4063_v7  ;;  %v1602_v50 = vadd.f32 %v4370_v30, %v1534_v48 }
 0x22e   :  { %v1149_v24 = vpop.xlane.xlu0 %1148  ;;  %v2961_v17 = vpop.eup %2960 }
 0x22f   :  { %v1287_v12 = vmul.f32 0.125, %v1149_v24  ;;  %v1540_v24 = vmul.f32 %v4358_v20, %v1472_v6  ;;  %v2963_v2 = vpop.eup %2962  ;;  %v1599_v6 = vadd.f32 %v4370_v30, %v1531_v53 }
 0x231   :  { %v1351_v29 = vadd.f32 1e-05, %v1287_v12  ;;  %v1608_v1 = vadd.f32 %v4370_v30, %v1540_v24  ;;  %v1533_v12 = vmul.f32 %v4358_v20, %v1465_v61  ;;  %v1727_v18 = vmul.f32 0.70710677, %v1599_v6 }
 0x232   :  { %v1158_v39 = vpop.xlane.xlu0 %1157 }
 0x233   :  { %v1290_v41 = vmul.f32 0.125, %v1158_v39 }
 0x235   :  { %v1354_v13 = vadd.f32 1e-05, %v1290_v41  ;;  %v1849_v41 = vadd.f32 1.0, %v2953_v46  ;;  %v5258_v46 = vld [vmem:[#allocation20_spill] sm:$0xff] }
 0x236   :  { %v1155_v4 = vpop.xlane.xlu0 %1154  ;;  %v4495_v7 = vmul.f32 %v2961_v17, %v5258_v46  ;;  %v1738_v17 = vmul.f32 0.70710677, %v1610_v28 }
 0x237   :  { %2974 = vrsqrt.f32 %v1354_v13  ;;  %v1289_v39 = vmul.f32 0.125, %v1155_v4  ;;  %v2965_v13 = vpop.eup %2964  ;;  %v4492_v58 = vmul.f32 %v1849_v41, %v4439_v37 }
 0x238   :  { %2976 = verf.f32 %v1728_v22  ;;  %v1467_v24 = vmul.f32 %v2965_v13, %v4066_v5  ;;  %v1730_v5 = vmul.f32 0.70710677, %v1602_v50 }
 0x239   :  { %2978 = vrsqrt.f32 %v1350_v14  ;;  %v1353_v31 = vadd.f32 1e-05, %v1289_v39  ;;  %v1473_v14 = vmul.f32 %v2955_v25, %v4049_v62  ;;  %5257 = vst [vmem:[#allocation44_spill] sm:$0xff] %v4492_v58  ;;  %v2967_v62 = vpop.eup %2966  ;;  %v1852_v25 = vadd.f32 1.0, %v2963_v2 }
 0x23a   :  { %2980 = vrsqrt.f32 %v1352_v32  ;;  %v1164_v38 = vpop.xlane.xlu0 %1163  ;;  %v1468_v32 = vmul.f32 %v2959_v10, %v4046_v47  ;;  %v2969_v53 = vpop.eup %2968  ;;  %v1601_v10 = vadd.f32 %v4370_v30, %v1533_v12  ;;  %v1851_v41 = vadd.f32 1.0, %v2967_v62 }
 0x23b   :  { %2982 = vrsqrt.f32 %v1353_v31  ;;  %v1292_v22 = vmul.f32 0.125, %v1164_v38  ;;  %v1736_v31 = vmul.f32 0.70710677, %v1608_v1  ;;  %v2971_v38 = vpop.eup %2970  ;;  %v1854_v2 = vadd.f32 1.0, %v2969_v53 }
 0x23c   :  { %2984 = vrsqrt.f32 %v1349_v56  ;;  %v1188_v47 = vpop.xlane.xlu1 %1187  ;;  %v1544_v56 = vmul.f32 %v4358_v20, %v1476_v0  ;;  %v1536_v37 = vmul.f32 %v4358_v20, %v1468_v32  ;;  %v2973_v48 = vpop.eup %2972  ;;  %v4507_v0 = vmul.f32 %v1852_v25, %v4446_v19 }
 0x23d   :  { %v1356_v15 = vadd.f32 1e-05, %v1292_v22  ;;  %2986 = vrsqrt.f32 %v1351_v29  ;;  %v1541_v29 = vmul.f32 %v4358_v20, %v1473_v14  ;;  %v4504_v22 = vmul.f32 0.5, %v1608_v1 }
 0x23e   :  { %v1161_v4 = vpop.xlane.xlu0 %1160  ;;  %v1535_v32 = vmul.f32 %v4358_v20, %v1467_v24  ;;  %v4510_v12 = vmul.f32 0.5, %v1599_v6  ;;  %v1612_v14 = vadd.f32 %v4370_v30, %v1544_v56  ;;  %v1604_v1 = vadd.f32 %v4370_v30, %v1536_v37 }
 0x23f   :  { %2988 = vrsqrt.f32 %v1356_v15  ;;  %v1291_v39 = vmul.f32 0.125, %v1161_v4  ;;  %v1729_v4 = vmul.f32 0.70710677, %v1601_v10  ;;  %v4515_v46 = vadd.f32 %v4370_v30, %v1541_v29 }
 0x240   :  { %v1853_v19 = vadd.f32 1.0, %v2971_v38  ;;  %v4520_v25 = vmul.f32 0.5, %v1610_v28  ;;  %v4523_v24 = vmul.f32 0.5, %v1602_v50  ;;  %v4526_v56 = vmul.f32 %v1854_v2, %v4460_v54 }
 0x241   :  { %v1355_v61 = vadd.f32 1e-05, %v1291_v39  ;;  %v4518_v39 = vmul.f32 %v1851_v41, %v4452_v35  ;;  %v4531_v37 = vmul.f32 0.5, %v1601_v10  ;;  %v1740_v35 = vmul.f32 0.70710677, %v1612_v14 }
 0x242   :  { %v1475_v28 = vmul.f32 %v2973_v48, %v4073_v57  ;;  %v1732_v29 = vmul.f32 0.70710677, %v1604_v1  ;;  %v1300_v54 = vmul.f32 0.125, %v1188_v47  ;;  %v4543_v2 = vmul.f32 0.5, %v1604_v1  ;;  %v5259_v48 = vld [vmem:[#allocation23_spill] sm:$0xff] }
 0x243   :  { %2990 = vrsqrt.f32 %v1355_v61  ;;  %v4529_v61 = vadd.f32 %v4370_v30, %v1535_v32 }
 0x244   :  { %v2975_v13 = vpop.eup %2974  ;;  %v1194_v15 = vpop.xlane.xlu1 %1193  ;;  %2992 = verf.f32 %v1736_v31 }
 0x245   :  { %v2977_v42 = vpop.eup %2976  ;;  %2994 = verf.f32 %v1727_v18  ;;  %v1482_v53 = vmul.f32 %v2975_v13, %v4117_v59  ;;  %v4536_v59 = vmul.f32 0.5, %v4515_v46  ;;  %v1731_v47 = vmul.f32 0.70710677, %v4529_v61 }
 0x246   :  { %v2979_v62 = vpop.eup %2978  ;;  %2996 = verf.f32 %v1738_v17  ;;  %v1856_v41 = vadd.f32 1.0, %v2977_v42  ;;  %v4539_v17 = vmul.f32 %v1853_v19, %v4482_v21  ;;  %v1543_v21 = vmul.f32 %v4358_v20, %v1475_v28 }
 0x247   :  { %v2981_v6 = vpop.eup %2980  ;;  %2998 = verf.f32 %v1730_v5  ;;  %v4541_v5 = vmul.f32 0.5, %v1612_v14  ;;  %v1550_v57 = vmul.f32 %v4358_v20, %v1482_v53  ;;  %v1364_v19 = vadd.f32 1e-05, %v1300_v54 }
 0x248   :  { %v2983_v18 = vpop.eup %2982  ;;  %v1191_v31 = vpop.xlane.xlu1 %1190  ;;  %3000 = verf.f32 %v1729_v4  ;;  %v1480_v13 = vmul.f32 %v2981_v6, %v5259_v48  ;;  %v4552_v53 = vmul.f32 %v1856_v41, %v1664_v23  ;;  %v5261_v6 = vld [vmem:[#allocation24_spill] sm:$0xff]  ;;  %v4607_v26 = vmul.f32 0.5, %v4529_v61 }
 0x249   :  { %v1481_v38 = vmul.f32 %v2983_v18, %v4125_v16  ;;  %v2985_v50 = vpop.eup %2984  ;;  %v5260_v16 = vld [vmem:[#allocation21_spill] sm:$0xff]  ;;  %v1302_v18 = vmul.f32 0.125, %v1194_v15  ;;  %3002 = verf.f32 %v1740_v35  ;;  %v1301_v42 = vmul.f32 0.125, %v1191_v31 }
 0x24a   :  { %v2987_v10 = vpop.eup %2986  ;;  %v1478_v32 = vmul.f32 %v2979_v62, %v5260_v16  ;;  %3004 = verf.f32 %v1732_v29  ;;  %v4557_v15 = vadd.f32 %v4370_v30, %v1550_v57  ;;  %v1548_v35 = vmul.f32 %v4358_v20, %v1480_v13  ;;  %v5262_v16 = vld [vmem:[#allocation22_spill] sm:$0xff] }
 0x24b   :  { %v1549_v1 = vmul.f32 %v4358_v20, %v1481_v38  ;;  %v1479_v48 = vmul.f32 %v2987_v10, %v5261_v6  ;;  %v1477_v28 = vmul.f32 %v2985_v50, %v5262_v16  ;;  %v1366_v60 = vadd.f32 1e-05, %v1302_v18 }
 0x24c   :  { %v2989_v4 = vpop.eup %2988  ;;  %v1200_v8 = vpop.xlane.xlu1 %1199  ;;  %3006 = verf.f32 %v1731_v47  ;;  %v3222_v38 = vmov 1983009808   ;;  %v1365_v41 = vadd.f32 1e-05, %v1301_v42  ;;  %v4574_v16 = vadd.f32 %v4370_v30, %v1548_v35 }
 0x24d   :  { %v1484_v14 = vmul.f32 %v2989_v4, %v4134_v45  ;;  %v1304_v45 = vmul.f32 0.125, %v1200_v8  ;;  %v1977_v54 = vunpack.c.l.s4 %v3222_v38  ;;  %v5263_v4 = vld [vmem:[#allocation25_spill] sm:$0xff]  ;;  %v4566_v57 = vadd.f32 %v4370_v30, %v1549_v1 }
 0x24e   :  { %3008 = vrsqrt.f32 %v1364_v19  ;;  %v1547_v50 = vmul.f32 %v4358_v20, %v1479_v48  ;;  %v1546_v8 = vmul.f32 %v4358_v20, %v1478_v32  ;;  %v1611_v19 = vadd.f32 %v4370_v30, %v1543_v21  ;;  %v4580_v32 = vld [vmem:[%s5125_s1] sm:$0xff] }
 0x24f   :  { %v1552_v62 = vmul.f32 %v4358_v20, %v1484_v14  ;;  %v1978_v18 = vunpack.c.0.s8 %v1977_v54  ;;  %3010 = vrsqrt.f32 %v1366_v60  ;;  %v1368_v1 = vadd.f32 1e-05, %v1304_v45 }
 0x250   :  { %v2991_v31 = vpop.eup %2990  ;;  %v1197_v29 = vpop.xlane.xlu1 %1196  ;;  %3012 = vrsqrt.f32 %v1365_v41  ;;  %v1745_v35 = vmul.f32 0.70710677, %v4566_v57  ;;  %v1545_v60 = vmul.f32 %v4358_v20, %v1477_v28  ;;  %v4591_v21 = vadd.f32 %v4370_v30, %v1547_v50 }
 0x251   :  { %v2993_v23 = vpop.eup %2992  ;;  %v4562_v10 = vadd.f32 %v4370_v30, %v1552_v62  ;;  %v1483_v14 = vmul.f32 %v2991_v31, %v5263_v4  ;;  %v1746_v62 = vmul.f32 0.70710677, %v4557_v15  ;;  %v4583_v48 = vsub.s32 %v1978_v18, %v5243_v11 }
 0x252   :  { %v2995_v13 = vpop.eup %2994  ;;  %v1614_v4 = vadd.f32 %v4370_v30, %v1546_v8  ;;  %v1744_v41 = vmul.f32 0.70710677, %v4574_v16  ;;  %v1303_v28 = vmul.f32 0.125, %v1197_v29  ;;  %v1539_v50 = vmul.f32 %v4358_v20, %v4495_v7 }
 0x253   :  { %v2997_v47 = vpop.eup %2996  ;;  %v1748_v6 = vmul.f32 0.70710677, %v4562_v10  ;;  %v1551_v42 = vmul.f32 %v4358_v20, %v1483_v14  ;;  %5264 = vst [vmem:[#allocation20_spill] sm:$0xff] %v4583_v48  ;;  %v1737_v14 = vmul.f32 0.70710677, %v4515_v46  ;;  %v1613_v46 = vadd.f32 %v4370_v30, %v1545_v60 }
 0x254   :  { %v2999_v31 = vpop.eup %2998  ;;  %v1206_v38 = vpop.xlane.xlu1 %1205  ;;  %v1739_v8 = vmul.f32 0.70710677, %v1611_v19  ;;  %v1743_v29 = vmul.f32 0.70710677, %v4591_v21  ;;  %v1866_v7 = vadd.f32 1.0, %v2997_v47  ;;  %v1864_v60 = vadd.f32 1.0, %v2993_v23 }
 0x255   :  { %v4586_v54 = vadd.f32 %v4370_v30, %v1551_v42  ;;  %v3001_v45 = vpop.eup %3000  ;;  %3014 = verf.f32 %v1748_v6  ;;  %v4599_v42 = vrot.slane %v4580_v32, %v4583_v48  ;;  %v1855_v6 = vadd.f32 1.0, %v2995_v13 }
 0x256   :  { %3016 = verf.f32 %v1746_v62  ;;  %v3003_v51 = vpop.eup %3002  ;;  %v1306_v33 = vmul.f32 0.125, %v1206_v38  ;;  %v1858_v13 = vadd.f32 1.0, %v2999_v31  ;;  %v4611_v48 = vadd.f32 %v4370_v30, %v1539_v50 }
 0x257   :  { %v1747_v18 = vmul.f32 0.70710677, %v4586_v54  ;;  %5265 = vst [vmem:[#allocation23_spill] sm:$0xff] %v4599_v42  ;;  %3018 = vrsqrt.f32 %v1368_v1  ;;  %v1990_v62 = vcombine.high %v4599_v42, %v4599_v42  ;;  %v3005_v9 = vpop.eup %3004  ;;  %v1742_v1 = vmul.f32 0.70710677, %v1614_v4 }
 0x258   :  { %v1203_v11 = vpop.xlane.xlu1 %1202  ;;  %3020 = verf.f32 %v1745_v35  ;;  %v1367_v35 = vadd.f32 1e-05, %v1303_v28  ;;  %v4614_v38 = vmul.f32 %v1855_v6, %v4510_v12  ;;  %v1741_v61 = vmul.f32 0.70710677, %v1613_v46 }
 0x259   :  { %3022 = verf.f32 %v1747_v18  ;;  %2060 = vmatprep.mubr.f32.mxu1 %v1990_v62  ;;  %v3007_v42 = vpop.eup %3006  ;;  %v4616_v18 = vmul.f32 0.5, %v1611_v19  ;;  %v1370_v31 = vadd.f32 1e-05, %v1306_v33  ;;  %v1857_v47 = vadd.f32 1.0, %v3001_v45 }
 0x25a   :  { %3024 = verf.f32 %v1744_v41  ;;  %v1305_v41 = vmul.f32 0.125, %v1203_v11  ;;  %v1236_v43 = vpop.xlane.xlu0 %1235  ;;  %v4621_v23 = vmul.f32 0.5, %v1614_v4  ;;  %v4624_v50 = vmul.f32 %v1866_v7, %v4520_v25 }
 0x25b   :  { %3026 = verf.f32 %v1737_v14  ;;  %v3009_v28 = vpop.eup %3008  ;;  %v4619_v14 = vmul.f32 %v1858_v13, %v4523_v24  ;;  %v4626_v19 = vmul.f32 0.5, %v1613_v46  ;;  %v4629_v33 = vmul.f32 %v1864_v60, %v4504_v22 }
 0x25c   :  { %v1212_v3 = vpop.xlane.xlu1 %1211  ;;  %3028 = verf.f32 %v1739_v8  ;;  %v1735_v11 = vmul.f32 0.70710677, %v4611_v48  ;;  %v3011_v45 = vpop.eup %3010  ;;  %v1860_v8 = vadd.f32 1.0, %v3005_v9  ;;  %v1734_v24 = vmul.f32 0.70710677, %v4455_v40  ;;  %v5267_v9 = vld [vmem:[#allocation26_spill] sm:$0xff] }
 0x25d   :  { %3030 = verf.f32 %v1743_v29  ;;  %5266 = vst [vmem:[#allocation21_spill] sm:$0xff] %v4629_v33  ;;  %v1308_v6 = vmul.f32 0.125, %v1212_v3  ;;  %v3013_v4 = vpop.eup %3012  ;;  %v1369_v62 = vadd.f32 1e-05, %v1305_v41  ;;  %v4634_v29 = vmul.f32 %v1857_v47, %v4531_v37 }
 0x25e   :  { %3032 = verf.f32 %v1742_v1  ;;  %v1537_v46 = vmul.f32 %v4358_v20, %v4458_v44  ;;  %v1859_v13 = vadd.f32 1.0, %v3007_v42  ;;  %v4639_v1 = vmul.f32 0.5, %v4574_v16  ;;  %v5268_v42 = vld [vmem:[#allocation27_spill] sm:$0xff] }
 0x25f   :  { %3034 = vrsqrt.f32 %v1367_v35  ;;  %v4641_v3 = vadd.f32 1.0, %v3003_v51  ;;  %v1492_v7 = vmul.f32 %v3009_v28, %v5267_v9  ;;  %v1372_v41 = vadd.f32 1e-05, %v1308_v6 }
 0x260   :  { %v1209_v12 = vpop.xlane.xlu1 %1208  ;;  %3036 = verf.f32 %v1741_v61  ;;  %v1684_v61 = vmul.f32 0.5, %v4562_v10  ;;  %v1924_v44 = vmul.f32 %v1860_v8, %v4543_v2  ;;  %v1494_v16 = vmul.f32 %v3011_v45, %v5268_v42 }
 0x261   :  { %3038 = vrsqrt.f32 %v1370_v31  ;;  %v1307_v35 = vmul.f32 0.125, %v1209_v12  ;;  %v4650_v12 = vadd.f32 %v4370_v30, %v1537_v46  ;;  %v1316_v58 = vmul.f32 0.125, %v1236_v43 }
 0x262   :  { %v1242_v25 = vpop.xlane.xlu0 %1241  ;;  %v3015_v22 = vpop.eup %3014  ;;  %3040 = verf.f32 %v1735_v11  ;;  %v1683_v10 = vmul.f32 0.5, %v4586_v54  ;;  %v1923_v11 = vmul.f32 %v1859_v13, %v4607_v26  ;;  %v1560_v6 = vmul.f32 %v4358_v20, %v1492_v7 }
 0x263   :  { %v3017_v40 = vpop.eup %3016  ;;  %v1876_v37 = vadd.f32 1.0, %v3015_v22  ;;  %3042 = verf.f32 %v1734_v24  ;;  %v1318_v51 = vmul.f32 0.125, %v1242_v25  ;;  %v1371_v8 = vadd.f32 1e-05, %v1307_v35 }
 0x264   :  { %v4644_v60 = vpop.xlane.xlu1 %1184  ;;  %v3019_v31 = vpop.eup %3018  ;;  %3044 = vrsqrt.f32 %v1369_v62  ;;  %v1874_v24 = vadd.f32 1.0, %v3017_v40  ;;  %v5269_v62 = vld [vmem:[#allocation28_spill] sm:$0xff]  ;;  %v1682_v43 = vmul.f32 0.5, %v4557_v15  ;;  %v1562_v26 = vmul.f32 %v4358_v20, %v1494_v16 }
 0x265   :  { %v3021_v47 = vpop.eup %3020  ;;  %v1940_v28 = vmul.f32 %v1876_v37, %v1684_v61  ;;  %v1493_v25 = vmul.f32 %v3013_v4, %v5269_v62  ;;  %3046 = vrsqrt.f32 %v1372_v41  ;;  %v5270_v61 = vld [vmem:[#allocation29_spill] sm:$0xff]  ;;  %v1382_v7 = vadd.f32 1e-05, %v1318_v51 }
 0x266   :  { %v1239_v33 = vpop.xlane.xlu0 %1238  ;;  %v3023_v9 = vpop.eup %3022  ;;  %v1496_v54 = vmul.f32 %v3019_v31, %v5270_v61  ;;  %v1873_v42 = vadd.f32 1.0, %v3021_v47  ;;  %v1733_v40 = vmul.f32 0.70710677, %v4650_v12  ;;  %v1380_v4 = vadd.f32 1e-05, %v1316_v58  ;;  %v5271_v61 = vld [vmem:[#allocation30_spill] sm:$0xff] }
 0x267   :  { %v3025_v2 = vpop.eup %3024  ;;  %2647 = vmatprep.subr.mxu1 %v1940_v28  ;;  %v1875_v45 = vadd.f32 1.0, %v3023_v9  ;;  %v1681_v41 = vmul.f32 0.5, %v4566_v57  ;;  %v4664_v9 = vadd.f32 %v4370_v30, %v1560_v6  ;;  %3048 = vrsqrt.f32 %v1371_v8 }
 0x268   :  { %v3027_v22 = vpop.eup %3026  ;;  %2648 = vmatpush3.msra.mxu1 %v1924_v44  ;;  %v4656_v46 = vpop.xlane.xlu1 %1181  ;;  %v1872_v44 = vadd.f32 1.0, %v3025_v2  ;;  %v1317_v31 = vmul.f32 0.125, %v1239_v33  ;;  %v1938_v16 = vmul.f32 %v1874_v24, %v1682_v43  ;;  %v1561_v51 = vmul.f32 %v4358_v20, %v1493_v25 }
 0x269   :  { %v3029_v13 = vpop.eup %3028  ;;  %v1939_v35 = vmul.f32 %v1875_v45, %v1683_v10  ;;  %v1865_v47 = vadd.f32 1.0, %v3027_v22  ;;  %v4668_v10 = vmul.f32 0.5, %v4611_v48  ;;  %v1564_v58 = vmul.f32 %v4358_v20, %v1496_v54 }
 0x26a   :  { %v1248_v37 = vpop.xlane.xlu0 %1247  ;;  %v3031_v28 = vpop.eup %3030  ;;  %v4672_v57 = vadd.f32 %v4370_v30, %v1562_v26  ;;  %3050 = vrsqrt.f32 %v1382_v7  ;;  %v1937_v33 = vmul.f32 %v1873_v42, %v1681_v41  ;;  %v1679_v8 = vmul.f32 0.5, %v4591_v21 }
 0x26b   :  { %v3033_v15 = vpop.eup %3032  ;;  %2649 = vmatprep.subr.mxu1 %v1939_v35  ;;  %v1871_v45 = vadd.f32 1.0, %v3031_v28  ;;  %v1936_v48 = vmul.f32 %v1872_v44, %v4639_v1  ;;  %3052 = verf.f32 %v1733_v40  ;;  %v1756_v22 = vmul.f32 0.70710677, %v4664_v9  ;;  %v5272_v44 = vld [vmem:[#allocation31_spill] sm:$0xff] }
 0x26c   :  { %v3035_v62 = vpop.eup %3034  ;;  %2650 = vmatpush3.msra.mxu1 %v1923_v11  ;;  %v4675_v25 = vpop.xlane.xlu1 %1178  ;;  %v1870_v11 = vadd.f32 1.0, %v3033_v15  ;;  %3054 = vrsqrt.f32 %v1380_v4  ;;  %v1381_v43 = vadd.f32 1e-05, %v1317_v31  ;;  %v4682_v26 = vadd.f32 %v4370_v30, %v1561_v51 }
 0x26d   :  { %v3037_v6 = vpop.eup %3036  ;;  %2651 = vmatprep.subr.mxu1 %v1938_v16  ;;  %v1495_v54 = vmul.f32 %v3035_v62, %v5271_v61  ;;  %v4688_v1 = vadd.f32 %v4370_v30, %v1564_v58  ;;  %v1758_v35 = vmul.f32 0.70710677, %v4672_v57  ;;  %v1299_v40 = vmul.f32 0.125, %v4644_v60 }
 0x26e   :  { %v1245_v2 = vpop.xlane.xlu0 %1244  ;;  %v3039_v24 = vpop.eup %3038  ;;  %2652 = vmatpush3.msra.mxu1 %v4619_v14  ;;  %v1869_v7 = vadd.f32 1.0, %v3037_v6  ;;  %v1932_v14 = vmul.f32 %v4641_v3, %v4541_v5  ;;  %v1935_v4 = vmul.f32 %v1871_v45, %v1679_v8  ;;  %v4693_v41 = vmul.f32 %v1865_v47, %v4536_v59 }
 0x26f   :  { %2653 = vmatprep.subr.mxu1 %v1937_v33  ;;  %v3041_v21 = vpop.eup %3040  ;;  %v1934_v5 = vmul.f32 %v1870_v11, %v4621_v23  ;;  %v1867_v3 = vadd.f32 1.0, %v3029_v13  ;;  %3056 = verf.f32 %v1756_v22  ;;  %v1320_v16 = vmul.f32 0.125, %v1248_v37 }
 0x270   :  { %2654 = vmatpush3.msra.mxu1 %v4634_v29  ;;  %v3043_v42 = vpop.eup %3042  ;;  %v1498_v29 = vmul.f32 %v3039_v24, %v5272_v44  ;;  %3058 = vrsqrt.f32 %v1381_v43  ;;  %v1563_v60 = vmul.f32 %v4358_v20, %v1495_v54  ;;  %v1757_v51 = vmul.f32 0.70710677, %v4682_v26  ;;  %v4700_v62 = vpop.xlane.xlu1 %1175 }
 0x271   :  { %2655 = vmatprep.subr.mxu1 %v1936_v48  ;;  %v3045_v15 = vpop.eup %3044  ;;  %v1933_v47 = vmul.f32 %v1869_v7, %v4626_v19  ;;  %3060 = verf.f32 %v1758_v35  ;;  %v1363_v13 = vadd.f32 1e-05, %v1299_v40  ;;  %v1319_v58 = vmul.f32 0.125, %v1245_v2 }
 0x272   :  { %v1254_v28 = vpop.xlane.xlu0 %1253  ;;  %2656 = vmatpush3.msra.mxu1 %v4552_v53  ;;  %v1760_v53 = vmul.f32 0.70710677, %v4688_v1  ;;  %v3047_v23 = vpop.eup %3046  ;;  %v1566_v6 = vmul.f32 %v4358_v20, %v1498_v29  ;;  %v1497_v33 = vmul.f32 %v3045_v15, %v4191_v34  ;;  %v4710_v19 = vmul.f32 0.5, %v4650_v12 }
 0x273   :  { %v1322_v31 = vmul.f32 0.125, %v1254_v28  ;;  %2657 = vmatprep.subr.mxu1 %v1935_v4  ;;  %v1384_v45 = vadd.f32 1e-05, %v1320_v16  ;;  %v1863_v24 = vadd.f32 1.0, %v3041_v21  ;;  %v4713_v2 = vadd.f32 %v4370_v30, %v1563_v60 }
 0x274   :  { %2658 = vmatpush3.msra.mxu1 %v4614_v38  ;;  %v1931_v38 = vmul.f32 %v1867_v3, %v4616_v18  ;;  %v3049_v48 = vpop.eup %3048  ;;  %v1298_v11 = vmul.f32 0.125, %v4656_v46  ;;  %v1383_v18 = vadd.f32 1e-05, %v1319_v58  ;;  %v4719_v22 = vadd.f32 %v4370_v30, %v1566_v6  ;;  %v1173_v54 = vpop.xlane.xlu1 %1172  ;;  %v5276_v58 = vld [vmem:[#allocation20_spill] sm:$0xff] }
 0x275   :  { %v1386_v59 = vadd.f32 1e-05, %v1322_v31  ;;  %2659 = vmatprep.subr.mxu1 %v1934_v5  ;;  %v1565_v43 = vmul.f32 %v4358_v20, %v1497_v33  ;;  %v1862_v46 = vadd.f32 1.0, %v3043_v42  ;;  %v1927_v7 = vmul.f32 %v1863_v24, %v4668_v10 }
 0x276   :  { %v1251_v37 = vpop.xlane.xlu0 %1250  ;;  %2660 = vmatpush3.msra.mxu1 %v4526_v56  ;;  %v1500_v56 = vmul.f32 %v3047_v23, %v4202_v52  ;;  %v1975_v52 = vcombine.high %v4580_v32, %v4580_v32  ;;  %v1759_v35 = vmul.f32 0.70710677, %v4713_v2  ;;  %v1362_v28 = vadd.f32 1e-05, %v1298_v11  ;;  %v5275_v23 = vld [vmem:[#allocation19_spill] sm:$0xff] }
 0x277   :  { %3062 = vrsqrt.f32 %v1386_v59  ;;  %v1321_v8 = vmul.f32 0.125, %v1251_v37  ;;  %2661 = vmatprep.subr.mxu1 %v1933_v47  ;;  %v3051_v61 = vpop.eup %3050  ;;  %v1297_v4 = vmul.f32 0.125, %v4675_v25  ;;  %v1762_v42 = vmul.f32 0.70710677, %v4719_v22  ;;  %v5274_v59 = vld [vmem:[#allocation21_spill] sm:$0xff] }
 0x278   :  { %3064 = verf.f32 %v1757_v51  ;;  %2662 = vmatpush3.msra.mxu1 %v4539_v17  ;;  %v3053_v17 = vpop.eup %3052  ;;  %v4734_v10 = vadd.f32 %v4370_v30, %v1565_v43  ;;  %v1926_v25 = vmul.f32 %v1862_v46, %v4471_v36  ;;  %v1296_v31 = vmul.f32 0.125, %v4700_v62  ;;  %v1170_v16 = vpop.xlane.xlu1 %1169 }
 0x279   :  { %v1385_v34 = vadd.f32 1e-05, %v1321_v8  ;;  %3066 = verf.f32 %v1760_v53  ;;  %2663 = vmatprep.subr.mxu1 %v1932_v14  ;;  %v1499_v14 = vmul.f32 %v3049_v48, %v4215_v63  ;;  %v3055_v40 = vpop.eup %3054  ;;  %v1510_v63 = vmul.f32 %v3051_v61, %v4219_v27  ;;  %v5279_v61 = vld [vmem:[#allocation15_spill] sm:$0xff] }
 0x27a   :  { %3068 = vrsqrt.f32 %v1363_v13  ;;  %v1260_v12 = vpop.xlane.xlu0 %1259  ;;  %2664 = vmatpush3.msra.mxu1 %v4507_v0  ;;  %v1568_v0 = vmul.f32 %v4358_v20, %v1500_v56  ;;  %v1508_v5 = vmul.f32 %v3055_v40, %v4195_v49  ;;  %v1361_v27 = vadd.f32 1e-05, %v1297_v4  ;;  %v5278_v56 = vld [vmem:[#allocation43_spill] sm:$0xff] }
 0x27b   :  { %3070 = vrsqrt.f32 %v1385_v34  ;;  %v1324_v21 = vmul.f32 0.125, %v1260_v12  ;;  %2665 = vmatprep.subr.mxu1 %v1931_v38  ;;  %v1295_v62 = vmul.f32 0.125, %v1173_v54  ;;  %v1761_v47 = vmul.f32 0.70710677, %v4734_v10  ;;  %v5277_v38 = vld [vmem:[#allocation34_spill] sm:$0xff] }
 0x27c   :  { %3072 = vrsqrt.f32 %v1384_v45  ;;  %2666 = vmatpush3.msra.mxu1 %v4518_v39  ;;  %v1861_v39 = vadd.f32 1.0, %v3053_v17  ;;  %v4739_v15 = vpop.eup %3056  ;;  %v4747_v36 = vadd.f32 %v4370_v30, %v1568_v0  ;;  %v1578_v49 = vmul.f32 %v4358_v20, %v1510_v63 }
 0x27d   :  { %v1388_v44 = vadd.f32 1e-05, %v1324_v21  ;;  %3074 = vrsqrt.f32 %v1383_v18  ;;  %2667 = vmatprep.subr.mxu1 %v4624_v50  ;;  %v1567_v50 = vmul.f32 %v4358_v20, %v1499_v14  ;;  %v3059_v3 = vpop.eup %3058  ;;  %v4757_v37 = vrot.slane %v1975_v52, %v5276_v58  ;;  %v1167_v52 = vpop.xlane.xlu1 %1166  ;;  %v5281_v14 = vld [vmem:[#allocation9_spill] sm:$0xff] }
 0x27e   :  { %v1257_v32 = vpop.xlane.xlu0 %1256  ;;  %2668 = vmatpush3.msra.mxu1 %v4475_v55  ;;  %v5273_v55 = vld [vmem:[#allocation44_spill] sm:$0xff]  ;;  %v4749_v51 = vpop.eup %3060  ;;  %v1925_v13 = vmul.f32 %v1861_v39, %v4710_v19  ;;  %v1360_v33 = vadd.f32 1e-05, %v1296_v31  ;;  %v1509_v45 = vmul.f32 %v3059_v3, %v5277_v38  ;;  %v1576_v24 = vmul.f32 %v4358_v20, %v1508_v5  ;;  %v5284_v5 = vld [vmem:[#allocation23_spill] sm:$0xff] }
 0x27f   :  { %3076 = vrsqrt.f32 %v1388_v44  ;;  %v1323_v29 = vmul.f32 0.125, %v1257_v32  ;;  %2669 = vmatprep.subr.mxu1 %v4693_v41  ;;  %v4760_v8 = vadd.f32 %v4370_v30, %v1567_v50  ;;  %v1294_v11 = vmul.f32 0.125, %v1170_v16 }
 0x280   :  { %3078 = verf.f32 %v1759_v35  ;;  %2670 = vmatpush3.msra.mxu1 %v5273_v55  ;;  %v1764_v19 = vmul.f32 0.70710677, %v4747_v36  ;;  %v1359_v12 = vadd.f32 1e-05, %v1295_v62  ;;  %v4772_v21 = vadd.f32 %v4370_v30, %v1578_v49  ;;  %v5282_v35 = vld [vmem:[#allocation18_spill] sm:$0xff] }
 0x281   :  { %3080 = vrsqrt.f32 %v1362_v28  ;;  %v1387_v60 = vadd.f32 1e-05, %v1323_v29  ;;  %2671 = vmatprep.subr.mxu1 %v5274_v59  ;;  %v1909_v40 = vmul.f32 %v5282_v35, %v5281_v14  ;;  %v1991_v28 = vcombine.high %v4757_v37, %v4757_v37 }
 0x282   :  { %v1233_v41 = vpop.xlane.xlu0 %1232  ;;  %3082 = verf.f32 %v1762_v42  ;;  %2672 = vmatpush3.msra.mxu1 %v5275_v23  ;;  %v1763_v44 = vmul.f32 0.70710677, %v4760_v8  ;;  %v1577_v0 = vmul.f32 %v4358_v20, %v1509_v45  ;;  %v4782_v32 = vadd.f32 %v4370_v30, %v1576_v24 }
 0x283   :  { %3084 = vrsqrt.f32 %v1387_v60  ;;  %v1315_v53 = vmul.f32 0.125, %v1233_v41  ;;  %2673 = vmatprep.subr.mxu1 %v1927_v7  ;;  %v5280_v7 = vld [vmem:[#allocation17_spill] sm:$0xff]  ;;  %v1358_v63 = vadd.f32 1e-05, %v1294_v11  ;;  %v1293_v31 = vmul.f32 0.125, %v1167_v52  ;;  %v5285_v41 = vld [vmem:[#allocation36_spill] sm:$0xff] }
 0x284   :  { %v3063_v6 = vpop.eup %3062  ;;  %3086 = vrsqrt.f32 %v1361_v27  ;;  %2674 = vmatpush3.msra.mxu1 %v5278_v56  ;;  %v1774_v27 = vmul.f32 0.70710677, %v4772_v21  ;;  %v4789_v55 = vmul.f32 0.5, %v4688_v1  ;;  %v4792_v62 = vmul.f32 0.5, %v4713_v2  ;;  %v5287_v11 = vld [vmem:[#allocation38_spill] sm:$0xff] }
 0x285   :  { %v4764_v48 = vpop.eup %3064  ;;  %v1379_v34 = vadd.f32 1e-05, %v1315_v53  ;;  %2675 = vmatprep.subr.mxu1 %v1926_v25  ;;  %v1514_v54 = vmul.f32 %v3063_v6, %v5279_v61  ;;  %3088 = verf.f32 %v1761_v47  ;;  %v5283_v25 = vld [vmem:[#allocation40_spill] sm:$0xff]  ;;  %v4796_v49 = vadd.f32 %v4370_v30, %v1577_v0  ;;  %v5286_v6 = vld [vmem:[#allocation41_spill] sm:$0xff] }
 0x286   :  { %v4768_v18 = vpop.eup %3066  ;;  %v1230_v43 = vpop.xlane.xlu0 %1229  ;;  %2676 = vmatpush3.msra.mxu1 %v5280_v7  ;;  %v1772_v53 = vmul.f32 0.70710677, %v4782_v32  ;;  %v1357_v38 = vadd.f32 1e-05, %v1293_v31 }
 0x287   :  { %v3069_v46 = vpop.eup %3068  ;;  %3090 = vrsqrt.f32 %v1379_v34  ;;  %v1314_v17 = vmul.f32 0.125, %v1230_v43  ;;  %2677 = vmatprep.subr.mxu1 %v1925_v13  ;;  %v1582_v3 = vmul.f32 %v4358_v20, %v1514_v54  ;;  %v4809_v43 = vmul.f32 0.5, %v4719_v22 }
 0x288   :  { %v3071_v4 = vpop.eup %3070  ;;  %3092 = vrsqrt.f32 %v1360_v33  ;;  %2678 = vmatpush3.msra.mxu1 %v1909_v40  ;;  %v1773_v52 = vmul.f32 0.70710677, %v4796_v49  ;;  %v5289_v40 = vld [vmem:[#allocation42_spill] sm:$0xff] }
 0x289   :  { %v3073_v42 = vpop.eup %3072  ;;  %v1378_v29 = vadd.f32 1e-05, %v1314_v17  ;;  %3094 = verf.f32 %v1764_v19  ;;  %v1513_v39 = vmul.f32 %v3071_v4, %v5283_v25  ;;  %2061 = vmatmul.mubr.f32.vlgmr.msra.gmra.mxu1 %v5284_v5  ;;  %v4804_v24 = vadd.f32 %v4370_v30, %v1582_v3  ;;  %v5288_v17 = vld [vmem:[#allocation32_spill] sm:$0xff]  ;;  %v5290_v3 = vld [vmem:[#allocation33_spill] sm:$0xff] }
 0x28a   :  { %3096 = vrsqrt.f32 %v1359_v12  ;;  %v1227_v50 = vpop.xlane.xlu0 %1226  ;;  %v3075_v16 = vpop.eup %3074  ;;  %2130 = vmatprep.mubr.f32.mxu1 %v1991_v28  ;;  %v1512_v47 = vmul.f32 %v3073_v42, %v5285_v41  ;;  %v1491_v7 = vmul.f32 %v3069_v46, %v5288_v17  ;;  %v4823_v42 = vmul.f32 0.5, %v4734_v10 }
 0x28b   :  { %3098 = vrsqrt.f32 %v1378_v29  ;;  %v1313_v60 = vmul.f32 0.125, %v1227_v50  ;;  %v1581_v33 = vmul.f32 %v4358_v20, %v1513_v39  ;;  %v1511_v34 = vmul.f32 %v3075_v16, %v5287_v11 }
 0x28c   :  { %v3077_v59 = vpop.eup %3076  ;;  %3100 = verf.f32 %v1763_v44  ;;  %v1580_v54 = vmul.f32 %v4358_v20, %v1512_v47  ;;  %v1778_v0 = vmul.f32 0.70710677, %v4804_v24  ;;  %v1700_v39 = vmul.f32 0.5, %v4747_v36 }
 0x28d   :  { %v4799_v23 = vpop.eup %3078  ;;  %3102 = vrsqrt.f32 %v1358_v63  ;;  %v1377_v13 = vadd.f32 1e-05, %v1313_v60  ;;  %v1516_v1 = vmul.f32 %v3077_v59, %v5286_v6  ;;  %v4819_v4 = vadd.f32 %v4370_v30, %v1581_v33 }
 0x28e   :  { %v3081_v2 = vpop.eup %3080  ;;  %v1224_v45 = vpop.xlane.xlu0 %1223  ;;  %3104 = verf.f32 %v1774_v27  ;;  %v1579_v63 = vmul.f32 %v4358_v20, %v1511_v34  ;;  %v4830_v5 = vadd.f32 %v4370_v30, %v1580_v54  ;;  %v1559_v59 = vmul.f32 %v4358_v20, %v1491_v7 }
 0x28f   :  { %v3083_v56 = vpop.eup %3082  ;;  %3106 = vrsqrt.f32 %v1377_v13  ;;  %v1312_v19 = vmul.f32 0.125, %v1224_v45  ;;  %v1584_v12 = vmul.f32 %v4358_v20, %v1516_v1  ;;  %v1490_v27 = vmul.f32 %v3081_v2, %v5290_v3  ;;  %v5291_v13 = vld [vmem:[#allocation14_spill] sm:$0xff] }
 0x290   :  { %v3085_v61 = vpop.eup %3084  ;;  %3108 = verf.f32 %v1772_v53  ;;  %v1777_v60 = vmul.f32 0.70710677, %v4819_v4  ;;  %v4839_v53 = vadd.f32 %v4370_v30, %v1579_v63  ;;  %v4843_v2 = vmul.f32 0.5, %v4760_v8  ;;  %v5293_v8 = vld [vmem:[#allocation12_spill] sm:$0xff] }
 0x291   :  { %v1376_v14 = vadd.f32 1e-05, %v1312_v19  ;;  %v4815_v35 = vadd.f32 %v4370_v30, %v1584_v12  ;;  %v1515_v28 = vmul.f32 %v3085_v61, %v5289_v40  ;;  %v3087_v44 = vpop.eup %3086  ;;  %3110 = vrsqrt.f32 %v1357_v38  ;;  %v5292_v12 = vld [vmem:[#allocation35_spill] sm:$0xff] }
 0x292   :  { %v1221_v22 = vpop.xlane.xlu0 %1220  ;;  %v3089_v46 = vpop.eup %3088  ;;  %v4846_v38 = vadd.f32 1.0, %v4768_v18  ;;  %v1776_v34 = vmul.f32 0.70710677, %v4830_v5  ;;  %v1558_v19 = vmul.f32 %v4358_v20, %v1490_v27  ;;  %v1489_v61 = vmul.f32 %v3087_v44, %v5292_v12 }
 0x293   :  { %3112 = vrsqrt.f32 %v1376_v14  ;;  %v1311_v29 = vmul.f32 0.125, %v1221_v22  ;;  %v1780_v25 = vmul.f32 0.70710677, %v4815_v35  ;;  %v1583_v50 = vmul.f32 %v4358_v20, %v1515_v28 }
 0x294   :  { %v3091_v31 = vpop.eup %3090  ;;  %3114 = verf.f32 %v1773_v52  ;;  %v4853_v17 = vadd.f32 %v4370_v30, %v1559_v59  ;;  %v1890_v40 = vadd.f32 1.0, %v3083_v56  ;;  %v1775_v28 = vmul.f32 0.70710677, %v4839_v53 }
 0x295   :  { %v3093_v10 = vpop.eup %3092  ;;  %v1375_v16 = vadd.f32 1e-05, %v1311_v29  ;;  %3116 = verf.f32 %v1780_v25  ;;  %v4836_v36 = vadd.f32 %v4370_v30, %v1583_v50  ;;  %v1507_v6 = vmul.f32 %v3091_v31, %v5291_v13 }
 0x296   :  { %v3095_v41 = vpop.eup %3094  ;;  %v1218_v47 = vpop.xlane.xlu0 %1217  ;;  %3118 = verf.f32 %v1778_v0  ;;  %v4861_v29 = vadd.f32 1.0, %v4799_v23  ;;  %v4865_v50 = vadd.f32 %v4370_v30, %v1558_v19  ;;  %v1557_v56 = vmul.f32 %v4358_v20, %v1489_v61 }
 0x297   :  { %v3097_v1 = vpop.eup %3096  ;;  %3120 = vrsqrt.f32 %v1375_v16  ;;  %v1310_v33 = vmul.f32 0.125, %v1218_v47  ;;  %v1779_v11 = vmul.f32 0.70710677, %v4836_v36  ;;  %v1575_v22 = vmul.f32 %v4358_v20, %v1507_v6 }
 0x298   :  { %v3099_v45 = vpop.eup %3098  ;;  %3122 = verf.f32 %v1777_v60  ;;  %v1892_v63 = vadd.f32 1.0, %v3095_v41  ;;  %v1755_v16 = vmul.f32 0.70710677, %v4853_v17  ;;  %v5294_v60 = vld [vmem:[#allocation13_spill] sm:$0xff]  ;;  %v4874_v23 = vmul.f32 %v1890_v40, %v4809_v43 }
 0x299   :  { %v3101_v54 = vpop.eup %3100  ;;  %v1374_v52 = vadd.f32 1e-05, %v1310_v33  ;;  %v1506_v7 = vmul.f32 %v3099_v45, %v5293_v8  ;;  %3124 = verf.f32 %v1779_v11  ;;  %v5295_v41 = vld [vmem:[#allocation37_spill] sm:$0xff]  ;;  %v4876_v13 = vadd.f32 1.0, %v3089_v46 }
 0x29a   :  { %v3103_v14 = vpop.eup %3102  ;;  %v1215_v18 = vpop.xlane.xlu0 %1214  ;;  %v1488_v47 = vmul.f32 %v3093_v10, %v5295_v41  ;;  %v4879_v6 = vadd.f32 %v4370_v30, %v1575_v22  ;;  %v1956_v45 = vmul.f32 %v1892_v63, %v1700_v39  ;;  %v1754_v43 = vmul.f32 0.70710677, %v4865_v50  ;;  %v5297_v10 = vld [vmem:[#allocation6_spill] sm:$0xff] }
 0x29b   :  { %v4858_v0 = vpop.eup %3104  ;;  %3126 = vrsqrt.f32 %v1374_v52  ;;  %v1309_v44 = vmul.f32 0.125, %v1215_v18  ;;  %v1574_v31 = vmul.f32 %v4358_v20, %v1506_v7  ;;  %v4888_v46 = vadd.f32 %v4370_v30, %v1557_v56  ;;  %v5298_v39 = vld [vmem:[#allocation10_spill] sm:$0xff]  ;;  %v5299_v56 = vld [vmem:[#allocation7_spill] sm:$0xff] }
 0x29c   :  { %v3107_v25 = vpop.eup %3106  ;;  %3128 = verf.f32 %v1776_v34  ;;  %v5296_v34 = vld [vmem:[#allocation39_spill] sm:$0xff]  ;;  %v1486_v52 = vmul.f32 %v3103_v14, %v5297_v10  ;;  %v1891_v7 = vadd.f32 1.0, %v3101_v54  ;;  %v1556_v40 = vmul.f32 %v4358_v20, %v1488_v47 }
 0x29d   :  { %v4868_v3 = vpop.eup %3108  ;;  %v1373_v27 = vadd.f32 1e-05, %v1309_v44  ;;  %v1505_v59 = vmul.f32 %v3107_v25, %v5294_v60  ;;  %3130 = verf.f32 %v1775_v28  ;;  %v1487_v19 = vmul.f32 %v3097_v1, %v5296_v34 }
 0x29e   :  { %v3111_v33 = vpop.eup %3110  ;;  %v4884_v61 = vadd.f32 %v4370_v30, %v1574_v31  ;;  %v1716_v28 = vmul.f32 0.5, %v4815_v35  ;;  %v1714_v22 = vmul.f32 0.5, %v4804_v24  ;;  %v1771_v44 = vmul.f32 0.70710677, %v4879_v6 }
 0x29f   :  { %3132 = vrsqrt.f32 %v1373_v27  ;;  %v1573_v11 = vmul.f32 %v4358_v20, %v1505_v59  ;;  %v1555_v54 = vmul.f32 %v4358_v20, %v1487_v19  ;;  %v1485_v27 = vmul.f32 %v3111_v33, %v5299_v56 }
 0x2a0   :  { %v3113_v12 = vpop.eup %3112  ;;  %3134 = verf.f32 %v1755_v16  ;;  %v1770_v60 = vmul.f32 0.70710677, %v4884_v61  ;;  %v1753_v35 = vmul.f32 0.70710677, %v4888_v46  ;;  %v1554_v24 = vmul.f32 %v4358_v20, %v1486_v52 }
 0x2a1   :  { %v4891_v8 = vpop.eup %3114  ;;  %v1504_v18 = vmul.f32 %v3113_v12, %v5298_v39  ;;  %v4899_v63 = vadd.f32 %v4370_v30, %v1573_v11  ;;  %3136 = verf.f32 %v1754_v43  ;;  %v4911_v47 = vadd.f32 %v4370_v30, %v1556_v40  ;;  %v5300_v11 = vld [vmem:[#allocation11_spill] sm:$0xff] }
 0x2a2   :  { %v3117_v1 = vpop.eup %3116  ;;  %v1715_v33 = vmul.f32 0.5, %v4836_v36  ;;  %v1955_v12 = vmul.f32 %v1891_v7, %v4843_v2  ;;  %3138 = verf.f32 %v1771_v44  ;;  %v1553_v40 = vmul.f32 %v4358_v20, %v1485_v27 }
 0x2a3   :  { %v3119_v25 = vpop.eup %3118  ;;  %v1908_v14 = vadd.f32 1.0, %v3117_v1  ;;  %v1572_v31 = vmul.f32 %v4358_v20, %v1504_v18  ;;  %v1769_v43 = vmul.f32 0.70710677, %v4899_v63  ;;  %v4919_v18 = vadd.f32 %v4370_v30, %v1555_v54 }
 0x2a4   :  { %v3121_v16 = vpop.eup %3120  ;;  %v1906_v52 = vadd.f32 1.0, %v3119_v25  ;;  %3140 = verf.f32 %v1770_v60  ;;  %v4924_v2 = vadd.f32 %v4370_v30, %v1554_v24  ;;  %v1752_v44 = vmul.f32 0.70710677, %v4911_v47 }
 0x2a5   :  { %v1972_v59 = vmul.f32 %v1908_v14, %v1716_v28  ;;  %v4908_v41 = vadd.f32 %v4370_v30, %v1572_v31  ;;  %v1503_v34 = vmul.f32 %v3121_v16, %v5300_v11  ;;  %v3123_v19 = vpop.eup %3122  ;;  %3142 = verf.f32 %v1753_v35  ;;  %v5301_v14 = vld [vmem:[#allocation8_spill] sm:$0xff] }
 0x2a6   :  { %v3125_v10 = vpop.eup %3124  ;;  %v1713_v56 = vmul.f32 0.5, %v4819_v4  ;;  %3144 = verf.f32 %v1769_v43  ;;  %v1751_v60 = vmul.f32 0.70710677, %v4919_v18  ;;  %v4936_v35 = vadd.f32 %v4370_v30, %v1553_v40  ;;  %v5302_v43 = vld [vmem:[#allocation16_spill] sm:$0xff] }
 0x2a7   :  { %2682 = vmatprep.subr.mxu1 %v1972_v59  ;;  %v1571_v39 = vmul.f32 %v4358_v20, %v1503_v34  ;;  %v1907_v28 = vadd.f32 1.0, %v3125_v10  ;;  %v1768_v36 = vmul.f32 0.70710677, %v4908_v41  ;;  %v1970_v11 = vmul.f32 %v1906_v52, %v1714_v22 }
 0x2a8   :  { %v3127_v1 = vpop.eup %3126  ;;  %2683 = vmatpush3.msra.mxu1 %v1956_v45  ;;  %v1905_v45 = vadd.f32 1.0, %v3123_v19  ;;  %v1712_v4 = vmul.f32 0.5, %v4830_v5  ;;  %v1749_v52 = vmul.f32 0.70710677, %v4936_v35 }
 0x2a9   :  { %v3129_v7 = vpop.eup %3128  ;;  %v4928_v25 = vadd.f32 %v4370_v30, %v1571_v39  ;;  %v1502_v31 = vmul.f32 %v3127_v1, %v5301_v14  ;;  %v1971_v54 = vmul.f32 %v1907_v28, %v1715_v33  ;;  %3146 = verf.f32 %v1768_v36 }
 0x2aa   :  { %v3131_v27 = vpop.eup %3130  ;;  %v1904_v34 = vadd.f32 1.0, %v3129_v7  ;;  %v1750_v33 = vmul.f32 0.70710677, %v4924_v2  ;;  %3148 = verf.f32 %v1752_v44  ;;  %v1969_v40 = vmul.f32 %v1905_v45, %v1713_v56 }
 0x2ab   :  { %v1767_v16 = vmul.f32 0.70710677, %v4928_v25  ;;  %v1570_v24 = vmul.f32 %v4358_v20, %v1502_v31  ;;  %2684 = vmatprep.subr.mxu1 %v1971_v54  ;;  %v1953_v1 = vmul.f32 %v4876_v13, %v4823_v42  ;;  %v1903_v22 = vadd.f32 1.0, %v3131_v27 }
 0x2ac   :  { %v3133_v59 = vpop.eup %3132  ;;  %2685 = vmatpush3.msra.mxu1 %v1955_v12  ;;  %v1968_v28 = vmul.f32 %v1904_v34, %v1712_v4  ;;  %v1711_v36 = vmul.f32 0.5, %v4839_v53  ;;  %v1902_v7 = vadd.f32 1.0, %v4858_v0  ;;  %v1952_v42 = vmul.f32 %v4846_v38, %v4789_v55 }
 0x2ad   :  { %v4941_v19 = vadd.f32 %v4370_v30, %v1570_v24  ;;  %v1501_v10 = vmul.f32 %v3133_v59, %v5302_v43  ;;  %v3135_v39 = vpop.eup %3134  ;;  %2686 = vmatprep.subr.mxu1 %v1970_v11  ;;  %3150 = verf.f32 %v1767_v16  ;;  %v1710_v14 = vmul.f32 0.5, %v4772_v21 }
 0x2ae   :  { %2687 = vmatpush3.msra.mxu1 %v4874_v23  ;;  %3152 = verf.f32 %v1751_v60  ;;  %v3137_v44 = vpop.eup %3136  ;;  %v1886_v23 = vadd.f32 1.0, %v4749_v51  ;;  %v1694_v53 = vmul.f32 0.5, %v4672_v57  ;;  %v1901_v0 = vadd.f32 1.0, %v4891_v8 }
 0x2af   :  { %v1766_v12 = vmul.f32 0.70710677, %v4941_v19  ;;  %v1569_v5 = vmul.f32 %v4358_v20, %v1501_v10  ;;  %2688 = vmatprep.subr.mxu1 %v1969_v40  ;;  %3154 = verf.f32 %v1750_v33  ;;  %v1967_v20 = vmul.f32 %v1903_v22, %v1711_v36  ;;  %v3139_v31 = vpop.eup %3138 }
 0x2b0   :  { %2689 = vmatpush3.msra.mxu1 %v1953_v1  ;;  %v1951_v54 = vmul.f32 %v4861_v29, %v4792_v62  ;;  %v1885_v55 = vadd.f32 1.0, %v4764_v48  ;;  %v1709_v38 = vmul.f32 0.5, %v4796_v49  ;;  %v1900_v21 = vadd.f32 1.0, %v4868_v3 }
 0x2b1   :  { %3156 = verf.f32 %v1766_v12  ;;  %v4956_v13 = vadd.f32 %v4370_v30, %v1569_v5  ;;  %2690 = vmatprep.subr.mxu1 %v1968_v28  ;;  %v1966_v30 = vmul.f32 %v1902_v7, %v1710_v14  ;;  %v3141_v56 = vpop.eup %3140  ;;  %v1950_v57 = vmul.f32 %v1886_v23, %v1694_v53 }
 0x2b2   :  { %2691 = vmatpush3.msra.mxu1 %v1952_v42  ;;  %3158 = verf.f32 %v1749_v52  ;;  %v1693_v8 = vmul.f32 0.5, %v4682_v26  ;;  %v1884_v45 = vadd.f32 1.0, %v4739_v15  ;;  %v3143_v62 = vpop.eup %3142  ;;  %v1965_v48 = vmul.f32 %v1901_v0, %v1709_v38 }
 0x2b3   :  { %v1765_v51 = vmul.f32 0.70710677, %v4956_v13  ;;  %2692 = vmatprep.subr.mxu1 %v1967_v20  ;;  %v1708_v29 = vmul.f32 0.5, %v4782_v32  ;;  %v1899_v27 = vadd.f32 1.0, %v3139_v31  ;;  %v3145_v16 = vpop.eup %3144  ;;  %v1692_v49 = vmul.f32 0.5, %v4664_v9 }
 0x2b4   :  { %2693 = vmatpush3.msra.mxu1 %v1951_v54  ;;  %v1949_v60 = vmul.f32 %v1885_v55, %v1693_v8  ;;  %v1883_v3 = vadd.f32 1.0, %v3135_v39  ;;  %v1707_v59 = vmul.f32 0.5, %v4879_v6  ;;  %v1898_v26 = vadd.f32 1.0, %v3141_v56 }
 0x2b5   :  { %3160 = verf.f32 %v1765_v51  ;;  %2694 = vmatprep.subr.mxu1 %v1966_v30  ;;  %v1964_v24 = vmul.f32 %v1900_v21, %v1708_v29  ;;  %v1948_v15 = vmul.f32 %v1884_v45, %v1692_v49  ;;  %v1691_v34 = vmul.f32 0.5, %v4853_v17 }
 0x2b6   :  { %2695 = vmatpush3.msra.mxu1 %v1950_v57  ;;  %v3147_v11 = vpop.eup %3146  ;;  %v1882_v33 = vadd.f32 1.0, %v3137_v44  ;;  %v1963_v32 = vmul.f32 %v1899_v27, %v1707_v59  ;;  %v1706_v43 = vmul.f32 0.5, %v4884_v61  ;;  %v1897_v10 = vadd.f32 1.0, %v3145_v16 }
 0x2b7   :  { %2696 = vmatprep.subr.mxu1 %v1965_v48  ;;  %v3149_v4 = vpop.eup %3148  ;;  %v1947_v9 = vmul.f32 %v1883_v3, %v1691_v34  ;;  %v1690_v39 = vmul.f32 0.5, %v4865_v50  ;;  %v1881_v1 = vadd.f32 1.0, %v3143_v62  ;;  %v1705_v12 = vmul.f32 0.5, %v4899_v63  ;;  %v3171_v34 = vld [vmem:[%s5124_s0 + $0xe8] sm:$0xff] }
 0x2b8   :  { %2697 = vmatpush3.msra.mxu1 %v1949_v60  ;;  %v1962_v22 = vmul.f32 %v1898_v26, %v1706_v43  ;;  %v1896_v5 = vadd.f32 1.0, %v3147_v11  ;;  %v1689_v28 = vmul.f32 0.5, %v4888_v46  ;;  %v1880_v36 = vadd.f32 1.0, %v3149_v4  ;;  %v3168_v11 = vld [vmem:[%s5124_s0 + $0x78] sm:$0xff]  ;;  %v3173_v4 = vld [vmem:[%s5124_s0 + $0xe0] sm:$0xff] }
 0x2b9   :  { %2698 = vmatprep.subr.mxu1 %v1964_v24  ;;  %v1946_v52 = vmul.f32 %v1882_v33, %v1690_v39  ;;  %v1961_v7 = vmul.f32 %v1897_v10, %v1705_v12  ;;  %v1704_v44 = vmul.f32 0.5, %v4908_v41  ;;  %v1688_v23 = vmul.f32 0.5, %v4911_v47  ;;  %v3172_v33 = vld [vmem:[%s5124_s0 + $0x68] sm:$0xff]  ;;  %v3175_v43 = vld [vmem:[%s5124_s0 + $0xd8] sm:$0xff] }
 0x2ba   :  { %v3151_v40 = vpop.eup %3150  ;;  %2699 = vmatpush3.msra.mxu1 %v1948_v15  ;;  %v1945_v50 = vmul.f32 %v1881_v1, %v1689_v28  ;;  %v1703_v53 = vmul.f32 0.5, %v4928_v25  ;;  %v1687_v31 = vmul.f32 0.5, %v4919_v18  ;;  %v1702_v51 = vmul.f32 0.5, %v4941_v19  ;;  %v3170_v15 = vld [vmem:[%s5124_s0 + $0x70] sm:$0xff]  ;;  %v3176_v10 = vld [vmem:[%s5124_s0 + $0x58] sm:$0xff]  ;;  %v3179_v39 = vld [vmem:[%s5124_s0 + $0xc8] sm:$0xff] }
 0x2bb   :  { %v3153_v6 = vpop.eup %3152  ;;  %2700 = vmatprep.subr.mxu1 %v1963_v32  ;;  %v1895_v42 = vadd.f32 1.0, %v3151_v40  ;;  %v1960_v63 = vmul.f32 %v1896_v5, %v1704_v44  ;;  %v1944_v46 = vmul.f32 %v1880_v36, %v1688_v23  ;;  %v1686_v30 = vmul.f32 0.5, %v4924_v2  ;;  %v2136_v2 = vld [vmem:[%s5128_s4] sm:$0xff]  ;;  %v3177_v40 = vld [vmem:[%s5124_s0 + $0xd0] sm:$0xff]  ;;  %v3180_v1 = vld [vmem:[%s5124_s0 + $0x48] sm:$0xff] }
 0x2bc   :  { %v3155_v17 = vpop.eup %3154  ;;  %2701 = vmatpush3.msra.mxu1 %v1947_v9  ;;  %v1879_v20 = vadd.f32 1.0, %v3153_v6  ;;  %v1701_v38 = vmul.f32 0.5, %v4956_v13  ;;  %v1685_v18 = vmul.f32 0.5, %v4936_v35  ;;  %v3223_v19 = vmov 0.0   ;;  %v3167_v35 = vld [vmem:[%s5124_s0 + $0xf8] sm:$0xff]  ;;  %v3174_v32 = vld [vmem:[%s5124_s0 + $0x60] sm:$0xff] }
 0x2bd   :  { %2702 = vmatprep.subr.mxu1 %v1962_v22  ;;  %v1878_v54 = vadd.f32 1.0, %v3155_v17  ;;  %v1959_v41 = vmul.f32 %v1895_v42, %v1703_v53  ;;  %v3178_v9 = vld [vmem:[%s5124_s0 + $0x50] sm:$0xff]  ;;  %v3181_v6 = vld [vmem:[%s5124_s0 + $0xc0] sm:$0xff]  ;;  %v3183_v12 = vld [vmem:[%s5124_s0 + $0xb8] sm:$0xff] }
 0x2be   :  { %v3157_v61 = vpop.eup %3156  ;;  %2703 = vmatpush3.msra.mxu1 %v1946_v52  ;;  %v1943_v47 = vmul.f32 %v1879_v20, %v1687_v31  ;;  %v3182_v22 = vld [vmem:[%s5124_s0 + $0x40] sm:$0xff]  ;;  %v3184_v5 = vld [vmem:[%s5124_s0 + $0x38] sm:$0xff]  ;;  %v3185_v17 = vld [vmem:[%s5124_s0 + $0xb0] sm:$0xff] }
 0x2bf   :  { %v3159_v14 = vpop.eup %3158  ;;  %2704 = vmatprep.subr.mxu1 %v1961_v7  ;;  %v1894_v0 = vadd.f32 1.0, %v3157_v61  ;;  %v1942_v57 = vmul.f32 %v1878_v54, %v1686_v30  ;;  %v3186_v52 = vld [vmem:[%s5124_s0 + $0x30] sm:$0xff]  ;;  %v3187_v28 = vld [vmem:[%s5124_s0 + $0xa8] sm:$0xff]  ;;  %v3189_v61 = vld [vmem:[%s5124_s0 + $0xa0] sm:$0xff] }
 0x2c0   :  { %2705 = vmatpush3.msra.mxu1 %v1945_v50  ;;  %v1877_v56 = vadd.f32 1.0, %v3159_v14  ;;  %v3188_v36 = vld [vmem:[%s5124_s0 + $0x28] sm:$0xff]  ;;  %v3190_v7 = vld [vmem:[%s5124_s0 + $0x20] sm:$0xff]  ;;  %v3191_v44 = vld [vmem:[%s5124_s0 + $0x98] sm:$0xff] }
 0x2c1   :  { %2706 = vmatprep.subr.mxu1 %v1960_v63  ;;  %v1958_v25 = vmul.f32 %v1894_v0, %v1702_v51  ;;  %v3192_v42 = vld [vmem:[%s5124_s0 + $0x18] sm:$0xff]  ;;  %v3193_v50 = vld [vmem:[%s5124_s0 + $0x90] sm:$0xff]  ;;  %v3195_v20 = vld [vmem:[%s5124_s0 + $0x88] sm:$0xff] }
 0x2c2   :  { %v3161_v55 = vpop.eup %3160  ;;  %2707 = vmatpush3.msra.mxu1 %v1944_v46  ;;  %v1941_v45 = vmul.f32 %v1877_v56, %v1685_v18  ;;  %v3194_v23 = vld [vmem:[%s5124_s0 + $0x10] sm:$0xff]  ;;  %v3196_v14 = vld [vmem:[%s5124_s0 + $0x8] sm:$0xff]  ;;  %v3197_v63 = vld [vmem:[%s5124_s0 + $0x80] sm:$0xff] }
 0x2c3   :  { %v1893_v21 = vadd.f32 1.0, %v3161_v55  ;;  %2708 = vmatprep.subr.mxu1 %v1959_v41  ;;  %v3198_v53 = vld [vmem:[%s5124_s0] sm:$0xff] }
 0x2c4   :  { %2709 = vmatpush3.msra.mxu1 %v1943_v47  ;;  %v5303_v0 = vld [vmem:[#allocation5_spill] sm:$0xff] }
 0x2c5   :  { %v1957_v8 = vmul.f32 %v1893_v21, %v1701_v38  ;;  %2710 = vmatprep.subr.mxu1 %v1958_v25  ;;  %v2139_v46 = vsub.s32 3, %v5303_v0  ;;  %v3199_v31 = vld [vmem:[%s5130_s6] sm:$0x1f]  ;;  %v5304_v21 = vsub.s32 2, %v5303_v0 }
 0x2c6   :  { %2711 = vmatpush3.msra.mxu1 %v1942_v57  ;;  %v95_v47 = vld [vmem:[%s5131_s7] sm:$0x7] }
 0x2c7   :  { %2712 = vmatprep.subr.mxu1 %v1957_v8  ;;  %v2140_v54 = vrot.slane %v3199_v31, %v2139_v46  ;;  %v2218_v56 = vrot.slane %v95_v47, %v5304_v21 }
 0x2c8   :  { %2713 = vmatpush3.msra.mxu1 %v1941_v45 }
 0x2c9   :  { %2131 = vmatmul.mubr.f32.vlgmr.msra.gmra.mxu1 %v4757_v37  ;;  %2889 = vmatprep.subr.mxu1 %v3223_v19  ;;  %v2214_v37 = vld [vmem:[%s5126_s2] sm:$0xff] }
 0x2ca   :  { %2891 = vmatprep.mubr.msk.f32.mxu1 %vm3224_vm3, %v3223_v19  ;;  %2890 = vmatpush3.msra.mxu1 %v2136_v2  ;;  %v2220_v13 = vcombine.high %v2214_v37, %v2214_v37  ;;  %v5000_v60 = vrot.slane %v2214_v37, %v5276_v58 }
 0x2cb   :  { %2719 = vmatprep.subr.mxu1 %v3167_v35 }
 0x2cc   :  { %v2234_v62 = vrot.slane %v2220_v13, %v5276_v58  ;;  %v2235_v59 = vcombine.high %v5000_v60, %v5000_v60  ;;  %v3169_v58 = vld [vmem:[%s5124_s0 + $0xf0] sm:$0xff] }
 0x2ce   :  { %v2236_v48 = vcombine.high %v2234_v62, %v2234_v62 }
 0x2d0   :  { %2375 = vmatprep.mubr.f32.mxu0 %v2236_v48 }
 0x2d1   :  { %2376 = vmatmul.mubr.f32.vlgmr.msra.gmra.mxu0 %v2234_v62 }
 0x349   :  { %v2679_v29 = vpop.f32.mrf.mxu1 }
 0x34b   :  { %v2680_v27 = vpop.f32.mrf.mxu1 }
 0x34c   :  { %v2681_v3 = vadd.f32 %v2680_v27, %v2679_v29  ;;  %v2411_v29 = vld [vmem:[%s5129_s5] sm:$0xf]  ;;  %s3225_s5 = smov 8  }
 0x389   :  { %v2714_v16 = vpop.f32.mrf.mxu1 }
 0x38b   :  { %v2715_v49 = vpop.f32.mrf.mxu1 }
 0x38c   :  { %v2716_v24 = vadd.f32 %v2715_v49, %v2714_v16  ;;  %v5305_v49 = vsub.s32 0, %v5303_v0 }
 0x38e   :  { %v2133_v26 = vadd.f32 %v2716_v24, %v2681_v3  ;;  %v2399_v3 = vrot.slane %v95_v47, %v5305_v49 }
 0x390   :  { %2892 = vmatmul.mubr.msk.f32.vlgmr.msra.gmra.mxu1 %vm683_vm2, %v2133_v26 }
 0x391   :  { %2720 = vmatpush3.msra.mxu1 %v3168_v11  ;;  %2305 = vmatprep.mubr.f32.mxu1 %v2235_v59  ;;  %v2786_v30 = vpop.f32.mrf.mxu0  ;;  %v5306_v59 = vsub.s32 1, %v5303_v0 }
 0x392   :  { %2721 = vmatprep.subr.mxu1 %v3169_v58 }
 0x393   :  { %2722 = vmatpush3.msra.mxu1 %v3170_v15  ;;  %v2787_v57 = vpop.f32.mrf.mxu0  ;;  %v2404_v26 = vrot.slane %v95_v47, %v5306_v59 }
 0x394   :  { %2723 = vmatprep.subr.mxu1 %v3171_v34  ;;  %v2788_v45 = vadd.f32 %v2787_v57, %v2786_v30 }
 0x395   :  { %2724 = vmatpush3.msra.mxu1 %v3172_v33 }
 0x396   :  { %2725 = vmatprep.subr.mxu1 %v3173_v4 }
 0x397   :  { %2726 = vmatpush3.msra.mxu1 %v3174_v32 }
 0x398   :  { %2727 = vmatprep.subr.mxu1 %v3175_v43 }
 0x399   :  { %2728 = vmatpush3.msra.mxu1 %v3176_v10  ;;  %v2414_v10 = vsub.s32 4, %v5303_v0 }
 0x39a   :  { %2729 = vmatprep.subr.mxu1 %v3177_v40 }
 0x39b   :  { %2730 = vmatpush3.msra.mxu1 %v3178_v9  ;;  %v2415_v40 = vrot.slane %v3199_v31, %v2414_v10 }
 0x39c   :  { %2731 = vmatprep.subr.mxu1 %v3179_v39 }
 0x39d   :  { %2732 = vmatpush3.msra.mxu1 %v3180_v1 }
 0x39e   :  { %2733 = vmatprep.subr.mxu1 %v3181_v6 }
 0x39f   :  { %2734 = vmatpush3.msra.mxu1 %v3182_v22 }
 0x3a0   :  { %2735 = vmatprep.subr.mxu1 %v3183_v12 }
 0x3a1   :  { %2736 = vmatpush3.msra.mxu1 %v3184_v5 }
 0x3a2   :  { %2737 = vmatprep.subr.mxu1 %v3185_v17 }
 0x3a3   :  { %2738 = vmatpush3.msra.mxu1 %v3186_v52 }
 0x3a4   :  { %2739 = vmatprep.subr.mxu1 %v3187_v28 }
 0x3a5   :  { %2740 = vmatpush3.msra.mxu1 %v3188_v36 }
 0x3a6   :  { %2741 = vmatprep.subr.mxu1 %v3189_v61 }
 0x3a7   :  { %2742 = vmatpush3.msra.mxu1 %v3190_v7 }
 0x3a8   :  { %2743 = vmatprep.subr.mxu1 %v3191_v44 }
 0x3a9   :  { %2744 = vmatpush3.msra.mxu1 %v3192_v42 }
 0x3aa   :  { %2745 = vmatprep.subr.mxu1 %v3193_v50 }
 0x3ab   :  { %2746 = vmatpush3.msra.mxu1 %v3194_v23 }
 0x3ac   :  { %2747 = vmatprep.subr.mxu1 %v3195_v20 }
 0x3ad   :  { %2748 = vmatpush3.msra.mxu1 %v3196_v14 }
 0x3ae   :  { %2749 = vmatprep.subr.mxu1 %v3197_v63 }
 0x3af   :  { %2750 = vmatpush3.msra.mxu1 %v3198_v53 }
 0x3b0   :  { %2306 = vmatmul.mubr.f32.vlgmr.msra.gmra.mxu1 %v5000_v60  ;;  %2894 = vmatprep.subr.mxu1 %v3223_v19 }
 0x3b1   :  { %2896 = vmatprep.mubr.msk.f32.mxu1 %vm3224_vm3, %v3223_v19  ;;  %2895 = vmatpush3.msk.msra.mxu1 %vm294_vm0, %v2411_v29 }
 0x450   :  { %v2210_v55 = vpop.f32.mrf.mxu1 }
 0x451   :  { %v2211_v41 = vadd.f32 %v2210_v55, %v2140_v54 }
 0x452   :  { %v2893_v51 = vpop.f32.mrf.mxu1 }
 0x453   :  { %2493 = vst.msk [vmem:[#allocation2] sm:$0x3] %vm2492_vm4, %v2211_v41 }
 0x470   :  { %v2751_v38 = vpop.f32.mrf.mxu1 }
 0x472   :  { %v2752_v25 = vpop.f32.mrf.mxu1 }
 0x473   :  { %v2753_v8 = vadd.f32 %v2752_v25, %v2751_v38 }
 0x475   :  { %v2308_v18 = vadd.f32 %v2753_v8, %v2218_v56 }
 0x477   :  { %v2378_v2 = vadd.f32 %v2788_v45, %v2308_v18 }
 0x479   :  { %v2382_v19 = vsel %vm2381_vm5, %v2378_v2, 0.0 }
 0x47a   :  { %2383 = vadd.xlane.f32.xlu0 %v2382_v19 }
 0x503   :  { %v2384_v35 = vpop.xlane.xlu0 %2383 }
 0x504   :  { %v2386_v37 = vmul.f32 0.25, %v2384_v35 }
 0x506   :  { %v2387_v13 = vsub.f32 %v2378_v2, %v2386_v37 }
 0x508   :  { %v2388_v62 = vmul.f32 %v2387_v13, %v2387_v13 }
 0x50a   :  { %v2389_v48 = vsel %vm2381_vm5, %v2388_v62, 0.0 }
 0x50b   :  { %2390 = vadd.xlane.f32.xlu1 %v2389_v48 }
 0x594   :  { %v2391_v27 = vpop.xlane.xlu1 %2390 }
 0x595   :  { %v2392_v16 = vmul.f32 0.25, %v2391_v27 }
 0x597   :  { %v2393_v60 = vadd.f32 1e-05, %v2392_v16 }
 0x599   :  { %3162 = vrsqrt.f32 %v2393_v60 }
 0x5a6   :  { %v3163_v24 = vpop.eup %3162 }
 0x5a7   :  { %v2395_v11 = vmul.f32 %v3163_v24, %v2387_v13 }
 0x5a9   :  { %v2400_v58 = vmul.f32 %v2399_v3, %v2395_v11 }
 0x5ab   :  { %v2405_v15 = vadd.f32 %v2404_v26, %v2400_v58 }
 0x5ad   :  { %v2407_v34 = vmul.f32 0.70710677, %v2405_v15  ;;  %v2406_v4 = vmul.f32 0.5, %v2405_v15 }
 0x5af   :  { %3164 = verf.f32 %v2407_v34 }
 0x5bc   :  { %v3165_v33 = vpop.eup %3164 }
 0x5bd   :  { %v2409_v32 = vadd.f32 1.0, %v3165_v33 }
 0x5bf   :  { %v2410_v43 = vmul.f32 %v2409_v32, %v2406_v4 }
 0x5c1   :  { %2897 = vmatmul.mubr.msk.f32.vlgmr.msra.gmra.mxu1 %vm101_vm1, %v2410_v43 }
 0x681   :  { %v2488_v9 = vpop.f32.mrf.mxu1 }
 0x682   :  { %v2489_v39 = vadd.f32 %v2488_v9, %v2415_v40 }
 0x683   :  { %v2898_v1 = vpop.f32.mrf.mxu1 }
 0x684   :  { %2495 = vrot.lane.b32.xlu0 %v2489_v39, %s3225_s5 }
 0x6f6   :  { %v2496_v6 = vpop.permute.xlu0 %2495 }
 0x6f7   :  { %2499 = vst.msk [vmem:[#allocation2] sm:$0x3] %vm2498_vm6, %v2496_v6 }
 0x6f8   :  { %3211 = shalt.err (!%p3208_p4)
}
 0x6f9   :  { %2509 = dma.vmem_to_hbm [thread:$0]  %s2507_s19, 32, %s5132_s8, [#allocation3]  }
 0x6fa   :  { %3220 = dma.done.wait [#allocation3], 32  }
 0x6fb   :  { %3221 = vsyncadd [#allocation3], 4294967264 }
 0x6fc   :  { %2513 = vsyncpa [#allocation3], 1 }

</bundles_post_ra>
